<compile_context>
chip_gen: v7x
topology: tpu7x:2x2x1
jax: 0.10.0
libtpu: 0.0.40
codegen_flags: <defaults>
</compile_context>

<pallas_src>
import functools
import numpy as np
import jax
import jax.numpy as jnp
from jax.experimental import pallas as pl
from jax.experimental.pallas import tpu as pltpu

N_LAYERS = 6      # documented: the layer body is loop-invariant in the reference -> computed once
N_HEADS = 8
LN_EPS = 1e-5
NEG_FILL = np.float32(-10000.0)


def _mm(eq, a, b, dt):
    """einsum with both operands cast to the compute dtype; f32 accumulation on the MXU."""
    return jnp.einsum(eq, a.astype(dt), b.astype(dt), preferred_element_type=jnp.float32)


def _add_layernorm(x, y, g, b):
    z = x + y
    mu = jnp.mean(z, axis=-1, keepdims=True)
    zc = z - mu
    var = jnp.mean(zc * zc, axis=-1, keepdims=True)
    return zc * jax.lax.rsqrt(var + np.float32(LN_EPS)) * g + b


# ----------------------------------------------------------------------------
# Fully fused decoder kernel: one batch item per grid step, everything VMEM-resident.
# ----------------------------------------------------------------------------
def _decoder_fused_kernel(*refs, n_heads, has_src_mask, compute_dtype):
    it = iter(refs)
    x_ref = next(it)        # (1, T, H)   embedded target
    enc_ref = next(it)      # (1, S, H)   encoder output
    tmask_ref = next(it)    # (1, T, T)   float, 0 => masked
    smask_ref = next(it) if has_src_mask else None
    wq_ref, bq_ref = next(it), next(it)     # (nh, H, dk), (nh, 1, dk)
    wk_ref, bk_ref = next(it), next(it)
    wv_ref, bv_ref = next(it), next(it)
    wo_ref, bo_ref = next(it), next(it)     # (nh, dk, H), (1, H)
    g_ref, beta_ref = next(it), next(it)    # (1, H)
    w1_ref, b1_ref = next(it), next(it)     # (H, 4H), (1, 4H)
    w2_ref, b2_ref = next(it), next(it)     # (4H, H), (1, H)
    fcw_ref, fcb_ref = next(it), next(it)   # (H, V), (1, V)
    o_ref = next(it)                        # (1, T, V)

    cdt = compute_dtype
    x = x_ref[0]
    enc = enc_ref[0]
    g = g_ref[...]
    beta = beta_ref[...]
    wq, bq = wq_ref[...], bq_ref[...]
    wk, bk = wk_ref[...], bk_ref[...]
    wv, bv = wv_ref[...], bv_ref[...]
    wo, bo = wo_ref[...], bo_ref[...]
    d_k = wq.shape[-1]
    scale = np.float32(1.0 / np.sqrt(d_k))

    def project(z, w_h, b_h):
        # z: (N, H) -> (nh, N, dk). Batch-leading head-batched matmul (canonical Mosaic form),
        # avoids any in-kernel head reshape/transpose.
        # TODO(synk): for large H / d_k >= 16, compute z @ W as one (N,H)x(H,H) matmul and split
        # heads with pltpu.einshape to cut MXU push count further.
        zb = jnp.broadcast_to(z[None], (n_heads,) + z.shape)
        return _mm('hnd,hdk->hnk', zb, w_h, cdt) + b_h

    def attention(q_h, k_h, v_h, mask):
        # q_h: (nh, T, dk); k_h, v_h: (nh, S, dk); mask: (T, S) float (0 => masked) or None.
        s = _mm('htd,hsd->hts', q_h, k_h, cdt) * scale
        if mask is not None:
            # single masked_fill over the whole (heads, T, S) tensor (exact reference semantics)
            s = jnp.where((mask == 0.0)[None, :, :], NEG_FILL, s)
        m = jnp.max(s, axis=-1, keepdims=True)
        e = jnp.exp(s - m)
        p = e / jnp.sum(e, axis=-1, keepdims=True)      # exact division for reference parity
        ctx = _mm('hts,hsd->htd', p, v_h, cdt)          # (nh, T, dk)
        # output projection as per-head partials summed over heads -> no head->lane relayout
        return jnp.sum(_mm('htd,hde->hte', ctx, wo, cdt), axis=0) + bo

    # ---- self-attention (query = key = value = embedded trg) ----
    q = project(x, wq, bq)
    k = project(x, wk, bk)
    v = project(x, wv, bv)
    a = attention(q, k, v, tmask_ref[0])
    a = _add_layernorm(x, a, g, beta)

    # ---- cross-attention (same shared weights; K/V from encoder_output) ----
    q2 = project(a, wq, bq)
    ek = project(enc, wk, bk)
    ev = project(enc, wv, bv)
    smask = smask_ref[0] if has_src_mask else None
    a2 = attention(q2, ek, ev, smask)
    a2 = _add_layernorm(a2, a2, g, beta)   # == LN(attn + dropout(attn)) in eval (reference)

    # ---- feed-forward: Linear -> exact (erf) GELU -> Linear ----
    h = _mm('td,df->tf', a2, w1_ref[...], cdt) + b1_ref[...]
    h = np.float32(0.5) * h * (np.float32(1.0) +
                               jax.lax.erf(h * np.float32(1.0 / np.sqrt(2.0))))
    d = _mm('tf,fd->td', h, w2_ref[...], cdt) + b2_ref[...]
    y = _add_layernorm(a2, d, g, beta)

    # ---- final projection + softmax (fused: no HBM round trip of decoder_output) ----
    logits = _mm('td,dv->tv', y, fcw_ref[...], cdt) + fcb_ref[...]
    lm = jnp.max(logits, axis=-1, keepdims=True)
    le = jnp.exp(logits - lm)
    o_ref[0] = le / jnp.sum(le, axis=-1, keepdims=True)


def _const_map(nd):
    return lambda b: (0,) * nd


# ----------------------------------------------------------------------------
# Decoder forward (parameter sharing & loop-invariance exactly as in the module)
# ----------------------------------------------------------------------------
def decoder_forward(params, trg, encoder_output, trg_mask, src_mask=None,
                    n_heads=N_HEADS, compute_dtype=jnp.float32):
    """Eval-mode forward of the reference Decoder as ONE fused Pallas kernel (grid over batch).

    compute_dtype: matmul operand dtype. jnp.float32 (default) matches the reference numerics;
    jnp.bfloat16 is the v6e/v7x MXU-throughput / HBM / VMEM lever (f32 accumulation; LN, softmax
    and GELU statistics stay f32) at a small numerics deviation.
    """
    B, T = trg.shape
    S = encoder_output.shape[1]
    H = params["tok_emb"].shape[1]
    V = params["fc_w"].shape[1]
    Hf = params["w1"].shape[1]
    d_k = H // n_heads

    # Embedding lookups (gathers) kept as plain-JAX glue; dropout == identity in eval.
    # TODO(synk): a scalar-prefetch + pl.Element row-gather kernel could fold the embedding in too.
    te = jnp.take(params["tok_emb"], trg, axis=0) * np.float32(np.sqrt(H))
    pe = jnp.take(params["pos_emb"], jnp.arange(T, dtype=jnp.int32), axis=0)[None, :, :]
    x = (te + pe).astype(jnp.float32)
    enc = encoder_output.astype(jnp.float32)

    # Masks as float (0 => masked). Batch-invariant masks (leading broadcast dim 1) are passed as
    # a single (1, T, K) block with a constant index_map -> DMA'd once, resident over the grid.
    def prep_mask(m, klen):
        m = jnp.asarray(m, jnp.float32).reshape(-1, T, klen)
        assert m.shape[0] in (1, B), "mask must be broadcastable as (1|B, 1, T, K)"
        if m.shape[0] == 1:
            spec = pl.BlockSpec((1, T, klen), _const_map(3))
        else:
            spec = pl.BlockSpec((1, T, klen), lambda b: (b, 0, 0))
        return m, spec

    tm, tm_spec = prep_mask(trg_mask, T)
    has_src_mask = src_mask is not None

    # Head-major weight packing (plain JAX, done once, outside the kernel).
    def w_heads(w):                       # (H, H) -> (nh, H, dk)
        return jnp.transpose(w.reshape(H, n_heads, d_k), (1, 0, 2)).astype(compute_dtype)

    def b_heads(b):                       # (H,) -> (nh, 1, dk)
        return b.reshape(n_heads, 1, d_k).astype(jnp.float32)

    weights = [
        w_heads(params["wq"]), b_heads(params["bq"]),
        w_heads(params["wk"]), b_heads(params["bk"]),
        w_heads(params["wv"]), b_heads(params["bv"]),
        params["wo"].reshape(n_heads, d_k, H).astype(compute_dtype),
        params["bo"].reshape(1, H).astype(jnp.float32),
        params["ln_g"].reshape(1, H).astype(jnp.float32),
        params["ln_b"].reshape(1, H).astype(jnp.float32),
        params["w1"].astype(compute_dtype), params["b1"].reshape(1, Hf).astype(jnp.float32),
        params["w2"].astype(compute_dtype), params["b2"].reshape(1, H).astype(jnp.float32),
        params["fc_w"].astype(compute_dtype), params["fc_b"].reshape(1, V).astype(jnp.float32),
    ]

    in_specs = [
        pl.BlockSpec((1, T, H), lambda b: (b, 0, 0)),
        pl.BlockSpec((1, S, H), lambda b: (b, 0, 0)),
        tm_spec,
    ]
    args = [x, enc, tm]
    if has_src_mask:
        sm, sm_spec = prep_mask(src_mask, S)
        in_specs.append(sm_spec)
        args.append(sm)
    for w in weights:
        # Shared weights: constant index_map -> fetched once, kept VMEM-resident across the grid.
        # TODO(synk): pipeline_mode=pl.Buffered(1) on these invariant specs once H grows
        # (halves their footprint inside v7x's 64 MiB VMEM).
        in_specs.append(pl.BlockSpec(w.shape, _const_map(w.ndim)))
        args.append(w)

    kernel = functools.partial(_decoder_fused_kernel, n_heads=n_heads,
                               has_src_mask=has_src_mask, compute_dtype=compute_dtype)

    # TODO(synk): for large vocab, tile V in the grid with an online softmax and pad V to a
    # lane-dense multiple of 128; at these shapes a full-V block is VMEM-safe on all chips.
    return pl.pallas_call(
        kernel,
        out_shape=jax.ShapeDtypeStruct((B, T, V), jnp.float32),
        grid=(B,),                                    # batch grid: megacore-sharded on v7x
        in_specs=in_specs,
        out_specs=pl.BlockSpec((1, T, V), lambda b: (b, 0, 0)),
        compiler_params=pltpu.CompilerParams(dimension_semantics=("parallel",)),
    )(*args)


# ----------------------------------------------------------------------------
# deterministic parameter init (shapes dictated by the module's __init__)
# ----------------------------------------------------------------------------
def init_params(key, vocab, hid, max_len):
    keys = jax.random.split(key, 16)

    def lin(k, din, dout):
        kw, kb = jax.random.split(k)
        w = jax.random.normal(kw, (din, dout), jnp.float32) * 0.05
        b = jax.random.normal(kb, (dout,), jnp.float32) * 0.05
        return w, b

    wq, bq = lin(keys[0], hid, hid)
    wk, bk = lin(keys[1], hid, hid)
    wv, bv = lin(keys[2], hid, hid)
    wo, bo = lin(keys[3], hid, hid)
    w1, b1 = lin(keys[4], hid, hid * 4)
    w2, b2 = lin(keys[5], hid * 4, hid)
    fc_w, fc_b = lin(keys[6], hid, vocab)
    return dict(
        tok_emb=jax.random.normal(keys[7], (vocab, hid), jnp.float32) * 0.05,
        pos_emb=jax.random.normal(keys[8], (max_len, hid), jnp.float32) * 0.05,
        wq=wq, bq=bq, wk=wk, bk=bk, wv=wv, bv=bv, wo=wo, bo=bo,
        w1=w1, b1=b1, w2=w2, b2=b2,
        ln_g=jnp.ones((hid,), jnp.float32),
        ln_b=jnp.zeros((hid,), jnp.float32),
        fc_w=fc_w, fc_b=fc_b,
    )


if __name__ == "__main__":
    B, T, S = 2, 8, 8
    vocab, hid, max_len = 16, 32, 100

    key = jax.random.PRNGKey(0)
    kp, kt, ke = jax.random.split(key, 3)
    params = init_params(kp, vocab, hid, max_len)

    trg = jax.random.randint(kt, (B, T), 0, vocab, dtype=jnp.int32)
    encoder_output = jax.random.normal(ke, (B, S, hid), jnp.float32)
    causal = jnp.tril(jnp.ones((T, T), jnp.float32))
    # batch-invariant causal mask (broadcasts exactly like the torch masked_fill):
    # shape (1, 1, T, T) -> DMA'd once via a constant index_map.
    trg_mask = causal[None, None, :, :]

    out = decoder_forward(params, trg, encoder_output, trg_mask)
    out = jax.block_until_ready(out)

    assert out.shape == (B, T, vocab)
    assert bool(jnp.all(jnp.isfinite(out)))
    # rows of the final softmax must sum to 1 (exact division -> tight tolerance holds)
    assert bool(jnp.allclose(jnp.sum(out, axis=-1), 1.0, atol=1e-5))
    print("KERNEL_OK")
</pallas_src>

<mosaic_0001>
module attributes {stable_mosaic.version = 11 : i64} {
  func.func @_decoder_fused_kernel(%arg0: i32, %arg1: memref<1x8x32xf32, #tpu.memory_space<vmem>>, %arg2: memref<1x8x32xf32, #tpu.memory_space<vmem>>, %arg3: memref<1x8x8xf32, #tpu.memory_space<vmem>>, %arg4: memref<8x32x4xf32, #tpu.memory_space<vmem>>, %arg5: memref<8x1x4xf32, #tpu.memory_space<vmem>>, %arg6: memref<8x32x4xf32, #tpu.memory_space<vmem>>, %arg7: memref<8x1x4xf32, #tpu.memory_space<vmem>>, %arg8: memref<8x32x4xf32, #tpu.memory_space<vmem>>, %arg9: memref<8x1x4xf32, #tpu.memory_space<vmem>>, %arg10: memref<8x4x32xf32, #tpu.memory_space<vmem>>, %arg11: memref<1x32xf32, #tpu.memory_space<vmem>>, %arg12: memref<1x32xf32, #tpu.memory_space<vmem>>, %arg13: memref<1x32xf32, #tpu.memory_space<vmem>>, %arg14: memref<32x128xf32, #tpu.memory_space<vmem>>, %arg15: memref<1x128xf32, #tpu.memory_space<vmem>>, %arg16: memref<128x32xf32, #tpu.memory_space<vmem>>, %arg17: memref<1x32xf32, #tpu.memory_space<vmem>>, %arg18: memref<32x16xf32, #tpu.memory_space<vmem>>, %arg19: memref<1x16xf32, #tpu.memory_space<vmem>>, %arg20: memref<1x8x16xf32, #tpu.memory_space<vmem>>) attributes {dimension_semantics = [#tpu.dimension_semantics<parallel>], iteration_bounds = array<i64: 2>, scalar_prefetch = 0 : i64, scratch_operands = 0 : i64, tpu.core_type = #tpu.core_type<tc>, window_params = [{transform_indices = @transform_0, window_bounds = array<i64: 1, 8, 32>}, {transform_indices = @transform_1, window_bounds = array<i64: 1, 8, 32>}, {pipeline_mode = #tpu.pipeline_mode<synchronous>, transform_indices = @transform_2, window_bounds = array<i64: 1, 8, 8>}, {pipeline_mode = #tpu.pipeline_mode<synchronous>, transform_indices = @transform_3, window_bounds = array<i64: 8, 32, 4>}, {pipeline_mode = #tpu.pipeline_mode<synchronous>, transform_indices = @transform_4, window_bounds = array<i64: 8, 1, 4>}, {pipeline_mode = #tpu.pipeline_mode<synchronous>, transform_indices = @transform_5, window_bounds = array<i64: 8, 32, 4>}, {pipeline_mode = #tpu.pipeline_mode<synchronous>, transform_indices = @transform_6, window_bounds = array<i64: 8, 1, 4>}, {pipeline_mode = #tpu.pipeline_mode<synchronous>, transform_indices = @transform_7, window_bounds = array<i64: 8, 32, 4>}, {pipeline_mode = #tpu.pipeline_mode<synchronous>, transform_indices = @transform_8, window_bounds = array<i64: 8, 1, 4>}, {pipeline_mode = #tpu.pipeline_mode<synchronous>, transform_indices = @transform_9, window_bounds = array<i64: 8, 4, 32>}, {pipeline_mode = #tpu.pipeline_mode<synchronous>, transform_indices = @transform_10, window_bounds = array<i64: 1, 32>}, {pipeline_mode = #tpu.pipeline_mode<synchronous>, transform_indices = @transform_11, window_bounds = array<i64: 1, 32>}, {pipeline_mode = #tpu.pipeline_mode<synchronous>, transform_indices = @transform_12, window_bounds = array<i64: 1, 32>}, {pipeline_mode = #tpu.pipeline_mode<synchronous>, transform_indices = @transform_13, window_bounds = array<i64: 32, 128>}, {pipeline_mode = #tpu.pipeline_mode<synchronous>, transform_indices = @transform_14, window_bounds = array<i64: 1, 128>}, {pipeline_mode = #tpu.pipeline_mode<synchronous>, transform_indices = @transform_15, window_bounds = array<i64: 128, 32>}, {pipeline_mode = #tpu.pipeline_mode<synchronous>, transform_indices = @transform_16, window_bounds = array<i64: 1, 32>}, {pipeline_mode = #tpu.pipeline_mode<synchronous>, transform_indices = @transform_17, window_bounds = array<i64: 32, 16>}, {pipeline_mode = #tpu.pipeline_mode<synchronous>, transform_indices = @transform_18, window_bounds = array<i64: 1, 16>}, {transform_indices = @transform_19, window_bounds = array<i64: 1, 8, 16>}]} {
    %c0 = arith.constant 0 : index
    %c0_0 = arith.constant 0 : index
    %c0_1 = arith.constant 0 : index
    %0 = vector.load %arg1[%c0, %c0_0, %c0_1] : memref<1x8x32xf32, #tpu.memory_space<vmem>>, vector<1x8x32xf32>
    %1 = vector.shape_cast %0 : vector<1x8x32xf32> to vector<8x32xf32>
    %c0_2 = arith.constant 0 : index
    %c0_3 = arith.constant 0 : index
    %c0_4 = arith.constant 0 : index
    %2 = vector.load %arg2[%c0_2, %c0_3, %c0_4] : memref<1x8x32xf32, #tpu.memory_space<vmem>>, vector<1x8x32xf32>
    %3 = vector.shape_cast %2 : vector<1x8x32xf32> to vector<8x32xf32>
    %c0_5 = arith.constant 0 : index
    %c0_6 = arith.constant 0 : index
    %4 = vector.load %arg12[%c0_5, %c0_6] : memref<1x32xf32, #tpu.memory_space<vmem>>, vector<1x32xf32>
    %c0_7 = arith.constant 0 : index
    %c0_8 = arith.constant 0 : index
    %5 = vector.load %arg13[%c0_7, %c0_8] : memref<1x32xf32, #tpu.memory_space<vmem>>, vector<1x32xf32>
    %c0_9 = arith.constant 0 : index
    %c0_10 = arith.constant 0 : index
    %c0_11 = arith.constant 0 : index
    %6 = vector.load %arg4[%c0_9, %c0_10, %c0_11] : memref<8x32x4xf32, #tpu.memory_space<vmem>>, vector<8x32x4xf32>
    %c0_12 = arith.constant 0 : index
    %c0_13 = arith.constant 0 : index
    %c0_14 = arith.constant 0 : index
    %7 = vector.load %arg5[%c0_12, %c0_13, %c0_14] : memref<8x1x4xf32, #tpu.memory_space<vmem>>, vector<8x1x4xf32>
    %c0_15 = arith.constant 0 : index
    %c0_16 = arith.constant 0 : index
    %c0_17 = arith.constant 0 : index
    %8 = vector.load %arg6[%c0_15, %c0_16, %c0_17] : memref<8x32x4xf32, #tpu.memory_space<vmem>>, vector<8x32x4xf32>
    %c0_18 = arith.constant 0 : index
    %c0_19 = arith.constant 0 : index
    %c0_20 = arith.constant 0 : index
    %9 = vector.load %arg7[%c0_18, %c0_19, %c0_20] : memref<8x1x4xf32, #tpu.memory_space<vmem>>, vector<8x1x4xf32>
    %c0_21 = arith.constant 0 : index
    %c0_22 = arith.constant 0 : index
    %c0_23 = arith.constant 0 : index
    %10 = vector.load %arg8[%c0_21, %c0_22, %c0_23] : memref<8x32x4xf32, #tpu.memory_space<vmem>>, vector<8x32x4xf32>
    %c0_24 = arith.constant 0 : index
    %c0_25 = arith.constant 0 : index
    %c0_26 = arith.constant 0 : index
    %11 = vector.load %arg9[%c0_24, %c0_25, %c0_26] : memref<8x1x4xf32, #tpu.memory_space<vmem>>, vector<8x1x4xf32>
    %c0_27 = arith.constant 0 : index
    %c0_28 = arith.constant 0 : index
    %c0_29 = arith.constant 0 : index
    %12 = vector.load %arg10[%c0_27, %c0_28, %c0_29] : memref<8x4x32xf32, #tpu.memory_space<vmem>>, vector<8x4x32xf32>
    %c0_30 = arith.constant 0 : index
    %c0_31 = arith.constant 0 : index
    %13 = vector.load %arg11[%c0_30, %c0_31] : memref<1x32xf32, #tpu.memory_space<vmem>>, vector<1x32xf32>
    %14 = vector.shape_cast %1 : vector<8x32xf32> to vector<1x8x32xf32>
    %15 = vector.shape_cast %14 : vector<1x8x32xf32> to vector<1x8x32xf32>
    %16 = vector.broadcast %15 : vector<1x8x32xf32> to vector<8x8x32xf32>
    "tpu.trace_start"() <{level = 10 : i32, message = "hnd,hdk->hnk"}> : () -> ()
    %cst = arith.constant dense<0.000000e+00> : vector<8x8x4xf32>
    %17 = tpu.matmul %16, %6, %cst {dimension_numbers = #tpu.dot_dimension_numbers<[2], [1], [1], [2], [0, 0, 0, 1, 1, 2], [0], [0]>} : vector<8x8x32xf32>, vector<8x32x4xf32>, vector<8x8x4xf32> -> vector<8x8x4xf32>
    "tpu.trace_stop"() : () -> ()
    %18 = vector.broadcast %7 : vector<8x1x4xf32> to vector<8x8x4xf32>
    %19 = arith.addf %17, %18 : vector<8x8x4xf32>
    %20 = vector.shape_cast %1 : vector<8x32xf32> to vector<1x8x32xf32>
    %21 = vector.shape_cast %20 : vector<1x8x32xf32> to vector<1x8x32xf32>
    %22 = vector.broadcast %21 : vector<1x8x32xf32> to vector<8x8x32xf32>
    "tpu.trace_start"() <{level = 10 : i32, message = "hnd,hdk->hnk"}> : () -> ()
    %cst_32 = arith.constant dense<0.000000e+00> : vector<8x8x4xf32>
    %23 = tpu.matmul %22, %8, %cst_32 {dimension_numbers = #tpu.dot_dimension_numbers<[2], [1], [1], [2], [0, 0, 0, 1, 1, 2], [0], [0]>} : vector<8x8x32xf32>, vector<8x32x4xf32>, vector<8x8x4xf32> -> vector<8x8x4xf32>
    "tpu.trace_stop"() : () -> ()
    %24 = vector.broadcast %9 : vector<8x1x4xf32> to vector<8x8x4xf32>
    %25 = arith.addf %23, %24 : vector<8x8x4xf32>
    %26 = vector.shape_cast %1 : vector<8x32xf32> to vector<1x8x32xf32>
    %27 = vector.shape_cast %26 : vector<1x8x32xf32> to vector<1x8x32xf32>
    %28 = vector.broadcast %27 : vector<1x8x32xf32> to vector<8x8x32xf32>
    "tpu.trace_start"() <{level = 10 : i32, message = "hnd,hdk->hnk"}> : () -> ()
    %cst_33 = arith.constant dense<0.000000e+00> : vector<8x8x4xf32>
    %29 = tpu.matmul %28, %10, %cst_33 {dimension_numbers = #tpu.dot_dimension_numbers<[2], [1], [1], [2], [0, 0, 0, 1, 1, 2], [0], [0]>} : vector<8x8x32xf32>, vector<8x32x4xf32>, vector<8x8x4xf32> -> vector<8x8x4xf32>
    "tpu.trace_stop"() : () -> ()
    %30 = vector.broadcast %11 : vector<8x1x4xf32> to vector<8x8x4xf32>
    %31 = arith.addf %29, %30 : vector<8x8x4xf32>
    %c0_34 = arith.constant 0 : index
    %c0_35 = arith.constant 0 : index
    %c0_36 = arith.constant 0 : index
    %32 = vector.load %arg3[%c0_34, %c0_35, %c0_36] : memref<1x8x8xf32, #tpu.memory_space<vmem>>, vector<1x8x8xf32>
    %33 = vector.shape_cast %32 : vector<1x8x8xf32> to vector<8x8xf32>
    "tpu.trace_start"() <{level = 10 : i32, message = "htd,hsd->hts"}> : () -> ()
    %cst_37 = arith.constant dense<0.000000e+00> : vector<8x8x8xf32>
    %34 = tpu.matmul %19, %25, %cst_37 {dimension_numbers = #tpu.dot_dimension_numbers<[2], [2], [1], [1], [0, 0, 0, 1, 1, 1], [0], [0]>} : vector<8x8x4xf32>, vector<8x8x4xf32>, vector<8x8x8xf32> -> vector<8x8x8xf32>
    "tpu.trace_stop"() : () -> ()
    %cst_38 = arith.constant 5.000000e-01 : f32
    %35 = vector.broadcast %cst_38 : f32 to vector<8x8x8xf32>
    %36 = arith.mulf %34, %35 : vector<8x8x8xf32>
    %cst_39 = arith.constant 0.000000e+00 : f32
    %37 = vector.broadcast %cst_39 : f32 to vector<8x8xf32>
    %38 = arith.cmpf oeq, %33, %37 : vector<8x8xf32>
    %39 = vector.shape_cast %38 : vector<8x8xi1> to vector<1x8x8xi1>
    %cst_40 = arith.constant -1.000000e+04 : f32
    %40 = vector.shape_cast %39 : vector<1x8x8xi1> to vector<1x8x8xi1>
    %41 = vector.broadcast %40 : vector<1x8x8xi1> to vector<8x8x8xi1>
    %42 = vector.broadcast %cst_40 : f32 to vector<8x8x8xf32>
    %43 = arith.select %41, %42, %36 : vector<8x8x8xi1>, vector<8x8x8xf32>
    %cst_41 = arith.constant dense<0xFF800000> : vector<8x8xf32>
    %44 = vector.multi_reduction <maximumf>, %43, %cst_41 [2] : vector<8x8x8xf32> to vector<8x8xf32>
    %45 = vector.shape_cast %44 : vector<8x8xf32> to vector<8x8x1xf32>
    %46 = vector.broadcast %45 : vector<8x8x1xf32> to vector<8x8x8xf32>
    %47 = arith.subf %43, %46 : vector<8x8x8xf32>
    %48 = math.exp %47 : vector<8x8x8xf32>
    %cst_42 = arith.constant dense<0.000000e+00> : vector<8x8xf32>
    %49 = vector.multi_reduction <add>, %48, %cst_42 [2] : vector<8x8x8xf32> to vector<8x8xf32>
    %50 = vector.shape_cast %49 : vector<8x8xf32> to vector<8x8x1xf32>
    %51 = vector.broadcast %50 : vector<8x8x1xf32> to vector<8x8x8xf32>
    %52 = arith.divf %48, %51 : vector<8x8x8xf32>
    "tpu.trace_start"() <{level = 10 : i32, message = "hts,hsd->htd"}> : () -> ()
    %cst_43 = arith.constant dense<0.000000e+00> : vector<8x8x4xf32>
    %53 = tpu.matmul %52, %31, %cst_43 {dimension_numbers = #tpu.dot_dimension_numbers<[2], [1], [1], [2], [0, 0, 0, 1, 1, 2], [0], [0]>} : vector<8x8x8xf32>, vector<8x8x4xf32>, vector<8x8x4xf32> -> vector<8x8x4xf32>
    "tpu.trace_stop"() : () -> ()
    "tpu.trace_start"() <{level = 10 : i32, message = "htd,hde->hte"}> : () -> ()
    %cst_44 = arith.constant dense<0.000000e+00> : vector<8x8x32xf32>
    %54 = tpu.matmul %53, %12, %cst_44 {dimension_numbers = #tpu.dot_dimension_numbers<[2], [1], [1], [2], [0, 0, 0, 1, 1, 2], [0], [0]>} : vector<8x8x4xf32>, vector<8x4x32xf32>, vector<8x8x32xf32> -> vector<8x8x32xf32>
    "tpu.trace_stop"() : () -> ()
    %cst_45 = arith.constant dense<0.000000e+00> : vector<8x32xf32>
    %55 = vector.multi_reduction <add>, %54, %cst_45 [0] : vector<8x8x32xf32> to vector<8x32xf32>
    %56 = vector.broadcast %13 : vector<1x32xf32> to vector<8x32xf32>
    %57 = arith.addf %55, %56 : vector<8x32xf32>
    %58 = arith.addf %1, %57 : vector<8x32xf32>
    %cst_46 = arith.constant dense<0.000000e+00> : vector<8xf32>
    %59 = vector.multi_reduction <add>, %58, %cst_46 [1] : vector<8x32xf32> to vector<8xf32>
    %60 = vector.shape_cast %59 : vector<8xf32> to vector<8x1xf32>
    %cst_47 = arith.constant 3.200000e+01 : f32
    %61 = vector.broadcast %cst_47 : f32 to vector<8x1xf32>
    %62 = arith.divf %60, %61 : vector<8x1xf32>
    %63 = vector.broadcast %62 : vector<8x1xf32> to vector<8x32xf32>
    %64 = arith.subf %58, %63 : vector<8x32xf32>
    %65 = arith.mulf %64, %64 : vector<8x32xf32>
    %cst_48 = arith.constant dense<0.000000e+00> : vector<8xf32>
    %66 = vector.multi_reduction <add>, %65, %cst_48 [1] : vector<8x32xf32> to vector<8xf32>
    %67 = vector.shape_cast %66 : vector<8xf32> to vector<8x1xf32>
    %cst_49 = arith.constant 3.200000e+01 : f32
    %68 = vector.broadcast %cst_49 : f32 to vector<8x1xf32>
    %69 = arith.divf %67, %68 : vector<8x1xf32>
    %cst_50 = arith.constant 9.99999974E-6 : f32
    %70 = vector.broadcast %cst_50 : f32 to vector<8x1xf32>
    %71 = arith.addf %69, %70 : vector<8x1xf32>
    %72 = math.rsqrt %71 : vector<8x1xf32>
    %73 = vector.broadcast %72 : vector<8x1xf32> to vector<8x32xf32>
    %74 = arith.mulf %64, %73 : vector<8x32xf32>
    %75 = vector.broadcast %4 : vector<1x32xf32> to vector<8x32xf32>
    %76 = arith.mulf %74, %75 : vector<8x32xf32>
    %77 = vector.broadcast %5 : vector<1x32xf32> to vector<8x32xf32>
    %78 = arith.addf %76, %77 : vector<8x32xf32>
    %79 = vector.shape_cast %78 : vector<8x32xf32> to vector<1x8x32xf32>
    %80 = vector.shape_cast %79 : vector<1x8x32xf32> to vector<1x8x32xf32>
    %81 = vector.broadcast %80 : vector<1x8x32xf32> to vector<8x8x32xf32>
    "tpu.trace_start"() <{level = 10 : i32, message = "hnd,hdk->hnk"}> : () -> ()
    %cst_51 = arith.constant dense<0.000000e+00> : vector<8x8x4xf32>
    %82 = tpu.matmul %81, %6, %cst_51 {dimension_numbers = #tpu.dot_dimension_numbers<[2], [1], [1], [2], [0, 0, 0, 1, 1, 2], [0], [0]>} : vector<8x8x32xf32>, vector<8x32x4xf32>, vector<8x8x4xf32> -> vector<8x8x4xf32>
    "tpu.trace_stop"() : () -> ()
    %83 = vector.broadcast %7 : vector<8x1x4xf32> to vector<8x8x4xf32>
    %84 = arith.addf %82, %83 : vector<8x8x4xf32>
    %85 = vector.shape_cast %3 : vector<8x32xf32> to vector<1x8x32xf32>
    %86 = vector.shape_cast %85 : vector<1x8x32xf32> to vector<1x8x32xf32>
    %87 = vector.broadcast %86 : vector<1x8x32xf32> to vector<8x8x32xf32>
    "tpu.trace_start"() <{level = 10 : i32, message = "hnd,hdk->hnk"}> : () -> ()
    %cst_52 = arith.constant dense<0.000000e+00> : vector<8x8x4xf32>
    %88 = tpu.matmul %87, %8, %cst_52 {dimension_numbers = #tpu.dot_dimension_numbers<[2], [1], [1], [2], [0, 0, 0, 1, 1, 2], [0], [0]>} : vector<8x8x32xf32>, vector<8x32x4xf32>, vector<8x8x4xf32> -> vector<8x8x4xf32>
    "tpu.trace_stop"() : () -> ()
    %89 = vector.broadcast %9 : vector<8x1x4xf32> to vector<8x8x4xf32>
    %90 = arith.addf %88, %89 : vector<8x8x4xf32>
    %91 = vector.shape_cast %3 : vector<8x32xf32> to vector<1x8x32xf32>
    %92 = vector.shape_cast %91 : vector<1x8x32xf32> to vector<1x8x32xf32>
    %93 = vector.broadcast %92 : vector<1x8x32xf32> to vector<8x8x32xf32>
    "tpu.trace_start"() <{level = 10 : i32, message = "hnd,hdk->hnk"}> : () -> ()
    %cst_53 = arith.constant dense<0.000000e+00> : vector<8x8x4xf32>
    %94 = tpu.matmul %93, %10, %cst_53 {dimension_numbers = #tpu.dot_dimension_numbers<[2], [1], [1], [2], [0, 0, 0, 1, 1, 2], [0], [0]>} : vector<8x8x32xf32>, vector<8x32x4xf32>, vector<8x8x4xf32> -> vector<8x8x4xf32>
    "tpu.trace_stop"() : () -> ()
    %95 = vector.broadcast %11 : vector<8x1x4xf32> to vector<8x8x4xf32>
    %96 = arith.addf %94, %95 : vector<8x8x4xf32>
    "tpu.trace_start"() <{level = 10 : i32, message = "htd,hsd->hts"}> : () -> ()
    %cst_54 = arith.constant dense<0.000000e+00> : vector<8x8x8xf32>
    %97 = tpu.matmul %84, %90, %cst_54 {dimension_numbers = #tpu.dot_dimension_numbers<[2], [2], [1], [1], [0, 0, 0, 1, 1, 1], [0], [0]>} : vector<8x8x4xf32>, vector<8x8x4xf32>, vector<8x8x8xf32> -> vector<8x8x8xf32>
    "tpu.trace_stop"() : () -> ()
    %cst_55 = arith.constant 5.000000e-01 : f32
    %98 = vector.broadcast %cst_55 : f32 to vector<8x8x8xf32>
    %99 = arith.mulf %97, %98 : vector<8x8x8xf32>
    %cst_56 = arith.constant dense<0xFF800000> : vector<8x8xf32>
    %100 = vector.multi_reduction <maximumf>, %99, %cst_56 [2] : vector<8x8x8xf32> to vector<8x8xf32>
    %101 = vector.shape_cast %100 : vector<8x8xf32> to vector<8x8x1xf32>
    %102 = vector.broadcast %101 : vector<8x8x1xf32> to vector<8x8x8xf32>
    %103 = arith.subf %99, %102 : vector<8x8x8xf32>
    %104 = math.exp %103 : vector<8x8x8xf32>
    %cst_57 = arith.constant dense<0.000000e+00> : vector<8x8xf32>
    %105 = vector.multi_reduction <add>, %104, %cst_57 [2] : vector<8x8x8xf32> to vector<8x8xf32>
    %106 = vector.shape_cast %105 : vector<8x8xf32> to vector<8x8x1xf32>
    %107 = vector.broadcast %106 : vector<8x8x1xf32> to vector<8x8x8xf32>
    %108 = arith.divf %104, %107 : vector<8x8x8xf32>
    "tpu.trace_start"() <{level = 10 : i32, message = "hts,hsd->htd"}> : () -> ()
    %cst_58 = arith.constant dense<0.000000e+00> : vector<8x8x4xf32>
    %109 = tpu.matmul %108, %96, %cst_58 {dimension_numbers = #tpu.dot_dimension_numbers<[2], [1], [1], [2], [0, 0, 0, 1, 1, 2], [0], [0]>} : vector<8x8x8xf32>, vector<8x8x4xf32>, vector<8x8x4xf32> -> vector<8x8x4xf32>
    "tpu.trace_stop"() : () -> ()
    "tpu.trace_start"() <{level = 10 : i32, message = "htd,hde->hte"}> : () -> ()
    %cst_59 = arith.constant dense<0.000000e+00> : vector<8x8x32xf32>
    %110 = tpu.matmul %109, %12, %cst_59 {dimension_numbers = #tpu.dot_dimension_numbers<[2], [1], [1], [2], [0, 0, 0, 1, 1, 2], [0], [0]>} : vector<8x8x4xf32>, vector<8x4x32xf32>, vector<8x8x32xf32> -> vector<8x8x32xf32>
    "tpu.trace_stop"() : () -> ()
    %cst_60 = arith.constant dense<0.000000e+00> : vector<8x32xf32>
    %111 = vector.multi_reduction <add>, %110, %cst_60 [0] : vector<8x8x32xf32> to vector<8x32xf32>
    %112 = vector.broadcast %13 : vector<1x32xf32> to vector<8x32xf32>
    %113 = arith.addf %111, %112 : vector<8x32xf32>
    %114 = arith.addf %113, %113 : vector<8x32xf32>
    %cst_61 = arith.constant dense<0.000000e+00> : vector<8xf32>
    %115 = vector.multi_reduction <add>, %114, %cst_61 [1] : vector<8x32xf32> to vector<8xf32>
    %116 = vector.shape_cast %115 : vector<8xf32> to vector<8x1xf32>
    %cst_62 = arith.constant 3.200000e+01 : f32
    %117 = vector.broadcast %cst_62 : f32 to vector<8x1xf32>
    %118 = arith.divf %116, %117 : vector<8x1xf32>
    %119 = vector.broadcast %118 : vector<8x1xf32> to vector<8x32xf32>
    %120 = arith.subf %114, %119 : vector<8x32xf32>
    %121 = arith.mulf %120, %120 : vector<8x32xf32>
    %cst_63 = arith.constant dense<0.000000e+00> : vector<8xf32>
    %122 = vector.multi_reduction <add>, %121, %cst_63 [1] : vector<8x32xf32> to vector<8xf32>
    %123 = vector.shape_cast %122 : vector<8xf32> to vector<8x1xf32>
    %cst_64 = arith.constant 3.200000e+01 : f32
    %124 = vector.broadcast %cst_64 : f32 to vector<8x1xf32>
    %125 = arith.divf %123, %124 : vector<8x1xf32>
    %cst_65 = arith.constant 9.99999974E-6 : f32
    %126 = vector.broadcast %cst_65 : f32 to vector<8x1xf32>
    %127 = arith.addf %125, %126 : vector<8x1xf32>
    %128 = math.rsqrt %127 : vector<8x1xf32>
    %129 = vector.broadcast %128 : vector<8x1xf32> to vector<8x32xf32>
    %130 = arith.mulf %120, %129 : vector<8x32xf32>
    %131 = vector.broadcast %4 : vector<1x32xf32> to vector<8x32xf32>
    %132 = arith.mulf %130, %131 : vector<8x32xf32>
    %133 = vector.broadcast %5 : vector<1x32xf32> to vector<8x32xf32>
    %134 = arith.addf %132, %133 : vector<8x32xf32>
    %c0_66 = arith.constant 0 : index
    %c0_67 = arith.constant 0 : index
    %135 = vector.load %arg14[%c0_66, %c0_67] : memref<32x128xf32, #tpu.memory_space<vmem>>, vector<32x128xf32>
    "tpu.trace_start"() <{level = 10 : i32, message = "td,df->tf"}> : () -> ()
    %cst_68 = arith.constant dense<0.000000e+00> : vector<8x128xf32>
    %136 = tpu.matmul %134, %135, %cst_68 {dimension_numbers = #tpu.dot_dimension_numbers<[1], [0], [0], [1], [0, 0, 1, 1], [], []>} : vector<8x32xf32>, vector<32x128xf32>, vector<8x128xf32> -> vector<8x128xf32>
    "tpu.trace_stop"() : () -> ()
    %c0_69 = arith.constant 0 : index
    %c0_70 = arith.constant 0 : index
    %137 = vector.load %arg15[%c0_69, %c0_70] : memref<1x128xf32, #tpu.memory_space<vmem>>, vector<1x128xf32>
    %138 = vector.broadcast %137 : vector<1x128xf32> to vector<8x128xf32>
    %139 = arith.addf %136, %138 : vector<8x128xf32>
    %cst_71 = arith.constant 5.000000e-01 : f32
    %140 = vector.broadcast %cst_71 : f32 to vector<8x128xf32>
    %141 = arith.mulf %140, %139 : vector<8x128xf32>
    %cst_72 = arith.constant 0.707106769 : f32
    %142 = vector.broadcast %cst_72 : f32 to vector<8x128xf32>
    %143 = arith.mulf %139, %142 : vector<8x128xf32>
    %144 = math.erf %143 : vector<8x128xf32>
    %cst_73 = arith.constant 1.000000e+00 : f32
    %145 = vector.broadcast %cst_73 : f32 to vector<8x128xf32>
    %146 = arith.addf %145, %144 : vector<8x128xf32>
    %147 = arith.mulf %141, %146 : vector<8x128xf32>
    %c0_74 = arith.constant 0 : index
    %c0_75 = arith.constant 0 : index
    %148 = vector.load %arg16[%c0_74, %c0_75] : memref<128x32xf32, #tpu.memory_space<vmem>>, vector<128x32xf32>
    "tpu.trace_start"() <{level = 10 : i32, message = "tf,fd->td"}> : () -> ()
    %cst_76 = arith.constant dense<0.000000e+00> : vector<8x32xf32>
    %149 = tpu.matmul %147, %148, %cst_76 {dimension_numbers = #tpu.dot_dimension_numbers<[1], [0], [0], [1], [0, 0, 1, 1], [], []>} : vector<8x128xf32>, vector<128x32xf32>, vector<8x32xf32> -> vector<8x32xf32>
    "tpu.trace_stop"() : () -> ()
    %c0_77 = arith.constant 0 : index
    %c0_78 = arith.constant 0 : index
    %150 = vector.load %arg17[%c0_77, %c0_78] : memref<1x32xf32, #tpu.memory_space<vmem>>, vector<1x32xf32>
    %151 = vector.broadcast %150 : vector<1x32xf32> to vector<8x32xf32>
    %152 = arith.addf %149, %151 : vector<8x32xf32>
    %153 = arith.addf %134, %152 : vector<8x32xf32>
    %cst_79 = arith.constant dense<0.000000e+00> : vector<8xf32>
    %154 = vector.multi_reduction <add>, %153, %cst_79 [1] : vector<8x32xf32> to vector<8xf32>
    %155 = vector.shape_cast %154 : vector<8xf32> to vector<8x1xf32>
    %cst_80 = arith.constant 3.200000e+01 : f32
    %156 = vector.broadcast %cst_80 : f32 to vector<8x1xf32>
    %157 = arith.divf %155, %156 : vector<8x1xf32>
    %158 = vector.broadcast %157 : vector<8x1xf32> to vector<8x32xf32>
    %159 = arith.subf %153, %158 : vector<8x32xf32>
    %160 = arith.mulf %159, %159 : vector<8x32xf32>
    %cst_81 = arith.constant dense<0.000000e+00> : vector<8xf32>
    %161 = vector.multi_reduction <add>, %160, %cst_81 [1] : vector<8x32xf32> to vector<8xf32>
    %162 = vector.shape_cast %161 : vector<8xf32> to vector<8x1xf32>
    %cst_82 = arith.constant 3.200000e+01 : f32
    %163 = vector.broadcast %cst_82 : f32 to vector<8x1xf32>
    %164 = arith.divf %162, %163 : vector<8x1xf32>
    %cst_83 = arith.constant 9.99999974E-6 : f32
    %165 = vector.broadcast %cst_83 : f32 to vector<8x1xf32>
    %166 = arith.addf %164, %165 : vector<8x1xf32>
    %167 = math.rsqrt %166 : vector<8x1xf32>
    %168 = vector.broadcast %167 : vector<8x1xf32> to vector<8x32xf32>
    %169 = arith.mulf %159, %168 : vector<8x32xf32>
    %170 = vector.broadcast %4 : vector<1x32xf32> to vector<8x32xf32>
    %171 = arith.mulf %169, %170 : vector<8x32xf32>
    %172 = vector.broadcast %5 : vector<1x32xf32> to vector<8x32xf32>
    %173 = arith.addf %171, %172 : vector<8x32xf32>
    %c0_84 = arith.constant 0 : index
    %c0_85 = arith.constant 0 : index
    %174 = vector.load %arg18[%c0_84, %c0_85] : memref<32x16xf32, #tpu.memory_space<vmem>>, vector<32x16xf32>
    "tpu.trace_start"() <{level = 10 : i32, message = "td,dv->tv"}> : () -> ()
    %cst_86 = arith.constant dense<0.000000e+00> : vector<8x16xf32>
    %175 = tpu.matmul %173, %174, %cst_86 {dimension_numbers = #tpu.dot_dimension_numbers<[1], [0], [0], [1], [0, 0, 1, 1], [], []>} : vector<8x32xf32>, vector<32x16xf32>, vector<8x16xf32> -> vector<8x16xf32>
    "tpu.trace_stop"() : () -> ()
    %c0_87 = arith.constant 0 : index
    %c0_88 = arith.constant 0 : index
    %176 = vector.load %arg19[%c0_87, %c0_88] : memref<1x16xf32, #tpu.memory_space<vmem>>, vector<1x16xf32>
    %177 = vector.broadcast %176 : vector<1x16xf32> to vector<8x16xf32>
    %178 = arith.addf %175, %177 : vector<8x16xf32>
    %cst_89 = arith.constant dense<0xFF800000> : vector<8xf32>
    %179 = vector.multi_reduction <maximumf>, %178, %cst_89 [1] : vector<8x16xf32> to vector<8xf32>
    %180 = vector.shape_cast %179 : vector<8xf32> to vector<8x1xf32>
    %181 = vector.broadcast %180 : vector<8x1xf32> to vector<8x16xf32>
    %182 = arith.subf %178, %181 : vector<8x16xf32>
    %183 = math.exp %182 : vector<8x16xf32>
    %cst_90 = arith.constant dense<0.000000e+00> : vector<8xf32>
    %184 = vector.multi_reduction <add>, %183, %cst_90 [1] : vector<8x16xf32> to vector<8xf32>
    %185 = vector.shape_cast %184 : vector<8xf32> to vector<8x1xf32>
    %186 = vector.broadcast %185 : vector<8x1xf32> to vector<8x16xf32>
    %187 = arith.divf %183, %186 : vector<8x16xf32>
    %c0_91 = arith.constant 0 : index
    %c0_92 = arith.constant 0 : index
    %c0_93 = arith.constant 0 : index
    %188 = vector.load %arg20[%c0_91, %c0_92, %c0_93] : memref<1x8x16xf32, #tpu.memory_space<vmem>>, vector<1x8x16xf32>
    %189 = vector.shape_cast %188 : vector<1x8x16xf32> to vector<8x16xf32>
    %190 = vector.shape_cast %187 : vector<8x16xf32> to vector<1x8x16xf32>
    tpu.vector_store %arg20[%c0_91, %c0_92, %c0_93], %190 {strides = array<i32>} : memref<1x8x16xf32, #tpu.memory_space<vmem>>, vector<1x8x16xf32>,
    return
  }
  func.func @transform_0(%arg0: i32) -> (i32, i32, i32) {
    %c0_i32 = arith.constant 0 : i32
    %c0_i32_0 = arith.constant 0 : i32
    %c0_i32_1 = arith.constant 0 : i32
    return %arg0, %c0_i32, %c0_i32_0 : i32, i32, i32
  }
  func.func @transform_1(%arg0: i32) -> (i32, i32, i32) {
    %c0_i32 = arith.constant 0 : i32
    %c0_i32_0 = arith.constant 0 : i32
    %c0_i32_1 = arith.constant 0 : i32
    return %arg0, %c0_i32, %c0_i32_0 : i32, i32, i32
  }
  func.func @transform_2(%arg0: i32) -> (i32, i32, i32) {
    %c0_i32 = arith.constant 0 : i32
    %c0_i32_0 = arith.constant 0 : i32
    %c0_i32_1 = arith.constant 0 : i32
    %c0_i32_2 = arith.constant 0 : i32
    return %c0_i32, %c0_i32_0, %c0_i32_1 : i32, i32, i32
  }
  func.func @transform_3(%arg0: i32) -> (i32, i32, i32) {
    %c0_i32 = arith.constant 0 : i32
    %c0_i32_0 = arith.constant 0 : i32
    %c0_i32_1 = arith.constant 0 : i32
    %c0_i32_2 = arith.constant 0 : i32
    return %c0_i32, %c0_i32_0, %c0_i32_1 : i32, i32, i32
  }
  func.func @transform_4(%arg0: i32) -> (i32, i32, i32) {
    %c0_i32 = arith.constant 0 : i32
    %c0_i32_0 = arith.constant 0 : i32
    %c0_i32_1 = arith.constant 0 : i32
    %c0_i32_2 = arith.constant 0 : i32
    return %c0_i32, %c0_i32_0, %c0_i32_1 : i32, i32, i32
  }
  func.func @transform_5(%arg0: i32) -> (i32, i32, i32) {
    %c0_i32 = arith.constant 0 : i32
    %c0_i32_0 = arith.constant 0 : i32
    %c0_i32_1 = arith.constant 0 : i32
    %c0_i32_2 = arith.constant 0 : i32
    return %c0_i32, %c0_i32_0, %c0_i32_1 : i32, i32, i32
  }
  func.func @transform_6(%arg0: i32) -> (i32, i32, i32) {
    %c0_i32 = arith.constant 0 : i32
    %c0_i32_0 = arith.constant 0 : i32
    %c0_i32_1 = arith.constant 0 : i32
    %c0_i32_2 = arith.constant 0 : i32
    return %c0_i32, %c0_i32_0, %c0_i32_1 : i32, i32, i32
  }
  func.func @transform_7(%arg0: i32) -> (i32, i32, i32) {
    %c0_i32 = arith.constant 0 : i32
    %c0_i32_0 = arith.constant 0 : i32
    %c0_i32_1 = arith.constant 0 : i32
    %c0_i32_2 = arith.constant 0 : i32
    return %c0_i32, %c0_i32_0, %c0_i32_1 : i32, i32, i32
  }
  func.func @transform_8(%arg0: i32) -> (i32, i32, i32) {
    %c0_i32 = arith.constant 0 : i32
    %c0_i32_0 = arith.constant 0 : i32
    %c0_i32_1 = arith.constant 0 : i32
    %c0_i32_2 = arith.constant 0 : i32
    return %c0_i32, %c0_i32_0, %c0_i32_1 : i32, i32, i32
  }
  func.func @transform_9(%arg0: i32) -> (i32, i32, i32) {
    %c0_i32 = arith.constant 0 : i32
    %c0_i32_0 = arith.constant 0 : i32
    %c0_i32_1 = arith.constant 0 : i32
    %c0_i32_2 = arith.constant 0 : i32
    return %c0_i32, %c0_i32_0, %c0_i32_1 : i32, i32, i32
  }
  func.func @transform_10(%arg0: i32) -> (i32, i32) {
    %c0_i32 = arith.constant 0 : i32
    %c0_i32_0 = arith.constant 0 : i32
    %c0_i32_1 = arith.constant 0 : i32
    return %c0_i32, %c0_i32_0 : i32, i32
  }
  func.func @transform_11(%arg0: i32) -> (i32, i32) {
    %c0_i32 = arith.constant 0 : i32
    %c0_i32_0 = arith.constant 0 : i32
    %c0_i32_1 = arith.constant 0 : i32
    return %c0_i32, %c0_i32_0 : i32, i32
  }
  func.func @transform_12(%arg0: i32) -> (i32, i32) {
    %c0_i32 = arith.constant 0 : i32
    %c0_i32_0 = arith.constant 0 : i32
    %c0_i32_1 = arith.constant 0 : i32
    return %c0_i32, %c0_i32_0 : i32, i32
  }
  func.func @transform_13(%arg0: i32) -> (i32, i32) {
    %c0_i32 = arith.constant 0 : i32
    %c0_i32_0 = arith.constant 0 : i32
    %c0_i32_1 = arith.constant 0 : i32
    return %c0_i32, %c0_i32_0 : i32, i32
  }
  func.func @transform_14(%arg0: i32) -> (i32, i32) {
    %c0_i32 = arith.constant 0 : i32
    %c0_i32_0 = arith.constant 0 : i32
    %c0_i32_1 = arith.constant 0 : i32
    return %c0_i32, %c0_i32_0 : i32, i32
  }
  func.func @transform_15(%arg0: i32) -> (i32, i32) {
    %c0_i32 = arith.constant 0 : i32
    %c0_i32_0 = arith.constant 0 : i32
    %c0_i32_1 = arith.constant 0 : i32
    return %c0_i32, %c0_i32_0 : i32, i32
  }
  func.func @transform_16(%arg0: i32) -> (i32, i32) {
    %c0_i32 = arith.constant 0 : i32
    %c0_i32_0 = arith.constant 0 : i32
    %c0_i32_1 = arith.constant 0 : i32
    return %c0_i32, %c0_i32_0 : i32, i32
  }
  func.func @transform_17(%arg0: i32) -> (i32, i32) {
    %c0_i32 = arith.constant 0 : i32
    %c0_i32_0 = arith.constant 0 : i32
    %c0_i32_1 = arith.constant 0 : i32
    return %c0_i32, %c0_i32_0 : i32, i32
  }
  func.func @transform_18(%arg0: i32) -> (i32, i32) {
    %c0_i32 = arith.constant 0 : i32
    %c0_i32_0 = arith.constant 0 : i32
    %c0_i32_1 = arith.constant 0 : i32
    return %c0_i32, %c0_i32_0 : i32, i32
  }
  func.func @transform_19(%arg0: i32) -> (i32, i32, i32) {
    %c0_i32 = arith.constant 0 : i32
    %c0_i32_0 = arith.constant 0 : i32
    %c0_i32_1 = arith.constant 0 : i32
    return %arg0, %c0_i32, %c0_i32_0 : i32, i32, i32
  }
}

</mosaic_0001>

<bundles_post_ra>
// kernel: tpu_custom_call.1
= control target key start
LH: loop header
LB: loop body
LE: loop exit
PB: predicated region body
PF: predicated region fallthrough
CT: control target
= control target key end

     0   :  { %s12078_s0 = inlined_call_operand.vmem [shape: f32[2,8,32], index: 0, kind: input, shape index: {}]   ;;  %s12079_s1 = inlined_call_operand.vmem [shape: f32[2,8,32], index: 1, kind: input, shape index: {}]   ;;  %s12080_s2 = inlined_call_operand.vmem [shape: f32[1,8,8], index: 2, kind: input, shape index: {}]   ;;  %s12081_s3 = inlined_call_operand.vmem [shape: f32[8,32,4], index: 3, kind: input, shape index: {}]   ;;  %s12082_s4 = inlined_call_operand.vmem [shape: f32[8,1,4], index: 4, kind: input, shape index: {}]   ;;  %s12083_s5 = inlined_call_operand.vmem [shape: f32[8,32,4], index: 5, kind: input, shape index: {}]   ;;  %s12084_s6 = inlined_call_operand.vmem [shape: f32[8,1,4], index: 6, kind: input, shape index: {}]   ;;  %s12085_s7 = inlined_call_operand.vmem [shape: f32[8,32,4], index: 7, kind: input, shape index: {}]   ;;  %s12086_s8 = inlined_call_operand.vmem [shape: f32[8,1,4], index: 8, kind: input, shape index: {}]   ;;  %s12087_s9 = inlined_call_operand.vmem [shape: f32[8,4,32], index: 9, kind: input, shape index: {}]   ;;  %s12088_s10 = inlined_call_operand.vmem [shape: f32[1,32], index: 10, kind: input, shape index: {}]   ;;  %s12089_s11 = inlined_call_operand.vmem [shape: f32[1,32], index: 11, kind: input, shape index: {}]   ;;  %s12090_s12 = inlined_call_operand.vmem [shape: f32[1,32], index: 12, kind: input, shape index: {}]   ;;  %s12091_s13 = inlined_call_operand.vmem [shape: f32[32,128], index: 13, kind: input, shape index: {}]   ;;  %s12092_s14 = inlined_call_operand.vmem [shape: f32[1,128], index: 14, kind: input, shape index: {}]   ;;  %s12093_s15 = inlined_call_operand.vmem [shape: f32[128,32], index: 15, kind: input, shape index: {}]   ;;  %s12094_s16 = inlined_call_operand.vmem [shape: f32[1,32], index: 16, kind: input, shape index: {}]   ;;  %s12095_s17 = inlined_call_operand.vmem [shape: f32[32,16], index: 17, kind: input, shape index: {}]   ;;  %s12096_s18 = inlined_call_operand.vmem [shape: f32[1,16], index: 18, kind: input, shape index: {}]   ;;  %s12097_s19 = inlined_call_operand.hbm [shape: f32[2,8,16], index: 19, kind: output, shape index: {}]  }
   0x1   :  { %12126 = sst [smem:[#allocation26_spill]] %s12078_s0 }
   0x2   :  { %12127 = sst [smem:[#allocation27_spill]] %s12079_s1 }
   0x3   :  { %12128 = sst [smem:[#allocation28_spill]] %s12080_s2 }
   0x4   :  { %12129 = sst [smem:[#allocation29_spill]] %s12081_s3 }
   0x5   :  { %12130 = sst [smem:[#allocation30_spill]] %s12097_s19 }
   0x6   :  { %24 = vsyncpa [#allocation3], 0 }
   0x7   :  { %26 = vsyncpa [#allocation3 + $0x1], 0  ;;  %s10512_s0 = smov 0   ;;  %s10514_s30 = smov 0  }
   0x8   :  { %s10516_s20 = smov 0   ;;  %s10518_s21 = smov 0  }
   0x9 LB: > { %12131 = sst [smem:[#allocation5_spill]] %s10394_s0  ;;  %s10533_s1 = sadd.s32 4294967295, %s10406_s21   ;;  %s10406_s21 = sphi %s10518_s21, %s12180_s21   ;;  %s10402_s20 = sphi %s10516_s20, %s12182_s20   ;;  %s10398_s30 = sphi %s10514_s30, %s12184_s30   ;;  %s10394_s0 = sphi %s10512_s0, %s12183_s0  }
   0xa   : > { %12132 = sst [smem:[#allocation6_spill]] %s10402_s20  ;;  %s8508_s22 = sadd.s32 4294967294, %s10406_s21  }
   0xb   : > { %12133 = sst [smem:[#allocation7_spill]] %s10406_s21  ;;  %s10537_s2 = sadd.s32 1, %s10406_s21  }
   0xc   : > { %12134 = sst [smem:[#allocation8_spill]] %s10537_s2  ;;  %s448_s23 = sadd.s32 1, %s10402_s20 }
   0xd   : > { %s445_s24 = ssub.s32 %s10406_s21, %s10537_s2  ;;  %p458_p0 = scmp.ne.s32.totalorder %s10402_s20, %s10398_s30 }
   0xe   : > { %p446_p1 = scmp.eq.s32.totalorder %s445_s24, 0  ;;  %p459_p2 = scmp.eq.s32.totalorder %s10533_s1, 1 }
   0xf   : > { %p464_p3 = scmp.ne.s32.totalorder %s10398_s30, %s10394_s0  ;;  %p465_p4 = scmp.eq.s32.totalorder %s8508_s22, 1 }
  0x10   : > { %s10548_s25 = scalar_select %p446_p1, %s10402_s20, %s448_s23  }
  0x11   : > { %p10550_p5 = por %p459_p2, %p458_p0  ;;  %p10554_p6 = por %p465_p4, %p464_p3 }
  0x12   : > { %12135 = sst [smem:[#allocation9_spill]] %s10548_s25  ;;  %p8511_p7 = scmp.ge.s32.totalorder %s10406_s21, 1 }
  0x13   : > { %s12137_s26 = scalar_select %p10554_p6, 1, 0 }
  0x14   : > { %p548_p8 = scmp.lt.s32.totalorder %s10406_s21, 3 }
  0x15   : > { %12138 = sst [smem:[#allocation10_spill]] %s12137_s26 }
  0x16   : > { %p549_p9 = pnand %p8511_p7, %p548_p8 }
  0x18   : > { %552 = sbr.rel (%p549_p9) target bundleno = 4453 (0x1165), region = 96 }
  0x1f   : > { %s12139_s29 = sld [smem:[#allocation29_spill]]  ;;  %v12107_v3 = vmov 0.0|0.0   ;;  %p607_p10 = scmp.lt.s32.totalorder %s10533_s1, 1  ;;  %vm10409_vm0 = vmmov 0   ;;  %v12109_v11 = vmov 0.0   ;;  %vm796_vm1 = vcmask 261120  }
  0x20   : > { %9867 = vmatprep.subr.bf16.mxu0 %v12107_v3  ;;  %9885 = vmatprep.subr.bf16.mxu1 %v12107_v3  ;;  %s12140_s0 = sld [smem:[#allocation26_spill]]  ;;  %v663_v41 = vld [vmem:[%s12083_s5 + $0x20] sm:$0xff]  ;;  %v664_v42 = vld [vmem:[%s12083_s5 + $0x28] sm:$0xff]  ;;  %v665_v47 = vld [vmem:[%s12083_s5 + $0x30] sm:$0xff]  ;;  %vm2577_vm2 = vcmask 31744   ;;  %vm3205_vm4 = vcmask 64512  }
  0x21   : > { %9050 = vmatprep.mubr.msk.f32.mxu0 %vm10409_vm0, %v12109_v11  ;;  %9083 = vmatprep.mubr.msk.f32.mxu1 %vm10409_vm0, %v12109_v11  ;;  %s10599_s20 = scalar_select %p607_p10, %s10533_s1, 1  ;;  %v10730_v44 = vpack.c.bf16 %v664_v42, %v663_v41  ;;  %v666_v48 = vld [vmem:[%s12083_s5 + $0x38] sm:$0xff]  ;;  %v671_v53 = vld [vmem:[%s12083_s5 + $0x60] sm:$0xff]  ;;  %v672_v54 = vld [vmem:[%s12083_s5 + $0x68] sm:$0xff]  ;;  %vm3881_vm5 = vcmask 1043456   ;;  %vm8410_vm6 = vcmask 130048  }
  0x22   : > { %v10754_v50 = vpack.c.bf16 %v666_v48, %v665_v47  ;;  %v10778_v56 = vpack.c.bf16 %v672_v54, %v671_v53  ;;  %v673_v59 = vld [vmem:[%s12083_s5 + $0x70] sm:$0xff]  ;;  %v674_v60 = vld [vmem:[%s12083_s5 + $0x78] sm:$0xff]  ;;  %v659_v63 = vld [vmem:[%s12083_s5] sm:$0xff]  ;;  %s12160_s23 = sld [smem:[#allocation27_spill]]  ;;  %s12176_s22 = sld [smem:[#allocation30_spill]] }
  0x23   : > { %s12106_s28 = sshll.u32 %s10599_s20, 3  ;;  %v10802_v62 = vpack.c.bf16 %v674_v60, %v673_v59  ;;  %v704_v41 = vld [vmem:[%s12085_s7 + $0x28] sm:$0xff]  ;;  %v705_v48 = vld [vmem:[%s12085_s7 + $0x30] sm:$0xff]  ;;  %v683_v53 = vld [vmem:[%s12083_s5 + $0xc0] sm:$0xff]  ;;  %s12159_s19 = sshll.u32 %s10599_s20, 3 }
  0x24   : > { %v684_v54 = vld [vmem:[%s12083_s5 + $0xc8] sm:$0xff] }
  0x25   : > { %v619_v0 = vld [vmem:[%s12139_s29] sm:$0xff]  ;;  %v620_v1 = vld [vmem:[%s12139_s29 + $0x8] sm:$0xff]  ;;  %v621_v6 = vld [vmem:[%s12139_s29 + $0x10] sm:$0xff]  ;;  %v10966_v60 = vpack.c.bf16 %v684_v54, %v683_v53 }
  0x26   : > { %v631_v2 = vld [vmem:[%s12139_s29 + $0x60] sm:$0xff]  ;;  %v10571_v4 = vpack.c.bf16 %v620_v1, %v619_v0  ;;  %v632_v5 = vld [vmem:[%s12139_s29 + $0x68] sm:$0xff]  ;;  %v622_v7 = vld [vmem:[%s12139_s29 + $0x18] sm:$0xff]  ;;  %s10624_s2 = scalar_lea.vmem %s12140_s0, %s12106_s28  ;;  %s12157_s0 = sld [smem:[#allocation28_spill]] }
  0x27   : > { %v10583_v8 = vpack.c.bf16 %v632_v5, %v631_v2  ;;  %v633_v9 = vld [vmem:[%s12139_s29 + $0x70] sm:$0xff]  ;;  %v634_v10 = vld [vmem:[%s12139_s29 + $0x78] sm:$0xff]  ;;  %v10596_v12 = vpack.c.bf16 %v622_v7, %v621_v6  ;;  %v623_v14 = vld [vmem:[%s12139_s29 + $0x20] sm:$0xff]  ;;  %s8676_s28 = sshll.u32 %s10533_s1, 7  ;;  %s10411_s1 = smov [#allocation2]  }
  0x28   : > { %9869 = vmatpush3.bf16.msra.mxu0 %v10571_v4  ;;  %v10603_v13 = vpack.c.bf16 %v634_v10, %v633_v9  ;;  %v624_v15 = vld [vmem:[%s12139_s29 + $0x28] sm:$0xff]  ;;  %v639_v16 = vld [vmem:[%s12139_s29 + $0xa0] sm:$0xff]  ;;  %v625_v21 = vld [vmem:[%s12139_s29 + $0x30] sm:$0xff]  ;;  %s614_s25 = scalar_lea.vmem %s12160_s23, %s12159_s19  ;;  %s12035_s23 = scalar_lea.hbm %s12176_s22, %s8676_s28 }
  0x29   : > { %9887 = vmatpush3.bf16.msra.mxu1 %v10583_v8  ;;  %9870 = vmatprep.subr.bf16.mxu0 %v12107_v3  ;;  %v640_v17 = vld [vmem:[%s12139_s29 + $0xa8] sm:$0xff]  ;;  %v10628_v18 = vld [vmem:[%s10624_s2] sm:$0xff]  ;;  %v10630_v19 = vpack.c.bf16 %v624_v15, %v623_v14  ;;  %v626_v22 = vld [vmem:[%s12139_s29 + $0x38] sm:$0xff]  ;;  %s10348_s24 = sshll.u32 %s10411_s1, 4  ;;  %s10349_s24 = int_to_ptr.vmem [resolvable:$false] %s10348_s24 }
  0x2a   : > { %9888 = vmatprep.subr.bf16.mxu1 %v12107_v3  ;;  %v10634_v20 = vpack.c.bf16 %v640_v17, %v639_v16  ;;  %v641_v23 = vld [vmem:[%s12139_s29 + $0xb0] sm:$0xff]  ;;  %v642_v24 = vld [vmem:[%s12139_s29 + $0xb8] sm:$0xff]  ;;  %v10654_v25 = vpack.c.bf16 %v626_v22, %v625_v21  ;;  %v627_v27 = vld [vmem:[%s12139_s29 + $0x40] sm:$0xff] }
  0x2b   : > { %v10658_v26 = vpack.c.bf16 %v642_v24, %v641_v23  ;;  %v628_v28 = vld [vmem:[%s12139_s29 + $0x48] sm:$0xff]  ;;  %v647_v29 = vld [vmem:[%s12139_s29 + $0xe0] sm:$0xff]  ;;  %v629_v33 = vld [vmem:[%s12139_s29 + $0x50] sm:$0xff] }
  0x2c   : > { %9872 = vmatpush3.bf16.msra.mxu0 %v10596_v12  ;;  %v648_v30 = vld [vmem:[%s12139_s29 + $0xe8] sm:$0xff]  ;;  %v10678_v31 = vpack.c.bf16 %v628_v28, %v627_v27  ;;  %v630_v34 = vld [vmem:[%s12139_s29 + $0x58] sm:$0xff]  ;;  %v649_v35 = vld [vmem:[%s12139_s29 + $0xf0] sm:$0xff] }
  0x2d   : > { %9890 = vmatpush3.bf16.msra.mxu1 %v10603_v13  ;;  %9873 = vmatprep.subr.bf16.mxu0 %v12107_v3  ;;  %v10682_v32 = vpack.c.bf16 %v648_v30, %v647_v29  ;;  %v650_v36 = vld [vmem:[%s12139_s29 + $0xf8] sm:$0xff]  ;;  %v10702_v37 = vpack.c.bf16 %v630_v34, %v629_v33  ;;  %v635_v39 = vld [vmem:[%s12139_s29 + $0x80] sm:$0xff]  ;;  %v636_v40 = vld [vmem:[%s12139_s29 + $0x88] sm:$0xff] }
  0x2e   : > { %9897 = vmatprep.subr.bf16.mxu1 %v12107_v3  ;;  %v10706_v38 = vpack.c.bf16 %v650_v36, %v649_v35  ;;  %v10726_v43 = vpack.c.bf16 %v636_v40, %v635_v39  ;;  %v637_v45 = vld [vmem:[%s12139_s29 + $0x90] sm:$0xff]  ;;  %v638_v46 = vld [vmem:[%s12139_s29 + $0x98] sm:$0xff]  ;;  %v643_v51 = vld [vmem:[%s12139_s29 + $0xc0] sm:$0xff] }
  0x2f   : > { %9051 = vmatmul.mubr.msk.f32.vlgmr.msra.gmra.mrb[0].mxu0 %vm796_vm1, %v10628_v18  ;;  %v10750_v49 = vpack.c.bf16 %v638_v46, %v637_v45  ;;  %v644_v52 = vld [vmem:[%s12139_s29 + $0xc8] sm:$0xff]  ;;  %v645_v57 = vld [vmem:[%s12139_s29 + $0xd0] sm:$0xff]  ;;  %v646_v58 = vld [vmem:[%s12139_s29 + $0xd8] sm:$0xff] }
  0x30   : > { %9875 = vmatpush3.bf16.msra.mxu0 %v10630_v19  ;;  %9084 = vmatmul.mubr.msk.f32.vlgmr.msra.gmra.mrb[0].mxu1 %vm796_vm1, %v10628_v18  ;;  %v10774_v55 = vpack.c.bf16 %v644_v52, %v643_v51  ;;  %v10798_v61 = vpack.c.bf16 %v646_v58, %v645_v57  ;;  %v660_v0 = vld [vmem:[%s12083_s5 + $0x8] sm:$0xff]  ;;  %v679_v1 = vld [vmem:[%s12083_s5 + $0xa0] sm:$0xff]  ;;  %v661_v7 = vld [vmem:[%s12083_s5 + $0x10] sm:$0xff] }
  0x31   : > { %9899 = vmatpush3.bf16.msra.mxu1 %v10634_v20  ;;  %9876 = vmatprep.subr.bf16.mxu0 %v12107_v3  ;;  %v680_v2 = vld [vmem:[%s12083_s5 + $0xa8] sm:$0xff]  ;;  %v10822_v5 = vpack.c.bf16 %v660_v0, %v659_v63  ;;  %v662_v9 = vld [vmem:[%s12083_s5 + $0x18] sm:$0xff]  ;;  %v681_v10 = vld [vmem:[%s12083_s5 + $0xb0] sm:$0xff] }
  0x32   : > { %9900 = vmatprep.subr.bf16.mxu1 %v12107_v3  ;;  %9061 = vmatprep.mubr.msk.f32.mxu0 %vm10409_vm0, %v12109_v11  ;;  %v10826_v6 = vpack.c.bf16 %v680_v2, %v679_v1  ;;  %v682_v14 = vld [vmem:[%s12083_s5 + $0xb8] sm:$0xff]  ;;  %v10846_v15 = vpack.c.bf16 %v662_v9, %v661_v7  ;;  %v667_v17 = vld [vmem:[%s12083_s5 + $0x40] sm:$0xff]  ;;  %v668_v21 = vld [vmem:[%s12083_s5 + $0x48] sm:$0xff] }
  0x33   : > { %9105 = vmatprep.mubr.msk.f32.mxu1 %vm10409_vm0, %v12109_v11  ;;  %v10850_v16 = vpack.c.bf16 %v682_v14, %v681_v10  ;;  %v687_v22 = vld [vmem:[%s12083_s5 + $0xe0] sm:$0xff]  ;;  %v688_v23 = vld [vmem:[%s12083_s5 + $0xe8] sm:$0xff]  ;;  %v10870_v24 = vpack.c.bf16 %v668_v21, %v667_v17  ;;  %v669_v28 = vld [vmem:[%s12083_s5 + $0x50] sm:$0xff] }
  0x34   : > { %9878 = vmatpush3.bf16.msra.mxu0 %v10654_v25  ;;  %v10874_v27 = vpack.c.bf16 %v688_v23, %v687_v22  ;;  %v670_v29 = vld [vmem:[%s12083_s5 + $0x58] sm:$0xff]  ;;  %v689_v30 = vld [vmem:[%s12083_s5 + $0xf0] sm:$0xff]  ;;  %v675_v36 = vld [vmem:[%s12083_s5 + $0x80] sm:$0xff] }
  0x35   : > { %9902 = vmatpush3.bf16.msra.mxu1 %v10658_v26  ;;  %9879 = vmatprep.subr.bf16.mxu0 %v12107_v3  ;;  %v690_v33 = vld [vmem:[%s12083_s5 + $0xf8] sm:$0xff]  ;;  %v10894_v34 = vpack.c.bf16 %v670_v29, %v669_v28  ;;  %v676_v39 = vld [vmem:[%s12083_s5 + $0x88] sm:$0xff]  ;;  %v703_v40 = vld [vmem:[%s12085_s7 + $0x20] sm:$0xff] }
  0x36   : > { %9909 = vmatprep.subr.bf16.mxu1 %v12107_v3  ;;  %v10898_v35 = vpack.c.bf16 %v690_v33, %v689_v30  ;;  %v10918_v42 = vpack.c.bf16 %v676_v39, %v675_v36  ;;  %v677_v45 = vld [vmem:[%s12083_s5 + $0x90] sm:$0xff]  ;;  %v678_v46 = vld [vmem:[%s12083_s5 + $0x98] sm:$0xff]  ;;  %v10929_v47 = vpack.c.bf16 %v704_v41, %v703_v40  ;;  %v711_v58 = vld [vmem:[%s12085_s7 + $0x60] sm:$0xff] }
  0x37   : > { %9062 = vmatmul.mubr.msk.f32.vlgmr.msra.gmra.mrb[2].mxu0 %vm796_vm1, %v10628_v18  ;;  %v706_v51 = vld [vmem:[%s12085_s7 + $0x38] sm:$0xff]  ;;  %v10942_v52 = vpack.c.bf16 %v678_v46, %v677_v45  ;;  %v712_v59 = vld [vmem:[%s12085_s7 + $0x68] sm:$0xff]  ;;  %v685_v63 = vld [vmem:[%s12083_s5 + $0xd0] sm:$0xff] }
  0x38   : > { %9881 = vmatpush3.bf16.msra.mxu0 %v10678_v31  ;;  %9106 = vmatmul.mubr.msk.f32.vlgmr.msra.gmra.mrb[2].mxu1 %vm796_vm1, %v10628_v18  ;;  %12141 = vst [vmem:[#allocation11_spill] sm:$0xff] %v10929_v47  ;;  %v10954_v57 = vpack.c.bf16 %v706_v51, %v705_v48  ;;  %v686_v0 = vld [vmem:[%s12083_s5 + $0xd8] sm:$0xff]  ;;  %v10976_v1 = vpack.c.bf16 %v712_v59, %v711_v58  ;;  %v713_v7 = vld [vmem:[%s12085_s7 + $0x70] sm:$0xff]  ;;  %v699_v14 = vld [vmem:[%s12085_s7] sm:$0xff] }
  0x39   : > { %9911 = vmatpush3.bf16.msra.mxu1 %v10682_v32  ;;  %9882 = vmatprep.subr.bf16.mxu0 %v12107_v3  ;;  %v10982_v2 = vpack.c.bf16 %v686_v0, %v685_v63  ;;  %v714_v9 = vld [vmem:[%s12085_s7 + $0x78] sm:$0xff]  ;;  %v700_v17 = vld [vmem:[%s12085_s7 + $0x8] sm:$0xff]  ;;  %v719_v21 = vld [vmem:[%s12085_s7 + $0xa0] sm:$0xff] }
  0x3a   : > { %9912 = vmatprep.subr.bf16.mxu1 %v12107_v3  ;;  %9072 = vmatprep.mubr.msk.f32.mxu0 %vm10409_vm0, %v12109_v11  ;;  %12142 = vst [vmem:[#allocation12_spill] sm:$0xff] %v10954_v57  ;;  %12143 = vst [vmem:[#allocation13_spill] sm:$0xff] %v10976_v1  ;;  %v11005_v10 = vpack.c.bf16 %v714_v9, %v713_v7  ;;  %v11016_v22 = vpack.c.bf16 %v700_v17, %v699_v14  ;;  %v720_v23 = vld [vmem:[%s12085_s7 + $0xa8] sm:$0xff]  ;;  %v701_v29 = vld [vmem:[%s12085_s7 + $0x10] sm:$0xff] }
  0x3b   : > { %9127 = vmatprep.mubr.msk.f32.mxu1 %vm10409_vm0, %v12109_v11  ;;  %v11022_v28 = vpack.c.bf16 %v720_v23, %v719_v21  ;;  %v702_v30 = vld [vmem:[%s12085_s7 + $0x18] sm:$0xff]  ;;  %v721_v33 = vld [vmem:[%s12085_s7 + $0xb0] sm:$0xff]  ;;  %v707_v40 = vld [vmem:[%s12085_s7 + $0x40] sm:$0xff] }
  0x3c   : > { %9884 = vmatpush3.bf16.msra.mxu0 %v10702_v37  ;;  %12144 = vst [vmem:[#allocation14_spill] sm:$0xff] %v11005_v10  ;;  %v11042_v36 = vpack.c.bf16 %v702_v30, %v701_v29  ;;  %v722_v39 = vld [vmem:[%s12085_s7 + $0xb8] sm:$0xff]  ;;  %v708_v41 = vld [vmem:[%s12085_s7 + $0x48] sm:$0xff]  ;;  %v727_v46 = vld [vmem:[%s12085_s7 + $0xe0] sm:$0xff] }
  0x3d   : > { %9914 = vmatpush3.bf16.msra.mxu1 %v10706_v38  ;;  %9891 = vmatprep.subr.bf16.mxu0 %v12107_v3  ;;  %12145 = vst [vmem:[#allocation15_spill] sm:$0xff] %v11022_v28  ;;  %v11053_v45 = vpack.c.bf16 %v722_v39, %v721_v33  ;;  %v728_v48 = vld [vmem:[%s12085_s7 + $0xe8] sm:$0xff]  ;;  %v11062_v51 = vpack.c.bf16 %v708_v41, %v707_v40  ;;  %v709_v54 = vld [vmem:[%s12085_s7 + $0x50] sm:$0xff]  ;;  %v710_v58 = vld [vmem:[%s12085_s7 + $0x58] sm:$0xff] }
  0x3e   : > { %9921 = vmatprep.subr.bf16.mxu1 %v12107_v3  ;;  %12146 = vst [vmem:[#allocation16_spill] sm:$0xff] %v11042_v36  ;;  %v11066_v53 = vpack.c.bf16 %v728_v48, %v727_v46  ;;  %v729_v59 = vld [vmem:[%s12085_s7 + $0xf0] sm:$0xff]  ;;  %v11086_v63 = vpack.c.bf16 %v710_v58, %v709_v54  ;;  %v730_v0 = vld [vmem:[%s12085_s7 + $0xf8] sm:$0xff]  ;;  %v715_v9 = vld [vmem:[%s12085_s7 + $0x80] sm:$0xff] }
  0x3f   : > { %9073 = vmatmul.mubr.msk.f32.vlgmr.msra.gmra.mrb[4].mxu0 %vm796_vm1, %v10628_v18  ;;  %12147 = vst [vmem:[#allocation17_spill] sm:$0xff] %v11053_v45  ;;  %12148 = vst [vmem:[#allocation18_spill] sm:$0xff] %v11062_v51  ;;  %v11093_v7 = vpack.c.bf16 %v730_v0, %v729_v59  ;;  %v716_v14 = vld [vmem:[%s12085_s7 + $0x88] sm:$0xff]  ;;  %v717_v21 = vld [vmem:[%s12085_s7 + $0x90] sm:$0xff] }
  0x40   : > { %9893 = vmatpush3.bf16.msra.mxu0 %v10726_v43  ;;  %9128 = vmatmul.mubr.msk.f32.vlgmr.msra.gmra.mrb[4].mxu1 %vm796_vm1, %v10628_v18  ;;  %12149 = vst [vmem:[#allocation19_spill] sm:$0xff] %v11066_v53  ;;  %12150 = vst [vmem:[#allocation20_spill] sm:$0xff] %v11086_v63  ;;  %v11104_v17 = vpack.c.bf16 %v716_v14, %v715_v9  ;;  %v718_v23 = vld [vmem:[%s12085_s7 + $0x98] sm:$0xff]  ;;  %v723_v30 = vld [vmem:[%s12085_s7 + $0xc0] sm:$0xff] }
  0x41   : > { %9923 = vmatpush3.bf16.msra.mxu1 %v10730_v44  ;;  %9894 = vmatprep.subr.bf16.mxu0 %v12107_v3  ;;  %12151 = vst [vmem:[#allocation21_spill] sm:$0xff] %v11093_v7  ;;  %v11123_v29 = vpack.c.bf16 %v718_v23, %v717_v21  ;;  %v724_v33 = vld [vmem:[%s12085_s7 + $0xc8] sm:$0xff]  ;;  %v725_v40 = vld [vmem:[%s12085_s7 + $0xd0] sm:$0xff]  ;;  %v726_v41 = vld [vmem:[%s12085_s7 + $0xd8] sm:$0xff] }
  0x42   : > { %9924 = vmatprep.subr.bf16.mxu1 %v12107_v3  ;;  %9094 = vmatprep.mubr.msk.f32.mxu0 %vm10409_vm0, %v12109_v11  ;;  %12152 = vst [vmem:[#allocation22_spill] sm:$0xff] %v11104_v17  ;;  %v11135_v39 = vpack.c.bf16 %v724_v33, %v723_v30  ;;  %v11149_v46 = vpack.c.bf16 %v726_v41, %v725_v40  ;;  %v8532_v41 = vld [vmem:[%s12084_s6 + $0x1] ss:$0 sm:$0xff] }
  0x43   : > { %9149 = vmatprep.mubr.msk.f32.mxu1 %vm10409_vm0, %v12109_v11  ;;  %12153 = vst [vmem:[#allocation23_spill] sm:$0xff] %v11123_v29 }
  0x44   : > { %9896 = vmatpush3.bf16.msra.mxu0 %v10750_v49  ;;  %12154 = vst [vmem:[#allocation24_spill] sm:$0xff] %v11135_v39  ;;  %12155 = vst [vmem:[#allocation25_spill] sm:$0xff] %v11149_v46 }
  0x45   : > { %9926 = vmatpush3.bf16.msra.mxu1 %v10754_v50  ;;  %9903 = vmatprep.subr.bf16.mxu0 %v12107_v3 }
  0x46   : > { %9933 = vmatprep.subr.bf16.mxu1 %v12107_v3 }
  0x47   : > { %9095 = vmatmul.mubr.msk.f32.vlgmr.msra.gmra.mrb[6].mxu0 %vm796_vm1, %v10628_v18 }
  0x48   : > { %9150 = vmatmul.mubr.msk.f32.vlgmr.msra.gmra.mrb[6].mxu1 %vm796_vm1, %v10628_v18  ;;  %9905 = vmatpush3.bf16.msra.mxu0 %v10774_v55 }
  0x49   : > { %9935 = vmatpush3.bf16.msra.mxu1 %v10778_v56  ;;  %9906 = vmatprep.subr.bf16.mxu0 %v12107_v3 }
  0x4a   : > { %9936 = vmatprep.subr.bf16.mxu1 %v12107_v3  ;;  %9116 = vmatprep.mubr.msk.f32.mxu0 %vm10409_vm0, %v12109_v11 }
  0x4b   : > { %9171 = vmatprep.mubr.msk.f32.mxu1 %vm10409_vm0, %v12109_v11 }
  0x4c   : > { %9908 = vmatpush3.bf16.msra.mxu0 %v10798_v61 }
  0x4d   : > { %9938 = vmatpush3.bf16.msra.mxu1 %v10802_v62  ;;  %9915 = vmatprep.subr.bf16.mxu0 %v12107_v3 }
  0x4e   : > { %9945 = vmatprep.subr.bf16.mxu1 %v12107_v3 }
  0x4f   : > { %9117 = vmatmul.mubr.msk.f32.vlgmr.msra.gmra.mrb[8].mxu0 %vm796_vm1, %v10628_v18 }
  0x50   : > { %9172 = vmatmul.mubr.msk.f32.vlgmr.msra.gmra.mrb[8].mxu1 %vm796_vm1, %v10628_v18  ;;  %9917 = vmatpush3.bf16.msra.mxu0 %v10822_v5 }
  0x51   : > { %9947 = vmatpush3.bf16.msra.mxu1 %v10826_v6  ;;  %9918 = vmatprep.subr.bf16.mxu0 %v12107_v3 }
  0x52   : > { %9948 = vmatprep.subr.bf16.mxu1 %v12107_v3  ;;  %9138 = vmatprep.mubr.msk.f32.mxu0 %vm10409_vm0, %v12109_v11 }
  0x53   : > { %9193 = vmatprep.mubr.msk.f32.mxu1 %vm10409_vm0, %v12109_v11 }
  0x54   : > { %9920 = vmatpush3.bf16.msra.mxu0 %v10846_v15 }
  0x55   : > { %9950 = vmatpush3.bf16.msra.mxu1 %v10850_v16  ;;  %9927 = vmatprep.subr.bf16.mxu0 %v12107_v3 }
  0x56   : > { %9957 = vmatprep.subr.bf16.mxu1 %v12107_v3 }
  0x57   : > { %9139 = vmatmul.mubr.msk.f32.vlgmr.msra.gmra.mrb[10].mxu0 %vm796_vm1, %v10628_v18 }
  0x58   : > { %9194 = vmatmul.mubr.msk.f32.vlgmr.msra.gmra.mrb[10].mxu1 %vm796_vm1, %v10628_v18  ;;  %9929 = vmatpush3.bf16.msra.mxu0 %v10870_v24 }
  0x59   : > { %9959 = vmatpush3.bf16.msra.mxu1 %v10874_v27  ;;  %9930 = vmatprep.subr.bf16.mxu0 %v12107_v3 }
  0x5a   : > { %9960 = vmatprep.subr.bf16.mxu1 %v12107_v3  ;;  %9160 = vmatprep.mubr.msk.f32.mxu0 %vm10409_vm0, %v12109_v11 }
  0x5b   : > { %9215 = vmatprep.mubr.msk.f32.mxu1 %vm10409_vm0, %v12109_v11 }
  0x5c   : > { %9932 = vmatpush3.bf16.msra.mxu0 %v10894_v34 }
  0x5d   : > { %9962 = vmatpush3.bf16.msra.mxu1 %v10898_v35  ;;  %9939 = vmatprep.subr.bf16.mxu0 %v12107_v3 }
  0x5e   : > { %9969 = vmatprep.subr.bf16.mxu1 %v12107_v3 }
  0x5f   : > { %9161 = vmatmul.mubr.msk.f32.vlgmr.msra.gmra.mrb[12].mxu0 %vm796_vm1, %v10628_v18 }
  0x60   : > { %9216 = vmatmul.mubr.msk.f32.vlgmr.msra.gmra.mrb[12].mxu1 %vm796_vm1, %v10628_v18  ;;  %9941 = vmatpush3.bf16.msra.mxu0 %v10918_v42 }
  0x61   : > { %9942 = vmatprep.subr.bf16.mxu0 %v12107_v3  ;;  %9182 = vmatprep.mubr.msk.f32.mxu0 %vm10409_vm0, %v12109_v11 }
  0x62   : > { %9971 = vmatpush3.bf16.msra.mxu1 %v10929_v47  ;;  %9237 = vmatprep.mubr.msk.f32.mxu1 %vm10409_vm0, %v12109_v11 }
  0x63   : > { %9972 = vmatprep.subr.bf16.mxu1 %v12107_v3 }
  0x64   : > { %9944 = vmatpush3.bf16.msra.mxu0 %v10942_v52 }
  0x65   : > { %9951 = vmatprep.subr.bf16.mxu0 %v12107_v3 }
  0x66   : > { %9974 = vmatpush3.bf16.msra.mxu1 %v10954_v57 }
  0x67   : > { %9183 = vmatmul.mubr.msk.f32.vlgmr.msra.gmra.mrb[14].mxu0 %vm796_vm1, %v10628_v18  ;;  %9981 = vmatprep.subr.bf16.mxu1 %v12107_v3 }
  0x68   : > { %9953 = vmatpush3.bf16.msra.mxu0 %v10966_v60  ;;  %9204 = vmatprep.mubr.msk.f32.mxu0 %vm10409_vm0, %v12109_v11 }
  0x69   : > { %9954 = vmatprep.subr.bf16.mxu0 %v12107_v3  ;;  %9238 = vmatmul.mubr.msk.f32.vlgmr.msra.gmra.mrb[14].mxu1 %vm796_vm1, %v10628_v18 }
  0x6a   : > { %9983 = vmatpush3.bf16.msra.mxu1 %v10976_v1  ;;  %9259 = vmatprep.mubr.msk.f32.mxu1 %vm10409_vm0, %v12109_v11 }
  0x6b   : > { %9984 = vmatprep.subr.bf16.mxu1 %v12107_v3 }
  0x6c   : > { %9956 = vmatpush3.bf16.msra.mxu0 %v10982_v2 }
  0x6d   : > { %9963 = vmatprep.subr.bf16.mxu0 %v12107_v3 }
  0x6e   : > { %9986 = vmatpush3.bf16.msra.mxu1 %v11005_v10 }
  0x6f   : > { %9205 = vmatmul.mubr.msk.f32.vlgmr.msra.gmra.mrb[16].mxu0 %vm796_vm1, %v10628_v18  ;;  %9993 = vmatprep.subr.bf16.mxu1 %v12107_v3 }
  0x70   : > { %9226 = vmatprep.mubr.msk.f32.mxu0 %vm10409_vm0, %v12109_v11  ;;  %9965 = vmatpush3.bf16.msra.mxu0 %v11016_v22 }
  0x71   : > { %9966 = vmatprep.subr.bf16.mxu0 %v12107_v3  ;;  %9260 = vmatmul.mubr.msk.f32.vlgmr.msra.gmra.mrb[16].mxu1 %vm796_vm1, %v10628_v18 }
  0x72   : > { %9995 = vmatpush3.bf16.msra.mxu1 %v11022_v28  ;;  %9281 = vmatprep.mubr.msk.f32.mxu1 %vm10409_vm0, %v12109_v11 }
  0x73   : > { %9996 = vmatprep.subr.bf16.mxu1 %v12107_v3 }
  0x74   : > { %9968 = vmatpush3.bf16.msra.mxu0 %v11042_v36 }
  0x75   : > { %9975 = vmatprep.subr.bf16.mxu0 %v12107_v3 }
  0x76   : > { %9998 = vmatpush3.bf16.msra.mxu1 %v11053_v45 }
  0x77   : > { %10005 = vmatprep.subr.bf16.mxu1 %v12107_v3  ;;  %9227 = vmatmul.mubr.msk.f32.vlgmr.msra.gmra.mrb[18].mxu0 %vm796_vm1, %v10628_v18 }
  0x78   : > { %9977 = vmatpush3.bf16.msra.mxu0 %v11062_v51  ;;  %9248 = vmatprep.mubr.msk.f32.mxu0 %vm10409_vm0, %v12109_v11 }
  0x79   : > { %9282 = vmatmul.mubr.msk.f32.vlgmr.msra.gmra.mrb[18].mxu1 %vm796_vm1, %v10628_v18  ;;  %9978 = vmatprep.subr.bf16.mxu0 %v12107_v3 }
  0x7a   : > { %10007 = vmatpush3.bf16.msra.mxu1 %v11066_v53  ;;  %9303 = vmatprep.mubr.msk.f32.mxu1 %vm10409_vm0, %v12109_v11 }
  0x7b   : > { %10008 = vmatprep.subr.bf16.mxu1 %v12107_v3 }
  0x7c   : > { %9980 = vmatpush3.bf16.msra.mxu0 %v11086_v63 }
  0x7d   : > { %9987 = vmatprep.subr.bf16.mxu0 %v12107_v3 }
  0x7e   : > { %10010 = vmatpush3.bf16.msra.mxu1 %v11093_v7 }
  0x7f   : > { %9311 = vmatprep.subr.mxu1 %v12109_v11  ;;  %9249 = vmatmul.mubr.msk.f32.vlgmr.msra.gmra.mrb[20].mxu0 %vm796_vm1, %v10628_v18 }
  0x80   : > { %9989 = vmatpush3.bf16.msra.mxu0 %v11104_v17  ;;  %9270 = vmatprep.mubr.msk.f32.mxu0 %vm10409_vm0, %v12109_v11 }
  0x81   : > { %9304 = vmatmul.mubr.msk.f32.vlgmr.msra.gmra.mrb[20].mxu1 %vm796_vm1, %v10628_v18  ;;  %9990 = vmatprep.subr.bf16.mxu0 %v12107_v3 }
  0x82   : > { %9313 = vmatprep.mubr.msk.f32.mxu1 %vm10409_vm0, %v12109_v11 }
  0x84   : > { %9992 = vmatpush3.bf16.msra.mxu0 %v11123_v29 }
  0x85   : > { %9999 = vmatprep.subr.bf16.mxu0 %v12107_v3 }
  0x87   : > { %9271 = vmatmul.mubr.msk.f32.vlgmr.msra.gmra.mrb[22].mxu0 %vm796_vm1, %v10628_v18 }
  0x88   : > { %10001 = vmatpush3.bf16.msra.mxu0 %v11135_v39  ;;  %9292 = vmatprep.mubr.msk.f32.mxu0 %vm10409_vm0, %v12109_v11 }
  0x89   : > { %10002 = vmatprep.subr.bf16.mxu0 %v12107_v3 }
  0x8c   : > { %10004 = vmatpush3.bf16.msra.mxu0 %v11149_v46 }
  0x8d   : > { %9306 = vmatprep.subr.mxu0 %v12109_v11 }
  0x8f   : > { %9293 = vmatmul.mubr.msk.f32.vlgmr.msra.gmra.mrb[24].mxu0 %vm796_vm1, %v10628_v18 }
  0x90   : > { %9308 = vmatprep.mubr.msk.f32.mxu0 %vm10409_vm0, %v12109_v11 }
 0x102   : > { %v866_v48 = vpop.f32.mrb[0].mxu0 }
 0x103   : > { %v9052_v54 = vpop.f32.mrb[1].mxu0  ;;  %v1076_v58 = vpop.f32.mrb[0].mxu1 }
 0x104   : > { %v9085_v59 = vpop.f32.mrb[1].mxu1  ;;  %v8516_v54 = vld [vmem:[%s12082_s4 + $0x1] ss:$0 sm:$0xff] }
 0x10a   : > { %v936_v0 = vpop.f32.mrb[2].mxu0 }
 0x10b   : > { %v9063_v9 = vpop.f32.mrb[3].mxu0  ;;  %v1216_v14 = vpop.f32.mrb[2].mxu1 }
 0x10c   : > { %v9107_v21 = vpop.f32.mrb[3].mxu1 }
 0x10d   : > { %v937_v21 = vadd.f32 %v8516_v54, %v936_v0 }
 0x112   : > { %v1006_v23 = vpop.f32.mrb[4].mxu0 }
 0x113   : > { %v9074_v30 = vpop.f32.mrb[5].mxu0  ;;  %v1356_v33 = vpop.f32.mrb[4].mxu1 }
 0x114   : > { %v9129_v40 = vpop.f32.mrb[5].mxu1  ;;  %v12156_v30 = vmov 0.0  }
 0x115   : > { %v8534_v40 = vld [vmem:[%s12084_s6 + $0x3] ss:$0 sm:$0xff] }
 0x11a   : > { %v11160_v18 = vpop.f32.mrb[6].mxu0 }
 0x11b   : > { %v1544_v3 = vpop.f32.mrb[6].mxu1  ;;  %v9096_v11 = vpop.f32.mrb[7].mxu0 }
 0x11c   : > { %v1545_v59 = vadd.f32 %v8532_v41, %v1544_v3  ;;  %v9151_v9 = vpop.f32.mrb[7].mxu1  ;;  %v8518_v3 = vld [vmem:[%s12082_s4 + $0x3] ss:$0 sm:$0xff] }
 0x11d   : > { %v1077_v54 = vadd.f32 %v8518_v3, %v1076_v58  ;;  %v8515_v58 = vld [vmem:[%s12082_s4] ss:$0 sm:$0xff]  ;;  %v8520_v3 = vld [vmem:[%s12082_s4 + $0x5] ss:$0 sm:$0xff] }
 0x11e   : > { %9312 = vmatpush3.xpose.msk.msra.mxu1 %vm2577_vm2, %v1545_v59  ;;  %v8531_v59 = vld [vmem:[%s12084_s6] ss:$0 sm:$0xff]  ;;  %v1217_v53 = vadd.f32 %v8520_v3, %v1216_v14  ;;  %v8517_v14 = vld [vmem:[%s12082_s4 + $0x2] ss:$0 sm:$0xff] }
 0x11f   : > { %9321 = vmatprep.subr.mxu1 %v12156_v30  ;;  %v1007_v3 = vadd.f32 %v8517_v14, %v1006_v23  ;;  %v8548_v23 = vld [vmem:[%s12086_s8 + $0x1] ss:$0 sm:$0xff] }
 0x121   : > { %9314 = vmatmul.mubr.msk.f32.vlgmr.msra.gmra.mrb[22].mxu1 %vm2577_vm2, %v937_v21 }
 0x122   : > { %v11171_v7 = vpop.f32.mrb[8].mxu0  ;;  %9323 = vmatprep.mubr.msk.f32.mxu1 %vm10409_vm0, %v12156_v30 }
 0x123   : > { %v1684_v11 = vpop.f32.mrb[8].mxu1  ;;  %v9118_v46 = vpop.f32.mrb[9].mxu0 }
 0x124   : > { %v1685_v0 = vadd.f32 %v8534_v40, %v1684_v11  ;;  %v9173_v41 = vpop.f32.mrb[9].mxu1  ;;  %v8536_v46 = vld [vmem:[%s12084_s6 + $0x5] ss:$0 sm:$0xff] }
 0x126   : > { %9322 = vmatpush3.xpose.msk.msra.mxu1 %vm2577_vm2, %v1685_v0 }
 0x127   : > { %9331 = vmatprep.subr.mxu1 %v12156_v30 }
 0x129   : > { %9324 = vmatmul.mubr.msk.f32.vlgmr.msra.gmra.mrb[24].mxu1 %vm2577_vm2, %v1077_v54  ;;  %v867_v54 = vadd.f32 %v8515_v58, %v866_v48 }
 0x12a   : > { %v1474_v9 = vpop.f32.mrb[10].mxu0  ;;  %9333 = vmatprep.mubr.msk.f32.mxu1 %vm10409_vm0, %v12156_v30 }
 0x12b   : > { %v1475_v21 = vadd.f32 %v8531_v59, %v1474_v9  ;;  %v1824_v40 = vpop.f32.mrb[10].mxu1  ;;  %v9140_v11 = vpop.f32.mrb[11].mxu0  ;;  %v8533_v59 = vld [vmem:[%s12084_s6 + $0x2] ss:$0 sm:$0xff] }
 0x12c   : > { %v1825_v0 = vadd.f32 %v8536_v46, %v1824_v40  ;;  %v9195_v41 = vpop.f32.mrb[11].mxu1  ;;  %v8538_v46 = vld [vmem:[%s12084_s6 + $0x7] ss:$0 sm:$0xff] }
 0x12d   : > { %9307 = vmatpush3.xpose.msk.msra.mxu0 %vm2577_vm2, %v1475_v21  ;;  %v8535_v41 = vld [vmem:[%s12084_s6 + $0x4] ss:$0 sm:$0xff] }
 0x12e   : > { %9332 = vmatpush3.xpose.msk.msra.mxu1 %vm2577_vm2, %v1825_v0  ;;  %9316 = vmatprep.subr.mxu0 %v12156_v30 }
 0x12f   : > { %9341 = vmatprep.subr.mxu1 %v12156_v30 }
 0x130   : > { %9309 = vmatmul.mubr.msk.f32.vlgmr.msra.gmra.mrb[26].mxu0 %vm2577_vm2, %v867_v54 }
 0x131   : > { %9334 = vmatmul.mubr.msk.f32.vlgmr.msra.gmra.mrb[26].mxu1 %vm2577_vm2, %v1217_v53  ;;  %9318 = vmatprep.mubr.msk.f32.mxu0 %vm10409_vm0, %v12156_v30  ;;  %v8522_v53 = vld [vmem:[%s12082_s4 + $0x7] ss:$0 sm:$0xff] }
 0x132   : > { %v1614_v48 = vpop.f32.mrb[12].mxu0  ;;  %9343 = vmatprep.mubr.msk.f32.mxu1 %vm10409_vm0, %v12156_v30  ;;  %v1357_v0 = vadd.f32 %v8522_v53, %v1356_v33  ;;  %v8519_v33 = vld [vmem:[%s12082_s4 + $0x4] ss:$0 sm:$0xff] }
 0x133   : > { %v1615_v9 = vadd.f32 %v8533_v59, %v1614_v48  ;;  %v1964_v58 = vpop.f32.mrb[12].mxu1  ;;  %v9162_v21 = vpop.f32.mrb[13].mxu0 }
 0x134   : > { %v1965_v40 = vadd.f32 %v8538_v46, %v1964_v58  ;;  %v9217_v11 = vpop.f32.mrb[13].mxu1  ;;  %v1147_v58 = vadd.f32 %v8519_v33, %v11160_v18  ;;  %v8537_v21 = vld [vmem:[%s12084_s6 + $0x6] ss:$0 sm:$0xff] }
 0x135   : > { %9317 = vmatpush3.xpose.msk.msra.mxu0 %vm2577_vm2, %v1615_v9 }
 0x136   : > { %9342 = vmatpush3.xpose.msk.msra.mxu1 %vm2577_vm2, %v1965_v40  ;;  %9326 = vmatprep.subr.mxu0 %v12156_v30  ;;  %v8521_v40 = vld [vmem:[%s12082_s4 + $0x6] ss:$0 sm:$0xff] }
 0x137   : > { %9351 = vmatprep.subr.mxu1 %v12156_v30 }
 0x138   : > { %9319 = vmatmul.mubr.msk.f32.vlgmr.msra.gmra.mrb[28].mxu0 %vm2577_vm2, %v1007_v3  ;;  %v1287_v3 = vadd.f32 %v8521_v40, %v11171_v7 }
 0x139   : > { %9344 = vmatmul.mubr.msk.f32.vlgmr.msra.gmra.mrb[28].mxu1 %vm2577_vm2, %v1357_v0  ;;  %9328 = vmatprep.mubr.msk.f32.mxu0 %vm10409_vm0, %v12156_v30 }
 0x13a   : > { %v1754_v54 = vpop.f32.mrb[14].mxu0  ;;  %9353 = vmatprep.mubr.msk.f32.mxu1 %vm10409_vm0, %v12156_v30 }
 0x13b   : > { %v1755_v59 = vadd.f32 %v8535_v41, %v1754_v54  ;;  %v9184_v46 = vpop.f32.mrb[15].mxu0  ;;  %v8547_v54 = vld [vmem:[%s12086_s8] ss:$0 sm:$0xff] }
 0x13c   : > { %v2152_v48 = vpop.f32.mrb[14].mxu1 }
 0x13d   : > { %9327 = vmatpush3.xpose.msk.msra.mxu0 %vm2577_vm2, %v1755_v59  ;;  %v2153_v14 = vadd.f32 %v8548_v23, %v2152_v48  ;;  %v9239_v9 = vpop.f32.mrb[15].mxu1 }
 0x13e   : > { %9336 = vmatprep.subr.mxu0 %v12156_v30 }
 0x13f   : > { %9352 = vmatpush3.msra.mxu1 %v2153_v14 }
 0x140   : > { %9329 = vmatmul.mubr.msk.f32.vlgmr.msra.gmra.mrb[30].mxu0 %vm2577_vm2, %v1147_v58  ;;  %9361 = vmatprep.subr.mxu1 %v12156_v30 }
 0x141   : > { %9338 = vmatprep.mubr.msk.f32.mxu0 %vm10409_vm0, %v12156_v30 }
 0x142   : > { %v1894_v53 = vpop.f32.mrb[16].mxu0 }
 0x143   : > { %v1895_v18 = vadd.f32 %v8537_v21, %v1894_v53  ;;  %v9206_v11 = vpop.f32.mrb[17].mxu0 }
 0x144   : > { %v11255_v0 = vpop.f32.mrb[16].mxu1 }
 0x145   : > { %9337 = vmatpush3.xpose.msk.msra.mxu0 %vm2577_vm2, %v1895_v18  ;;  %v9261_v41 = vpop.f32.mrb[17].mxu1 }
 0x146   : > { %9346 = vmatprep.subr.mxu0 %v12156_v30 }
 0x148   : > { %9339 = vmatmul.mubr.msk.f32.vlgmr.msra.gmra.mrb[32].mxu0 %vm2577_vm2, %v1287_v3 }
 0x149   : > { %9348 = vmatprep.mubr.msk.f32.mxu0 %vm10409_vm0, %v12156_v30 }
 0x14a   : > { %v2082_v23 = vpop.f32.mrb[18].mxu0 }
 0x14b   : > { %v2083_v33 = vadd.f32 %v8547_v54, %v2082_v23  ;;  %v9228_v59 = vpop.f32.mrb[19].mxu0  ;;  %v2576_v23 = vld [vmem:[%s12157_s0] sm:$0xff]  ;;  %s604_s0 = sand.u32 1, %s10398_s30  }
 0x14c   : > { %v11260_v46 = vpop.f32.mrb[18].mxu1  ;;  %vm3194_vm3 = vcmp.eq.f32.partialorder %v2576_v23, 0.0  ;;  %s8512_s26 = sshll.u32 %s604_s0, 3 }
 0x14d   : > { %v9283_v7 = vpop.f32.mrb[19].mxu1  ;;  %9347 = vmatpush3.msra.mxu0 %v2083_v33 }
 0x14e   : > { %9356 = vmatprep.subr.mxu0 %v12156_v30 }
 0x152   : > { %v11265_v9 = vpop.f32.mrb[20].mxu0 }
 0x153   : > { %v9250_v58 = vpop.f32.mrb[21].mxu0 }
 0x154   : > { %v11263_v48 = vpop.f32.mrb[20].mxu1 }
 0x155   : > { %v9305_v14 = vpop.f32.mrb[21].mxu1 }
 0x15a   : > { %v11267_v21 = vpop.f32.mrb[22].mxu0 }
 0x15b   : > { %v9272_v53 = vpop.f32.mrb[23].mxu0 }
 0x162   : > { %v11269_v40 = vpop.f32.mrb[24].mxu0 }
 0x163   : > { %v9294_v18 = vpop.f32.mrb[25].mxu0 }
 0x1f4   : > { %v2726_v11 = vpop.f32.mrb[22].mxu1 }
 0x1f5   : > { %v9315_v3 = vpop.f32.mrb[23].mxu1  ;;  %v3187_v59 = vmul.f32 0.5, %v2726_v11 }
 0x1f7   : > { %v3198_v3 = vsel %vm3194_vm3, -10000.0, %v3187_v59 }
 0x1f8   : > { %v3209_v45 = vsel %vm3205_vm4, %v3198_v3, -inf }
 0x1fc   : > { %v2878_v41 = vpop.f32.mrb[24].mxu1 }
 0x1fd   : > { %v9325_v54 = vpop.f32.mrb[25].mxu1  ;;  %v3189_v29 = vmul.f32 0.5, %v2878_v41 }
 0x1ff   : > { %v3200_v10 = vsel %vm3194_vm3, -10000.0, %v3189_v29 }
 0x200   : > { %v3215_v59 = vsel %vm3205_vm4, %v3200_v10, -inf }
 0x203   : > { %v2650_v33 = vpop.f32.mrb[26].mxu0 }
 0x204   : > { %v3186_v7 = vmul.f32 0.5, %v2650_v33  ;;  %v3030_v14 = vpop.f32.mrb[26].mxu1  ;;  %v9310_v39 = vpop.f32.mrb[27].mxu0 }
 0x205   : > { %v9335_v58 = vpop.f32.mrb[27].mxu1 }
 0x206   : > { %v3197_v53 = vsel %vm3194_vm3, -10000.0, %v3186_v7  ;;  %v3191_v7 = vmul.f32 0.5, %v3030_v14 }
 0x207   : > { %v3206_v18 = vsel %vm3205_vm4, %v3197_v53, -inf }
 0x208   : > { %3207 = vmax.xlane.f32.xlu0 %v3206_v18 }
 0x20b   : > { %v2802_v54 = vpop.f32.mrb[28].mxu0 }
 0x20c   : > { %v3188_v28 = vmul.f32 0.5, %v2802_v54  ;;  %v3182_v17 = vpop.f32.mrb[28].mxu1  ;;  %3210 = vmax.xlane.f32.xlu0 %v3209_v45  ;;  %v9320_v11 = vpop.f32.mrb[29].mxu0  ;;  %v3202_v54 = vsel %vm3194_vm3, -10000.0, %v3191_v7 }
 0x20d   : > { %v9345_v33 = vpop.f32.mrb[29].mxu1  ;;  %v3193_v63 = vmul.f32 0.5, %v3182_v17  ;;  %v3221_v11 = vsel %vm3205_vm4, %v3202_v54, -inf }
 0x20e   : > { %v3199_v39 = vsel %vm3194_vm3, -10000.0, %v3188_v28 }
 0x20f   : > { %v3212_v58 = vsel %vm3205_vm4, %v3199_v39, -inf  ;;  %v3204_v14 = vsel %vm3194_vm3, -10000.0, %v3193_v63 }
 0x210   : > { %3213 = vmax.xlane.f32.xlu1 %v3212_v58  ;;  %v3227_v33 = vsel %vm3205_vm4, %v3204_v14, -inf }
 0x213   : > { %v2954_v18 = vpop.f32.mrb[30].mxu0 }
 0x214   : > { %v3190_v1 = vmul.f32 0.5, %v2954_v18  ;;  %3216 = vmax.xlane.f32.xlu1 %v3215_v59  ;;  %v9330_v41 = vpop.f32.mrb[31].mxu0 }
 0x216   : > { %v3201_v45 = vsel %vm3194_vm3, -10000.0, %v3190_v1 }
 0x217   : > { %v3218_v28 = vsel %vm3205_vm4, %v3201_v45, -inf }
 0x218   : > { %3222 = vmax.xlane.f32.xlu1 %v3221_v11  ;;  %3219 = vmax.xlane.f32.xlu0 %v3218_v28 }
 0x21b   : > { %v3106_v29 = vpop.f32.mrb[32].mxu0 }
 0x21c   : > { %v3192_v58 = vmul.f32 0.5, %v3106_v29  ;;  %3228 = vmax.xlane.f32.xlu1 %v3227_v33  ;;  %v9340_v17 = vpop.f32.mrb[33].mxu0 }
 0x21e   : > { %v3203_v18 = vsel %vm3194_vm3, -10000.0, %v3192_v58 }
 0x21f   : > { %v3224_v7 = vsel %vm3205_vm4, %v3203_v18, -inf }
 0x220   : > { %3225 = vmax.xlane.f32.xlu0 %v3224_v7 }
 0x295   : > { %v3208_v1 = vpop.xlane.xlu0 %3207 }
 0x296   : > { %v3230_v59 = vsub.f32 %v3197_v53, %v3208_v1 }
 0x298   : > { %v3238_v41 = vmul.f32 1.442695, %v3230_v59 }
 0x299   : > { %v3211_v51 = vpop.xlane.xlu0 %3210 }
 0x29a   : > { %10233 = vpow2.f32 %v3238_v41  ;;  %v3231_v11 = vsub.f32 %v3198_v3, %v3211_v51 }
 0x29c   : > { %v3240_v28 = vmul.f32 1.442695, %v3231_v11 }
 0x29d   : > { %v3214_v57 = vpop.xlane.xlu1 %3213 }
 0x29e   : > { %10235 = vpow2.f32 %v3240_v28  ;;  %v3232_v63 = vsub.f32 %v3199_v39, %v3214_v57 }
 0x2a0   : > { %v3242_v36 = vmul.f32 1.442695, %v3232_v63 }
 0x2a1   : > { %v3217_v47 = vpop.xlane.xlu1 %3216 }
 0x2a2   : > { %10237 = vpow2.f32 %v3242_v36  ;;  %v3233_v29 = vsub.f32 %v3200_v10, %v3217_v47 }
 0x2a4   : > { %v10234_v33 = vpop.eup %10233  ;;  %v3244_v23 = vmul.f32 1.442695, %v3233_v29 }
 0x2a5   : > { %v3223_v58 = vpop.xlane.xlu1 %3222  ;;  %v3220_v17 = vpop.xlane.xlu0 %3219  ;;  %v3254_v7 = vsel %vm3205_vm4, %v10234_v33, 0.0 }
 0x2a6   : > { %10239 = vpow2.f32 %v3244_v23  ;;  %v3235_v53 = vsub.f32 %v3202_v54, %v3223_v58  ;;  %v3234_v1 = vsub.f32 %v3201_v45, %v3220_v17  ;;  %3255 = vadd.xlane.f32.xlu0 %v3254_v7 }
 0x2a8   : > { %v10236_v59 = vpop.eup %10235  ;;  %v3248_v51 = vmul.f32 1.442695, %v3235_v53  ;;  %v3246_v3 = vmul.f32 1.442695, %v3234_v1 }
 0x2a9   : > { %v3229_v41 = vpop.xlane.xlu1 %3228  ;;  %v3257_v57 = vsel %vm3205_vm4, %v10236_v59, 0.0 }
 0x2aa   : > { %10241 = vpow2.f32 %v3248_v51  ;;  %v3237_v39 = vsub.f32 %v3204_v14, %v3229_v41  ;;  %3258 = vadd.xlane.f32.xlu1 %v3257_v57  ;;  %v8549_v41 = vld [vmem:[%s12086_s8 + $0x2] ss:$0 sm:$0xff] }
 0x2ab   : > { %10243 = vpow2.f32 %v3246_v3 }
 0x2ac   : > { %v10238_v47 = vpop.eup %10237  ;;  %v3252_v10 = vmul.f32 1.442695, %v3237_v39 }
 0x2ad   : > { %v3226_v36 = vpop.xlane.xlu0 %3225  ;;  %v3260_v11 = vsel %vm3205_vm4, %v10238_v47, 0.0 }
 0x2ae   : > { %10245 = vpow2.f32 %v3252_v10  ;;  %v3236_v28 = vsub.f32 %v3203_v18, %v3226_v36  ;;  %3261 = vadd.xlane.f32.xlu0 %v3260_v11  ;;  %v2223_v36 = vadd.f32 %v8549_v41, %v11265_v9  ;;  %v8550_v11 = vld [vmem:[%s12086_s8 + $0x3] ss:$0 sm:$0xff] }
 0x2b0   : > { %v10240_v54 = vpop.eup %10239  ;;  %v3250_v45 = vmul.f32 1.442695, %v3236_v28 }
 0x2b1   : > { %v3263_v63 = vsel %vm3205_vm4, %v10240_v54, 0.0 }
 0x2b2   : > { %10247 = vpow2.f32 %v3250_v45  ;;  %3264 = vadd.xlane.f32.xlu1 %v3263_v63 }
 0x2b4   : > { %v11294_v29 = vpop.eup %10241 }
 0x2b5   : > { %v11296_v23 = vpop.eup %10243  ;;  %v3269_v14 = vsel %vm3205_vm4, %v11294_v29, 0.0 }
 0x2b6   : > { %3270 = vadd.xlane.f32.xlu1 %v3269_v14  ;;  %v3266_v58 = vsel %vm3205_vm4, %v11296_v23, 0.0  ;;  %v8551_v14 = vld [vmem:[%s12086_s8 + $0x4] ss:$0 sm:$0xff] }
 0x2b7   : > { %3267 = vadd.xlane.f32.xlu0 %v3266_v58 }
 0x2b8   : > { %v11302_v18 = vpop.eup %10245 }
 0x2b9   : > { %v3275_v17 = vsel %vm3205_vm4, %v11302_v18, 0.0 }
 0x2ba   : > { %3276 = vadd.xlane.f32.xlu1 %v3275_v17 }
 0x2bc   : > { %v11306_v7 = vpop.eup %10247 }
 0x2bd   : > { %v3272_v53 = vsel %vm3205_vm4, %v11306_v7, 0.0 }
 0x2be   : > { %3273 = vadd.xlane.f32.xlu0 %v3272_v53  ;;  %v8552_v53 = vld [vmem:[%s12086_s8 + $0x5] ss:$0 sm:$0xff] }
 0x333   : > { %v3256_v1 = vpop.xlane.xlu0 %3255 }
 0x334   : > { %10249 = vrcp.f32 %v3256_v1 }
 0x337   : > { %v3259_v51 = vpop.xlane.xlu1 %3258 }
 0x338   : > { %10251 = vrcp.f32 %v3259_v51 }
 0x33b   : > { %v3262_v3 = vpop.xlane.xlu0 %3261 }
 0x33c   : > { %10253 = vrcp.f32 %v3262_v3 }
 0x33e   : > { %v10250_v57 = vpop.eup %10249 }
 0x33f   : > { %v3279_v39 = vmul.f32 %v10250_v57, %v10234_v33  ;;  %v3265_v10 = vpop.xlane.xlu1 %3264  ;;  %v2293_v33 = vadd.f32 %v8550_v11, %v11255_v0  ;;  %v2363_v0 = vadd.f32 %v8551_v14, %v11267_v21  ;;  %v8554_v21 = vld [vmem:[%s12086_s8 + $0x7] ss:$0 sm:$0xff]  ;;  %v8553_v57 = vld [vmem:[%s12086_s8 + $0x6] ss:$0 sm:$0xff]  ;;  %v743_v14 = vld [vmem:[%s12087_s9 + $0x10] sm:$0xf] }
 0x340   : > { %10255 = vrcp.f32 %v3265_v10 }
 0x341   : > { %9349 = vmatmul.mubr.msk.f32.vlgmr.msra.gmra.mrb[34].mxu0 %vm3205_vm4, %v3279_v39 }
 0x342   : > { %v10252_v28 = vpop.eup %10251  ;;  %9357 = vmatpush3.msra.mxu0 %v2223_v36  ;;  %9358 = vmatprep.mubr.msk.f32.mxu0 %vm10409_vm0, %v12156_v30  ;;  %v2503_v36 = vadd.f32 %v8553_v57, %v11269_v40 }
 0x343   : > { %v3281_v45 = vmul.f32 %v10252_v28, %v10236_v59  ;;  %v3271_v63 = vpop.xlane.xlu1 %3270  ;;  %9366 = vmatprep.subr.mxu0 %v12156_v30 }
 0x344   : > { %10257 = vrcp.f32 %v3271_v63  ;;  %v3268_v9 = vpop.xlane.xlu0 %3267  ;;  %v742_v63 = vld [vmem:[%s12087_s9 + $0xc] sm:$0xf] }
 0x345   : > { %10259 = vrcp.f32 %v3268_v9  ;;  %9354 = vmatmul.mubr.msk.f32.vlgmr.msra.gmra.mrb[30].mxu1 %vm3205_vm4, %v3281_v45 }
 0x346   : > { %v10254_v58 = vpop.eup %10253  ;;  %9362 = vmatpush3.msra.mxu1 %v2293_v33  ;;  %9363 = vmatprep.mubr.msk.f32.mxu1 %vm10409_vm0, %v12156_v30 }
 0x347   : > { %v3283_v59 = vmul.f32 %v10254_v58, %v10238_v47  ;;  %v3277_v17 = vpop.xlane.xlu1 %3276  ;;  %9371 = vmatprep.subr.mxu1 %v12156_v30  ;;  %v2433_v47 = vadd.f32 %v8552_v53, %v11260_v46  ;;  %v2573_v46 = vadd.f32 %v8554_v21, %v11263_v48 }
 0x348   : > { %10261 = vrcp.f32 %v3277_v17  ;;  %v744_v17 = vld [vmem:[%s12087_s9 + $0x14] sm:$0xf] }
 0x349   : > { %9359 = vmatmul.mubr.msk.f32.vlgmr.msra.gmra.mrb[36].mxu0 %vm3205_vm4, %v3283_v59 }
 0x34a   : > { %v10256_v1 = vpop.eup %10255  ;;  %9367 = vmatpush3.msra.mxu0 %v2363_v0  ;;  %9368 = vmatprep.mubr.msk.f32.mxu0 %vm10409_vm0, %v12156_v30 }
 0x34b   : > { %v3285_v51 = vmul.f32 %v10256_v1, %v10240_v54  ;;  %v3274_v3 = vpop.xlane.xlu0 %3273  ;;  %9376 = vmatprep.subr.mxu0 %v12156_v30  ;;  %v746_v1 = vld [vmem:[%s12087_s9 + $0x1c] sm:$0xf] }
 0x34c   : > { %10263 = vrcp.f32 %v3274_v3  ;;  %v745_v3 = vld [vmem:[%s12087_s9 + $0x18] sm:$0xf] }
 0x34d   : > { %9364 = vmatmul.mubr.msk.f32.vlgmr.msra.gmra.mrb[32].mxu1 %vm3205_vm4, %v3285_v51 }
 0x34e   : > { %v10258_v41 = vpop.eup %10257  ;;  %9372 = vmatpush3.msra.mxu1 %v2433_v47  ;;  %9373 = vmatprep.mubr.msk.f32.mxu1 %vm10409_vm0, %v12156_v30 }
 0x34f   : > { %v10260_v54 = vpop.eup %10259  ;;  %v3289_v39 = vmul.f32 %v10258_v41, %v11294_v29  ;;  %9381 = vmatprep.subr.mxu1 %v12156_v30  ;;  %v739_v29 = vld [vmem:[%s12087_s9] sm:$0xf] }
 0x350   : > { %v3287_v10 = vmul.f32 %v10260_v54, %v11296_v23  ;;  %v740_v23 = vld [vmem:[%s12087_s9 + $0x4] sm:$0xf]  ;;  %v12158_v54 = vmov 0.0|0.0  }
 0x351   : > { %9374 = vmatmul.mubr.msk.f32.vlgmr.msra.gmra.mrb[34].mxu1 %vm3205_vm4, %v3289_v39 }
 0x352   : > { %v10262_v11 = vpop.eup %10261  ;;  %9369 = vmatmul.mubr.msk.f32.vlgmr.msra.gmra.mrb[38].mxu0 %vm3205_vm4, %v3287_v10  ;;  %9382 = vmatpush3.msra.mxu1 %v2573_v46 }
 0x353   : > { %v3293_v28 = vmul.f32 %v10262_v11, %v11302_v18  ;;  %9377 = vmatpush3.msra.mxu0 %v2503_v36  ;;  %9383 = vmatprep.mubr.msk.f32.mxu1 %vm10409_vm0, %v12156_v30  ;;  %v741_v18 = vld [vmem:[%s12087_s9 + $0x8] sm:$0xf] }
 0x354   : > { %9378 = vmatprep.mubr.msk.f32.mxu0 %vm10409_vm0, %v12156_v30  ;;  %9386 = vmatprep.subr.mxu0 %v12156_v30 }
 0x355   : > { %9384 = vmatmul.mubr.msk.f32.vlgmr.msra.gmra.mrb[36].mxu1 %vm3205_vm4, %v3293_v28  ;;  %9391 = vmatprep.subr.mxu1 %v12156_v30 }
 0x356   : > { %v10264_v48 = vpop.eup %10263  ;;  %9393 = vmatprep.mubr.msk.f32.mxu1 %vm10409_vm0, %v12156_v30  ;;  %9392 = vmatpush3.msk.msra.mxu1 %vm3881_vm5, %v740_v23 }
 0x357   : > { %v3291_v40 = vmul.f32 %v10264_v48, %v11306_v7  ;;  %9401 = vmatprep.subr.mxu1 %v12156_v30 }
 0x359   : > { %9379 = vmatmul.mubr.msk.f32.vlgmr.msra.gmra.mrb[40].mxu0 %vm3205_vm4, %v3291_v40 }
 0x35a   : > { %9388 = vmatprep.mubr.msk.f32.mxu0 %vm10409_vm0, %v12156_v30  ;;  %9387 = vmatpush3.msk.msra.mxu0 %vm3881_vm5, %v739_v29 }
 0x35b   : > { %9396 = vmatprep.subr.mxu0 %v12156_v30 }
 0x414   : > { %v3363_v7 = vpop.f32.mrb[34].mxu0 }
 0x415   : > { %v9350_v45 = vpop.f32.mrb[35].mxu0  ;;  %9389 = vmatmul.mubr.msk.f32.vlgmr.msra.gmra.mrb[42].mxu0 %vm2577_vm2, %v3363_v7 }
 0x416   : > { %9397 = vmatpush3.msk.msra.mxu0 %vm3881_vm5, %v741_v18  ;;  %9398 = vmatprep.mubr.msk.f32.mxu0 %vm10409_vm0, %v12156_v30 }
 0x417   : > { %9406 = vmatprep.subr.mxu0 %v12156_v30 }
 0x418   : > { %v3436_v33 = vpop.f32.mrb[30].mxu1 }
 0x419   : > { %v9355_v9 = vpop.f32.mrb[31].mxu1  ;;  %9394 = vmatmul.mubr.msk.f32.vlgmr.msra.gmra.mrb[38].mxu1 %vm2577_vm2, %v3436_v33 }
 0x41a   : > { %9402 = vmatpush3.msk.msra.mxu1 %vm3881_vm5, %v742_v63  ;;  %9403 = vmatprep.mubr.msk.f32.mxu1 %vm10409_vm0, %v12156_v30 }
 0x41b   : > { %9411 = vmatprep.subr.mxu1 %v12156_v30 }
 0x41c   : > { %v3509_v58 = vpop.f32.mrb[36].mxu0 }
 0x41d   : > { %v9360_v59 = vpop.f32.mrb[37].mxu0  ;;  %9399 = vmatmul.mubr.msk.f32.vlgmr.msra.gmra.mrb[44].mxu0 %vm2577_vm2, %v3509_v58 }
 0x41e   : > { %9407 = vmatpush3.msk.msra.mxu0 %vm3881_vm5, %v743_v14  ;;  %9408 = vmatprep.mubr.msk.f32.mxu0 %vm10409_vm0, %v12156_v30 }
 0x41f   : > { %9416 = vmatprep.subr.mxu0 %v12156_v30 }
 0x420   : > { %v3582_v0 = vpop.f32.mrb[32].mxu1 }
 0x421   : > { %v9365_v53 = vpop.f32.mrb[33].mxu1  ;;  %9404 = vmatmul.mubr.msk.f32.vlgmr.msra.gmra.mrb[40].mxu1 %vm2577_vm2, %v3582_v0 }
 0x422   : > { %9412 = vmatpush3.msk.msra.mxu1 %vm3881_vm5, %v744_v17  ;;  %9413 = vmatprep.mubr.msk.f32.mxu1 %vm10409_vm0, %v12156_v30 }
 0x423   : > { %9421 = vmatprep.subr.mxu1 %v12156_v30 }
 0x424   : > { %v3728_v51 = vpop.f32.mrb[34].mxu1 }
 0x425   : > { %v3655_v47 = vpop.f32.mrb[38].mxu0  ;;  %v9375_v21 = vpop.f32.mrb[35].mxu1  ;;  %9414 = vmatmul.mubr.msk.f32.vlgmr.msra.gmra.mrb[42].mxu1 %vm2577_vm2, %v3728_v51 }
 0x426   : > { %v9370_v41 = vpop.f32.mrb[39].mxu0  ;;  %9409 = vmatmul.mubr.msk.f32.vlgmr.msra.gmra.mrb[46].mxu0 %vm2577_vm2, %v3655_v47  ;;  %9422 = vmatpush3.msk.msra.mxu1 %vm3881_vm5, %v746_v1 }
 0x427   : > { %9423 = vmatprep.mubr.msk.f32.mxu1 %vm10409_vm0, %v12156_v30  ;;  %9417 = vmatpush3.msk.msra.mxu0 %vm3881_vm5, %v745_v3 }
 0x428   : > { %v3874_v57 = vpop.f32.mrb[36].mxu1  ;;  %9418 = vmatprep.mubr.msk.f32.mxu0 %vm10409_vm0, %v12156_v30  ;;  %10011 = vmatprep.subr.bf16.mxu0 %v12158_v54 }
 0x429   : > { %v9385_v39 = vpop.f32.mrb[37].mxu1  ;;  %9424 = vmatmul.mubr.msk.f32.vlgmr.msra.gmra.mrb[44].mxu1 %vm2577_vm2, %v3874_v57  ;;  %10017 = vmatprep.subr.bf16.mxu1 %v12158_v54 }
 0x42a   : > { %10019 = vmatpush3.bf16.msra.mxu1 %v10630_v19  ;;  %9445 = vmatprep.mubr.msk.f32.mxu1 %vm10409_vm0, %v12156_v30  ;;  %v11451_v39 = vld [vmem:[%s12088_s10] ss:$0 sm:$0xff] }
 0x42b   : > { %10020 = vmatprep.subr.bf16.mxu1 %v12158_v54 }
 0x42c   : > { %v3801_v46 = vpop.f32.mrb[40].mxu0 }
 0x42d   : > { %v9380_v10 = vpop.f32.mrb[41].mxu0  ;;  %9419 = vmatmul.mubr.msk.f32.vlgmr.msra.gmra.mrb[48].mxu0 %vm2577_vm2, %v3801_v46 }
 0x42e   : > { %10013 = vmatpush3.bf16.msra.mxu0 %v10571_v4  ;;  %10022 = vmatpush3.bf16.msra.mxu1 %v10654_v25 }
 0x42f   : > { %10014 = vmatprep.subr.bf16.mxu0 %v12158_v54  ;;  %9434 = vmatprep.mubr.msk.f32.mxu0 %vm10409_vm0, %v12156_v30 }
 0x430   : > { %10029 = vmatprep.subr.bf16.mxu1 %v12158_v54 }
 0x432   : > { %10016 = vmatpush3.bf16.msra.mxu0 %v10596_v12 }
 0x433   : > { %10023 = vmatprep.subr.bf16.mxu0 %v12158_v54 }
 0x4e8   : > { %v3951_v19 = vpop.f32.mrb[42].mxu0 }
 0x4e9   : > { %v9390_v36 = vpop.f32.mrb[43].mxu0  ;;  %v4487_v28 = vsel %vm796_vm1, %v3951_v19, 0.0  ;;  %v10309_v19 = vld [vmem:[%s10624_s2] sm:$0xff]  ;;  %s606_s2 = scalar_lea.vmem [#allocation2], %s8512_s26  ;;  %s10350_s26 = scalar_lea.vmem %s10349_s24, 256 }
 0x4ea   : > { %s8437_s27 = sshll.u32 %s606_s2, 4  ;;  %s12037_s27 = int_to_ptr.vmem [resolvable:$true] %s8437_s27 }
 0x4eb   : > { %s10344_s20 = scalar_lea.vmem %s12037_s27, 128  ;;  %p10351_p0 = scmp.lt.s32.totalorder %s12037_s27, %s10349_s24 }
 0x4ec   : > { %v4027_v11 = vpop.f32.mrb[38].mxu1  ;;  %p10345_p11 = scmp.ne.s32.totalorder %s12037_s27, %s10344_s20  ;;  %p10352_p1 = scmp.lt.s32.totalorder %s10350_s26, %s10344_s20 }
 0x4ed   : > { %v4488_v4 = vsel %vm796_vm1, %v4027_v11, 0.0  ;;  %v9395_v48 = vpop.f32.mrb[39].mxu1 }
 0x4ee   : > { %v4489_v25 = vadd.f32 %v4488_v4, %v4487_v28  ;;  %p10346_p12 = pnand %p10345_p11, %p10550_p5  ;;  %p10353_p2 = por %p10352_p1, %p10351_p0 }
 0x4f0   : > { %v4103_v40 = vpop.f32.mrb[44].mxu0  ;;  %p10347_p13 = pneg %p10346_p12 }
 0x4f1   : > { %v4490_v29 = vsel %vm796_vm1, %v4103_v40, 0.0  ;;  %v9400_v23 = vpop.f32.mrb[45].mxu0 }
 0x4f2   : > { %v4491_v18 = vadd.f32 %v4490_v29, %v4489_v25  ;;  %p10354_p3 = pnand %p10353_p2, %p10347_p13 }
 0x4f4   : > { %v4179_v7 = vpop.f32.mrb[40].mxu1 }
 0x4f5   : > { %v4492_v45 = vsel %vm796_vm1, %v4179_v7, 0.0  ;;  %v9405_v12 = vpop.f32.mrb[41].mxu1 }
 0x4f6   : > { %v4493_v63 = vadd.f32 %v4492_v45, %v4491_v18  ;;  %v8604_v45 = vld [vmem:[%s12089_s11] ss:$0 sm:$0xff] }
 0x4f8   : > { %v4331_v33 = vpop.f32.mrb[42].mxu1 }
 0x4f9   : > { %v4255_v9 = vpop.f32.mrb[46].mxu0  ;;  %v9415_v14 = vpop.f32.mrb[43].mxu1  ;;  %v4496_v0 = vsel %vm796_vm1, %v4331_v33, 0.0 }
 0x4fa   : > { %v4494_v58 = vsel %vm796_vm1, %v4255_v9, 0.0  ;;  %v9410_v59 = vpop.f32.mrb[47].mxu0 }
 0x4fb   : > { %v4495_v17 = vadd.f32 %v4494_v58, %v4493_v63  ;;  %v8605_v63 = vld [vmem:[%s12090_s12] ss:$0 sm:$0xff] }
 0x4fc   : > { %v4483_v53 = vpop.f32.mrb[44].mxu1 }
 0x4fd   : > { %v4497_v1 = vadd.f32 %v4496_v0, %v4495_v17  ;;  %v9425_v51 = vpop.f32.mrb[45].mxu1  ;;  %v4500_v57 = vsel %vm796_vm1, %v4483_v53, 0.0  ;;  %v10310_v53 = vld [vmem:[%s12084_s6] ss:$0 sm:$0xff] }
 0x4fe   : > { %v10311_v51 = vld [vmem:[%s12084_s6 + $0x1] ss:$0 sm:$0xff] }
 0x500   : > { %v4407_v3 = vpop.f32.mrb[48].mxu0 }
 0x501   : > { %v4498_v47 = vsel %vm796_vm1, %v4407_v3, 0.0  ;;  %v9420_v21 = vpop.f32.mrb[49].mxu0 }
 0x502   : > { %v4499_v41 = vadd.f32 %v4498_v47, %v4497_v1 }
 0x504   : > { %v4501_v46 = vadd.f32 %v4500_v57, %v4499_v41  ;;  %v10312_v41 = vld [vmem:[%s12082_s4] ss:$0 sm:$0xff] }
 0x506   : > { %v4508_v10 = vadd.f32 %v11451_v39, %v4501_v46  ;;  %v10313_v46 = vld [vmem:[%s12082_s4 + $0x1] ss:$0 sm:$0xff] }
 0x508   : > { %v4509_v36 = vadd.f32 %v10309_v19, %v4508_v10 }
 0x50a   : > { %v4510_v11 = vsel %vm796_vm1, %v4509_v36, 0.0 }
 0x50b   : > { %4511 = vadd.xlane.f32.xlu0 %v4510_v11  ;;  %v10314_v11 = vld [vmem:[%s12084_s6 + $0x2] ss:$0 sm:$0xff] }
 0x598   : > { %v4512_v28 = vpop.xlane.xlu0 %4511 }
 0x599   : > { %v4514_v4 = vmul.f32 0.03125, %v4512_v28 }
 0x59b   : > { %v4515_v48 = vsub.f32 %v4509_v36, %v4514_v4  ;;  %v10315_v4 = vld [vmem:[%s12084_s6 + $0x3] ss:$0 sm:$0xff] }
 0x59d   : > { %v4516_v25 = vmul.f32 %v4515_v48, %v4515_v48 }
 0x59f   : > { %v4517_v40 = vsel %vm796_vm1, %v4516_v25, 0.0 }
 0x5a0   : > { %4518 = vadd.xlane.f32.xlu1 %v4517_v40 }
 0x62d   : > { %v4519_v29 = vpop.xlane.xlu1 %4518 }
 0x62e   : > { %v4520_v23 = vmul.f32 0.03125, %v4519_v29  ;;  %v10316_v29 = vld [vmem:[%s12082_s4 + $0x2] ss:$0 sm:$0xff] }
 0x630   : > { %v4521_v18 = vadd.f32 1e-05, %v4520_v23 }
 0x632   : > { %10265 = vrsqrt.f32 %v4521_v18  ;;  %v10317_v18 = vld [vmem:[%s12082_s4 + $0x3] ss:$0 sm:$0xff] }
 0x63c   : > { %v10266_v7 = vpop.eup %10265 }
 0x63d   : > { %v4523_v12 = vmul.f32 %v10266_v7, %v4515_v48 }
 0x63f   : > { %v4530_v33 = vmul.f32 %v8604_v45, %v4523_v12 }
 0x641   : > { %v4537_v9 = vadd.f32 %v8605_v63, %v4530_v33  ;;  %v10318_v63 = vld [vmem:[%s12084_s6 + $0x4] ss:$0 sm:$0xff] }
 0x643   : > { %9435 = vmatmul.mubr.msk.f32.vlgmr.msra.gmra.mrb[50].mxu0 %vm796_vm1, %v4537_v9  ;;  %9446 = vmatmul.mubr.msk.f32.vlgmr.msra.gmra.mrb[46].mxu1 %vm796_vm1, %v4537_v9 }
 0x644   : > { %10025 = vmatpush3.bf16.msra.mxu0 %v10678_v31  ;;  %10031 = vmatpush3.bf16.msra.mxu1 %v10583_v8  ;;  %v11522_v8 = vld [vmem:[%s614_s25] sm:$0xff]  ;;  %v12164_v31 = vld [vmem:[#allocation18_spill] sm:$0xff]  ;;  %s8424_s25 = scalar_lea.sflag [#allocation3], %s604_s0 }
 0x645   : > { %10026 = vmatprep.subr.bf16.mxu0 %v12158_v54  ;;  %10032 = vmatprep.subr.bf16.mxu1 %v12158_v54 }
 0x646   : > { %9456 = vmatprep.mubr.msk.f32.mxu0 %vm10409_vm0, %v12156_v30  ;;  %9467 = vmatprep.mubr.msk.f32.mxu1 %vm10409_vm0, %v12156_v30 }
 0x648   : > { %10028 = vmatpush3.bf16.msra.mxu0 %v10702_v37  ;;  %10034 = vmatpush3.bf16.msra.mxu1 %v10603_v13  ;;  %v12161_v13 = vld [vmem:[#allocation11_spill] sm:$0xff]  ;;  %v12166_v37 = vld [vmem:[#allocation20_spill] sm:$0xff] }
 0x649   : > { %10035 = vmatprep.subr.bf16.mxu0 %v12158_v54  ;;  %10041 = vmatprep.subr.bf16.mxu1 %v12158_v54 }
 0x64b   : > { %9457 = vmatmul.mubr.msk.f32.vlgmr.msra.gmra.mrb[52].mxu0 %vm796_vm1, %v4537_v9  ;;  %9468 = vmatmul.mubr.msk.f32.vlgmr.msra.gmra.mrb[48].mxu1 %vm796_vm1, %v4537_v9 }
 0x64c   : > { %10037 = vmatpush3.bf16.msra.mxu0 %v10726_v43  ;;  %10043 = vmatpush3.bf16.msra.mxu1 %v10634_v20  ;;  %v12162_v20 = vld [vmem:[#allocation16_spill] sm:$0xff]  ;;  %v12168_v43 = vld [vmem:[#allocation22_spill] sm:$0xff] }
 0x64d   : > { %10038 = vmatprep.subr.bf16.mxu0 %v12158_v54  ;;  %10044 = vmatprep.subr.bf16.mxu1 %v12158_v54 }
 0x64e   : > { %9478 = vmatprep.mubr.msk.f32.mxu0 %vm10409_vm0, %v12156_v30  ;;  %9489 = vmatprep.mubr.msk.f32.mxu1 %vm10409_vm0, %v12156_v30 }
 0x650   : > { %10040 = vmatpush3.bf16.msra.mxu0 %v10750_v49  ;;  %10046 = vmatpush3.bf16.msra.mxu1 %v10658_v26  ;;  %v12163_v26 = vld [vmem:[#allocation12_spill] sm:$0xff]  ;;  %v12170_v49 = vld [vmem:[#allocation23_spill] sm:$0xff] }
 0x651   : > { %10047 = vmatprep.subr.bf16.mxu0 %v12158_v54  ;;  %10053 = vmatprep.subr.bf16.mxu1 %v12158_v54 }
 0x653   : > { %9479 = vmatmul.mubr.msk.f32.vlgmr.msra.gmra.mrb[54].mxu0 %vm796_vm1, %v4537_v9  ;;  %9490 = vmatmul.mubr.msk.f32.vlgmr.msra.gmra.mrb[50].mxu1 %vm796_vm1, %v4537_v9 }
 0x654   : > { %10049 = vmatpush3.bf16.msra.mxu0 %v10774_v55  ;;  %10055 = vmatpush3.bf16.msra.mxu1 %v10682_v32  ;;  %v12165_v32 = vld [vmem:[#allocation13_spill] sm:$0xff]  ;;  %v12172_v55 = vld [vmem:[#allocation24_spill] sm:$0xff] }
 0x655   : > { %10050 = vmatprep.subr.bf16.mxu0 %v12158_v54  ;;  %10056 = vmatprep.subr.bf16.mxu1 %v12158_v54 }
 0x656   : > { %9500 = vmatprep.mubr.msk.f32.mxu0 %vm10409_vm0, %v12156_v30  ;;  %9511 = vmatprep.mubr.msk.f32.mxu1 %vm10409_vm0, %v12156_v30 }
 0x658   : > { %10052 = vmatpush3.bf16.msra.mxu0 %v10798_v61  ;;  %10058 = vmatpush3.bf16.msra.mxu1 %v10706_v38  ;;  %v12167_v38 = vld [vmem:[#allocation14_spill] sm:$0xff]  ;;  %v12174_v61 = vld [vmem:[#allocation25_spill] sm:$0xff] }
 0x659   : > { %10059 = vmatprep.subr.bf16.mxu0 %v12158_v54  ;;  %10065 = vmatprep.subr.bf16.mxu1 %v12158_v54 }
 0x65b   : > { %9501 = vmatmul.mubr.msk.f32.vlgmr.msra.gmra.mrb[56].mxu0 %vm796_vm1, %v4537_v9  ;;  %9512 = vmatmul.mubr.msk.f32.vlgmr.msra.gmra.mrb[52].mxu1 %vm796_vm1, %v4537_v9  ;;  %v10319_v9 = vld [vmem:[%s12084_s6 + $0x5] ss:$0 sm:$0xff] }
 0x65c   : > { %10061 = vmatpush3.bf16.msra.mxu0 %v10822_v5  ;;  %10067 = vmatpush3.bf16.msra.mxu1 %v10730_v44  ;;  %v12169_v44 = vld [vmem:[#allocation15_spill] sm:$0xff] }
 0x65d   : > { %10062 = vmatprep.subr.bf16.mxu0 %v12158_v54  ;;  %10068 = vmatprep.subr.bf16.mxu1 %v12158_v54 }
 0x65e   : > { %9522 = vmatprep.mubr.msk.f32.mxu0 %vm10409_vm0, %v12156_v30  ;;  %9533 = vmatprep.mubr.msk.f32.mxu1 %vm10409_vm0, %v12156_v30 }
 0x660   : > { %10064 = vmatpush3.bf16.msra.mxu0 %v10846_v15  ;;  %10070 = vmatpush3.bf16.msra.mxu1 %v10754_v50  ;;  %v12171_v50 = vld [vmem:[#allocation17_spill] sm:$0xff] }
 0x661   : > { %10071 = vmatprep.subr.bf16.mxu0 %v12158_v54  ;;  %10077 = vmatprep.subr.bf16.mxu1 %v12158_v54 }
 0x663   : > { %9523 = vmatmul.mubr.msk.f32.vlgmr.msra.gmra.mrb[58].mxu0 %vm796_vm1, %v11522_v8  ;;  %9534 = vmatmul.mubr.msk.f32.vlgmr.msra.gmra.mrb[54].mxu1 %vm796_vm1, %v11522_v8 }
 0x664   : > { %10073 = vmatpush3.bf16.msra.mxu0 %v10870_v24  ;;  %10079 = vmatpush3.bf16.msra.mxu1 %v10778_v56  ;;  %v12173_v56 = vld [vmem:[#allocation19_spill] sm:$0xff] }
 0x665   : > { %10074 = vmatprep.subr.bf16.mxu0 %v12158_v54  ;;  %10080 = vmatprep.subr.bf16.mxu1 %v12158_v54 }
 0x666   : > { %9544 = vmatprep.mubr.msk.f32.mxu0 %vm10409_vm0, %v12156_v30  ;;  %9555 = vmatprep.mubr.msk.f32.mxu1 %vm10409_vm0, %v12156_v30 }
 0x668   : > { %10076 = vmatpush3.bf16.msra.mxu0 %v10894_v34  ;;  %10082 = vmatpush3.bf16.msra.mxu1 %v10802_v62  ;;  %v12175_v62 = vld [vmem:[#allocation21_spill] sm:$0xff] }
 0x669   : > { %10083 = vmatprep.subr.bf16.mxu0 %v12158_v54  ;;  %10089 = vmatprep.subr.bf16.mxu1 %v12158_v54 }
 0x66b   : > { %9545 = vmatmul.mubr.msk.f32.vlgmr.msra.gmra.mrb[60].mxu0 %vm796_vm1, %v11522_v8  ;;  %9556 = vmatmul.mubr.msk.f32.vlgmr.msra.gmra.mrb[56].mxu1 %vm796_vm1, %v11522_v8 }
 0x66c   : > { %10085 = vmatpush3.bf16.msra.mxu0 %v10918_v42  ;;  %10091 = vmatpush3.bf16.msra.mxu1 %v10826_v6 }
 0x66d   : > { %10086 = vmatprep.subr.bf16.mxu0 %v12158_v54  ;;  %10092 = vmatprep.subr.bf16.mxu1 %v12158_v54 }
 0x66e   : > { %9566 = vmatprep.mubr.msk.f32.mxu0 %vm10409_vm0, %v12156_v30  ;;  %9577 = vmatprep.mubr.msk.f32.mxu1 %vm10409_vm0, %v12156_v30 }
 0x670   : > { %10088 = vmatpush3.bf16.msra.mxu0 %v10942_v52  ;;  %10094 = vmatpush3.bf16.msra.mxu1 %v10850_v16 }
 0x671   : > { %10095 = vmatprep.subr.bf16.mxu0 %v12158_v54  ;;  %10101 = vmatprep.subr.bf16.mxu1 %v12158_v54 }
 0x673   : > { %9567 = vmatmul.mubr.msk.f32.vlgmr.msra.gmra.mrb[62].mxu0 %vm796_vm1, %v11522_v8  ;;  %9578 = vmatmul.mubr.msk.f32.vlgmr.msra.gmra.mrb[58].mxu1 %vm796_vm1, %v11522_v8 }
 0x674   : > { %10097 = vmatpush3.bf16.msra.mxu0 %v10966_v60  ;;  %10103 = vmatpush3.bf16.msra.mxu1 %v10874_v27 }
 0x675   : > { %10098 = vmatprep.subr.bf16.mxu0 %v12158_v54  ;;  %10104 = vmatprep.subr.bf16.mxu1 %v12158_v54 }
 0x676   : > { %9588 = vmatprep.mubr.msk.f32.mxu0 %vm10409_vm0, %v12156_v30  ;;  %9599 = vmatprep.mubr.msk.f32.mxu1 %vm10409_vm0, %v12156_v30 }
 0x678   : > { %10100 = vmatpush3.bf16.msra.mxu0 %v10982_v2  ;;  %10106 = vmatpush3.bf16.msra.mxu1 %v10898_v35 }
 0x679   : > { %10107 = vmatprep.subr.bf16.mxu0 %v12158_v54  ;;  %10113 = vmatprep.subr.bf16.mxu1 %v12158_v54 }
 0x67b   : > { %9589 = vmatmul.mubr.msk.f32.vlgmr.msra.gmra.mrb[64].mxu0 %vm796_vm1, %v11522_v8  ;;  %9600 = vmatmul.mubr.msk.f32.vlgmr.msra.gmra.mrb[60].mxu1 %vm796_vm1, %v11522_v8 }
 0x67c   : > { %10109 = vmatpush3.bf16.msra.mxu0 %v11016_v22  ;;  %10115 = vmatpush3.bf16.msra.mxu1 %v12161_v13 }
 0x67d   : > { %10110 = vmatprep.subr.bf16.mxu0 %v12158_v54  ;;  %10116 = vmatprep.subr.bf16.mxu1 %v12158_v54 }
 0x67e   : > { %9610 = vmatprep.mubr.msk.f32.mxu0 %vm10409_vm0, %v12156_v30  ;;  %9621 = vmatprep.mubr.msk.f32.mxu1 %vm10409_vm0, %v12156_v30 }
 0x680   : > { %10112 = vmatpush3.bf16.msra.mxu0 %v12162_v20  ;;  %10118 = vmatpush3.bf16.msra.mxu1 %v12163_v26  ;;  %v10320_v26 = vld [vmem:[%s12082_s4 + $0x4] ss:$0 sm:$0xff] }
 0x681   : > { %10119 = vmatprep.subr.bf16.mxu0 %v12158_v54  ;;  %10125 = vmatprep.subr.bf16.mxu1 %v12158_v54 }
 0x683   : > { %9611 = vmatmul.mubr.msk.f32.vlgmr.msra.gmra.mrb[66].mxu0 %vm796_vm1, %v11522_v8  ;;  %9622 = vmatmul.mubr.msk.f32.vlgmr.msra.gmra.mrb[62].mxu1 %vm796_vm1, %v11522_v8 }
 0x684   : > { %10121 = vmatpush3.bf16.msra.mxu0 %v12164_v31  ;;  %10127 = vmatpush3.bf16.msra.mxu1 %v12165_v32  ;;  %v10321_v32 = vld [vmem:[%s12082_s4 + $0x5] ss:$0 sm:$0xff] }
 0x685   : > { %10122 = vmatprep.subr.bf16.mxu0 %v12158_v54  ;;  %10128 = vmatprep.subr.bf16.mxu1 %v12158_v54 }
 0x686   : > { %9632 = vmatprep.mubr.msk.f32.mxu0 %vm10409_vm0, %v12156_v30  ;;  %9643 = vmatprep.mubr.msk.f32.mxu1 %vm10409_vm0, %v12156_v30 }
 0x688   : > { %10124 = vmatpush3.bf16.msra.mxu0 %v12166_v37  ;;  %10130 = vmatpush3.bf16.msra.mxu1 %v12167_v38 }
 0x689   : > { %10131 = vmatprep.subr.bf16.mxu0 %v12158_v54  ;;  %10137 = vmatprep.subr.bf16.mxu1 %v12158_v54 }
 0x68b   : > { %9633 = vmatmul.mubr.msk.f32.vlgmr.msra.gmra.mrb[68].mxu0 %vm796_vm1, %v11522_v8  ;;  %9644 = vmatmul.mubr.msk.f32.vlgmr.msra.gmra.mrb[64].mxu1 %vm796_vm1, %v11522_v8 }
 0x68c   : > { %10133 = vmatpush3.bf16.msra.mxu0 %v12168_v43  ;;  %10139 = vmatpush3.bf16.msra.mxu1 %v12169_v44  ;;  %v10322_v44 = vld [vmem:[%s12084_s6 + $0x6] ss:$0 sm:$0xff] }
 0x68d   : > { %10134 = vmatprep.subr.bf16.mxu0 %v12158_v54  ;;  %10140 = vmatprep.subr.bf16.mxu1 %v12158_v54 }
 0x68e   : > { %9654 = vmatprep.mubr.msk.f32.mxu0 %vm10409_vm0, %v12156_v30  ;;  %9665 = vmatprep.mubr.msk.f32.mxu1 %vm10409_vm0, %v12156_v30 }
 0x690   : > { %10136 = vmatpush3.bf16.msra.mxu0 %v12170_v49  ;;  %10142 = vmatpush3.bf16.msra.mxu1 %v12171_v50  ;;  %v10323_v50 = vld [vmem:[%s12084_s6 + $0x7] ss:$0 sm:$0xff] }
 0x691   : > { %10143 = vmatprep.subr.bf16.mxu0 %v12158_v54  ;;  %10149 = vmatprep.subr.bf16.mxu1 %v12158_v54 }
 0x693   : > { %9655 = vmatmul.mubr.msk.f32.vlgmr.msra.gmra.mrb[70].mxu0 %vm796_vm1, %v11522_v8  ;;  %9666 = vmatmul.mubr.msk.f32.vlgmr.msra.gmra.mrb[66].mxu1 %vm796_vm1, %v11522_v8 }
 0x694   : > { %10145 = vmatpush3.bf16.msra.mxu0 %v12172_v55  ;;  %10151 = vmatpush3.bf16.msra.mxu1 %v12173_v56 }
 0x695   : > { %10146 = vmatprep.subr.bf16.mxu0 %v12158_v54  ;;  %10152 = vmatprep.subr.bf16.mxu1 %v12158_v54 }
 0x696   : > { %9676 = vmatprep.mubr.msk.f32.mxu0 %vm10409_vm0, %v12156_v30  ;;  %9687 = vmatprep.mubr.msk.f32.mxu1 %vm10409_vm0, %v12156_v30 }
 0x698   : > { %10148 = vmatpush3.bf16.msra.mxu0 %v12174_v61  ;;  %10154 = vmatpush3.bf16.msra.mxu1 %v12175_v62  ;;  %v10324_v62 = vld [vmem:[%s12082_s4 + $0x6] ss:$0 sm:$0xff] }
 0x699   : > { %9690 = vmatprep.subr.mxu0 %v12156_v30  ;;  %9695 = vmatprep.subr.mxu1 %v12156_v30 }
 0x69b   : > { %9677 = vmatmul.mubr.msk.f32.vlgmr.msra.gmra.mrb[72].mxu0 %vm796_vm1, %v11522_v8  ;;  %9688 = vmatmul.mubr.msk.f32.vlgmr.msra.gmra.mrb[68].mxu1 %vm796_vm1, %v11522_v8 }
 0x69c   : > { %9692 = vmatprep.mubr.msk.f32.mxu0 %vm10409_vm0, %v12156_v30  ;;  %9697 = vmatprep.mubr.msk.f32.mxu1 %vm10409_vm0, %v12156_v30 }
 0x716   : > { %v4607_v5 = vpop.f32.mrb[50].mxu0  ;;  %v4677_v6 = vpop.f32.mrb[46].mxu1 }
 0x717   : > { %v9436_v15 = vpop.f32.mrb[51].mxu0  ;;  %v9447_v16 = vpop.f32.mrb[47].mxu1  ;;  %v4608_v57 = vadd.f32 %v10312_v41, %v4607_v5  ;;  %v4678_v10 = vadd.f32 %v10313_v46, %v4677_v6  ;;  %v10325_v6 = vld [vmem:[%s12082_s4 + $0x7] ss:$0 sm:$0xff] }
 0x71e   : > { %v4747_v24 = vpop.f32.mrb[52].mxu0  ;;  %v4817_v27 = vpop.f32.mrb[48].mxu1 }
 0x71f   : > { %v9458_v34 = vpop.f32.mrb[53].mxu0  ;;  %v9469_v35 = vpop.f32.mrb[49].mxu1  ;;  %v4748_v23 = vadd.f32 %v10316_v29, %v4747_v24  ;;  %v4818_v7 = vadd.f32 %v10317_v18, %v4817_v27  ;;  %v10326_v27 = vld [vmem:[%s12086_s8] ss:$0 sm:$0xff] }
 0x726   : > { %v4887_v42 = vpop.f32.mrb[54].mxu0  ;;  %v4957_v52 = vpop.f32.mrb[50].mxu1 }
 0x727   : > { %v9480_v60 = vpop.f32.mrb[55].mxu0  ;;  %v9491_v2 = vpop.f32.mrb[51].mxu1  ;;  %v4888_v31 = vadd.f32 %v10320_v26, %v4887_v42  ;;  %v4958_v37 = vadd.f32 %v10321_v32, %v4957_v52  ;;  %v10327_v42 = vld [vmem:[%s12086_s8 + $0x1] ss:$0 sm:$0xff] }
 0x72e   : > { %v11646_v22 = vpop.f32.mrb[56].mxu0  ;;  %v11648_v14 = vpop.f32.mrb[52].mxu1 }
 0x72f   : > { %v9502_v58 = vpop.f32.mrb[57].mxu0  ;;  %v9513_v59 = vpop.f32.mrb[53].mxu1  ;;  %v5028_v5 = vadd.f32 %v10324_v62, %v11646_v22  ;;  %v5098_v15 = vadd.f32 %v10325_v6, %v11648_v14 }
 0x736   : > { %v5170_v17 = vpop.f32.mrb[58].mxu0  ;;  %v5240_v0 = vpop.f32.mrb[54].mxu1 }
 0x737   : > { %v5171_v1 = vadd.f32 %v10310_v53, %v5170_v17  ;;  %v5241_v3 = vadd.f32 %v10311_v51, %v5240_v0  ;;  %v9524_v47 = vpop.f32.mrb[59].mxu0  ;;  %v9535_v21 = vpop.f32.mrb[55].mxu1 }
 0x739   : > { %9691 = vmatpush3.xpose.msk.msra.mxu0 %vm2577_vm2, %v5171_v1  ;;  %9696 = vmatpush3.xpose.msk.msra.mxu1 %vm2577_vm2, %v5241_v3 }
 0x73a   : > { %9700 = vmatprep.subr.mxu0 %v12156_v30  ;;  %9705 = vmatprep.subr.mxu1 %v12156_v30 }
 0x73c   : > { %9693 = vmatmul.mubr.msk.f32.vlgmr.msra.gmra.mrb[74].mxu0 %vm2577_vm2, %v4608_v57  ;;  %9698 = vmatmul.mubr.msk.f32.vlgmr.msra.gmra.mrb[70].mxu1 %vm2577_vm2, %v4678_v10 }
 0x73d   : > { %9702 = vmatprep.mubr.msk.f32.mxu0 %vm10409_vm0, %v12156_v30  ;;  %9707 = vmatprep.mubr.msk.f32.mxu1 %vm10409_vm0, %v12156_v30 }
 0x73e   : > { %v5310_v19 = vpop.f32.mrb[60].mxu0  ;;  %v5380_v36 = vpop.f32.mrb[56].mxu1 }
 0x73f   : > { %v5311_v28 = vadd.f32 %v10314_v11, %v5310_v19  ;;  %v5381_v48 = vadd.f32 %v10315_v4, %v5380_v36  ;;  %v9546_v25 = vpop.f32.mrb[61].mxu0  ;;  %v9557_v40 = vpop.f32.mrb[57].mxu1 }
 0x741   : > { %9701 = vmatpush3.xpose.msk.msra.mxu0 %vm2577_vm2, %v5311_v28  ;;  %9706 = vmatpush3.xpose.msk.msra.mxu1 %vm2577_vm2, %v5381_v48 }
 0x742   : > { %9710 = vmatprep.subr.mxu0 %v12156_v30  ;;  %9715 = vmatprep.subr.mxu1 %v12156_v30 }
 0x744   : > { %9703 = vmatmul.mubr.msk.f32.vlgmr.msra.gmra.mrb[76].mxu0 %vm2577_vm2, %v4748_v23  ;;  %9708 = vmatmul.mubr.msk.f32.vlgmr.msra.gmra.mrb[72].mxu1 %vm2577_vm2, %v4818_v7 }
 0x745   : > { %9712 = vmatprep.mubr.msk.f32.mxu0 %vm10409_vm0, %v12156_v30  ;;  %9717 = vmatprep.mubr.msk.f32.mxu1 %vm10409_vm0, %v12156_v30 }
 0x746   : > { %v5450_v45 = vpop.f32.mrb[62].mxu0  ;;  %v5520_v12 = vpop.f32.mrb[58].mxu1 }
 0x747   : > { %v5451_v33 = vadd.f32 %v10318_v63, %v5450_v45  ;;  %v5521_v8 = vadd.f32 %v10319_v9, %v5520_v12  ;;  %v9568_v13 = vpop.f32.mrb[63].mxu0  ;;  %v9579_v20 = vpop.f32.mrb[59].mxu1 }
 0x749   : > { %9711 = vmatpush3.xpose.msk.msra.mxu0 %vm2577_vm2, %v5451_v33  ;;  %9716 = vmatpush3.xpose.msk.msra.mxu1 %vm2577_vm2, %v5521_v8 }
 0x74a   : > { %9720 = vmatprep.subr.mxu0 %v12156_v30  ;;  %9725 = vmatprep.subr.mxu1 %v12156_v30 }
 0x74c   : > { %9713 = vmatmul.mubr.msk.f32.vlgmr.msra.gmra.mrb[78].mxu0 %vm2577_vm2, %v4888_v31  ;;  %9718 = vmatmul.mubr.msk.f32.vlgmr.msra.gmra.mrb[74].mxu1 %vm2577_vm2, %v4958_v37 }
 0x74d   : > { %9722 = vmatprep.mubr.msk.f32.mxu0 %vm10409_vm0, %v12156_v30  ;;  %9727 = vmatprep.mubr.msk.f32.mxu1 %vm10409_vm0, %v12156_v30 }
 0x74e   : > { %v5590_v38 = vpop.f32.mrb[64].mxu0  ;;  %v5660_v43 = vpop.f32.mrb[60].mxu1 }
 0x74f   : > { %v5591_v49 = vadd.f32 %v10322_v44, %v5590_v38  ;;  %v5661_v55 = vadd.f32 %v10323_v50, %v5660_v43  ;;  %v9590_v56 = vpop.f32.mrb[65].mxu0  ;;  %v9601_v61 = vpop.f32.mrb[61].mxu1 }
 0x751   : > { %9721 = vmatpush3.xpose.msk.msra.mxu0 %vm2577_vm2, %v5591_v49  ;;  %9726 = vmatpush3.xpose.msk.msra.mxu1 %vm2577_vm2, %v5661_v55 }
 0x752   : > { %9730 = vmatprep.subr.mxu0 %v12156_v30  ;;  %9735 = vmatprep.subr.mxu1 %v12156_v30 }
 0x754   : > { %9723 = vmatmul.mubr.msk.f32.vlgmr.msra.gmra.mrb[80].mxu0 %vm2577_vm2, %v5028_v5  ;;  %9728 = vmatmul.mubr.msk.f32.vlgmr.msra.gmra.mrb[76].mxu1 %vm2577_vm2, %v5098_v15 }
 0x755   : > { %9732 = vmatprep.mubr.msk.f32.mxu0 %vm10409_vm0, %v12156_v30  ;;  %9737 = vmatprep.mubr.msk.f32.mxu1 %vm10409_vm0, %v12156_v30 }
 0x756   : > { %v5730_v16 = vpop.f32.mrb[66].mxu0  ;;  %v5800_v24 = vpop.f32.mrb[62].mxu1 }
 0x757   : > { %v5731_v34 = vadd.f32 %v10326_v27, %v5730_v16  ;;  %v9612_v35 = vpop.f32.mrb[67].mxu0  ;;  %v5801_v52 = vadd.f32 %v10327_v42, %v5800_v24  ;;  %v9623_v60 = vpop.f32.mrb[63].mxu1 }
 0x759   : > { %9731 = vmatpush3.msra.mxu0 %v5731_v34  ;;  %9736 = vmatpush3.msra.mxu1 %v5801_v52 }
 0x75a   : > { %9740 = vmatprep.subr.mxu0 %v12156_v30  ;;  %9745 = vmatprep.subr.mxu1 %v12156_v30 }
 0x75e   : > { %v11748_v2 = vpop.f32.mrb[68].mxu0  ;;  %v11750_v22 = vpop.f32.mrb[64].mxu1 }
 0x75f   : > { %v9634_v14 = vpop.f32.mrb[69].mxu0  ;;  %v9645_v58 = vpop.f32.mrb[65].mxu1 }
 0x766   : > { %v11752_v59 = vpop.f32.mrb[70].mxu0  ;;  %v11754_v17 = vpop.f32.mrb[66].mxu1 }
 0x767   : > { %v9656_v0 = vpop.f32.mrb[71].mxu0  ;;  %v9667_v53 = vpop.f32.mrb[67].mxu1 }
 0x76e   : > { %v11756_v1 = vpop.f32.mrb[72].mxu0  ;;  %v11758_v51 = vpop.f32.mrb[68].mxu1 }
 0x76f   : > { %v9678_v3 = vpop.f32.mrb[73].mxu0  ;;  %v9689_v47 = vpop.f32.mrb[69].mxu1 }
 0x80f   : > { %v6296_v21 = vpop.f32.mrb[74].mxu0  ;;  %v6372_v41 = vpop.f32.mrb[70].mxu1 }
 0x810   : > { %v6832_v57 = vmul.f32 0.5, %v6296_v21  ;;  %v6833_v46 = vmul.f32 0.5, %v6372_v41  ;;  %v9694_v10 = vpop.f32.mrb[75].mxu0  ;;  %v9699_v19 = vpop.f32.mrb[71].mxu1 }
 0x812   : > { %v6843_v36 = vsel %vm3205_vm4, %v6833_v46, -inf  ;;  %v6840_v11 = vsel %vm3205_vm4, %v6832_v57, -inf }
 0x813   : > { %6844 = vmax.xlane.f32.xlu1 %v6843_v36  ;;  %6841 = vmax.xlane.f32.xlu0 %v6840_v11 }
 0x817   : > { %v6448_v28 = vpop.f32.mrb[76].mxu0  ;;  %v6524_v4 = vpop.f32.mrb[72].mxu1 }
 0x818   : > { %v6834_v48 = vmul.f32 0.5, %v6448_v28  ;;  %v6835_v25 = vmul.f32 0.5, %v6524_v4  ;;  %v9704_v40 = vpop.f32.mrb[77].mxu0  ;;  %v9709_v29 = vpop.f32.mrb[73].mxu1 }
 0x81a   : > { %v6849_v23 = vsel %vm3205_vm4, %v6835_v25, -inf  ;;  %v6846_v18 = vsel %vm3205_vm4, %v6834_v48, -inf }
 0x81b   : > { %6850 = vmax.xlane.f32.xlu1 %v6849_v23  ;;  %6847 = vmax.xlane.f32.xlu0 %v6846_v18 }
 0x81f   : > { %v6600_v7 = vpop.f32.mrb[78].mxu0  ;;  %v6676_v45 = vpop.f32.mrb[74].mxu1 }
 0x820   : > { %v6836_v12 = vmul.f32 0.5, %v6600_v7  ;;  %v6837_v63 = vmul.f32 0.5, %v6676_v45  ;;  %v9714_v33 = vpop.f32.mrb[79].mxu0  ;;  %v9719_v9 = vpop.f32.mrb[75].mxu1 }
 0x822   : > { %v6855_v8 = vsel %vm3205_vm4, %v6837_v63, -inf  ;;  %v6852_v13 = vsel %vm3205_vm4, %v6836_v12, -inf }
 0x823   : > { %6856 = vmax.xlane.f32.xlu1 %v6855_v8  ;;  %6853 = vmax.xlane.f32.xlu0 %v6852_v13 }
 0x827   : > { %v6752_v20 = vpop.f32.mrb[80].mxu0  ;;  %v6828_v26 = vpop.f32.mrb[76].mxu1 }
 0x828   : > { %v6838_v31 = vmul.f32 0.5, %v6752_v20  ;;  %v6839_v32 = vmul.f32 0.5, %v6828_v26  ;;  %v9724_v37 = vpop.f32.mrb[81].mxu0  ;;  %v9729_v38 = vpop.f32.mrb[77].mxu1  ;;  %v10328_v20 = vld [vmem:[%s12086_s8 + $0x3] ss:$0 sm:$0xff] }
 0x829   : > { %v5941_v26 = vadd.f32 %v10328_v20, %v11750_v22 }
 0x82a   : > { %v6861_v43 = vsel %vm3205_vm4, %v6839_v32, -inf  ;;  %v6858_v44 = vsel %vm3205_vm4, %v6838_v31, -inf }
 0x82b   : > { %6862 = vmax.xlane.f32.xlu1 %v6861_v43  ;;  %6859 = vmax.xlane.f32.xlu0 %v6858_v44 }
 0x8a0   : > { %v6845_v49 = vpop.xlane.xlu1 %6844  ;;  %v6842_v50 = vpop.xlane.xlu0 %6841 }
 0x8a1   : > { %v6865_v55 = vsub.f32 %v6833_v46, %v6845_v49  ;;  %v6864_v56 = vsub.f32 %v6832_v57, %v6842_v50  ;;  %v10330_v49 = vld [vmem:[%s12086_s8 + $0x5] ss:$0 sm:$0xff] }
 0x8a2   : > { %v6081_v50 = vadd.f32 %v10330_v49, %v11754_v17 }
 0x8a3   : > { %v6874_v61 = vmul.f32 1.442695, %v6865_v55  ;;  %v6872_v62 = vmul.f32 1.442695, %v6864_v56  ;;  %v10331_v56 = vld [vmem:[%s12086_s8 + $0x4] ss:$0 sm:$0xff] }
 0x8a5   : > { %10267 = vpow2.f32 %v6874_v61  ;;  %v6011_v61 = vadd.f32 %v10331_v56, %v11752_v59 }
 0x8a6   : > { %10269 = vpow2.f32 %v6872_v62 }
 0x8a8   : > { %v6851_v5 = vpop.xlane.xlu1 %6850  ;;  %v6848_v6 = vpop.xlane.xlu0 %6847 }
 0x8a9   : > { %v6867_v15 = vsub.f32 %v6835_v25, %v6851_v5  ;;  %v6866_v16 = vsub.f32 %v6834_v48, %v6848_v6 }
 0x8ab   : > { %v6878_v24 = vmul.f32 1.442695, %v6867_v15  ;;  %v6876_v27 = vmul.f32 1.442695, %v6866_v16  ;;  %v10332_v15 = vld [vmem:[%s12086_s8 + $0x7] ss:$0 sm:$0xff] }
 0x8ac   : > { %v6221_v16 = vadd.f32 %v10332_v15, %v11758_v51 }
 0x8ad   : > { %10271 = vpow2.f32 %v6878_v24 }
 0x8ae   : > { %10273 = vpow2.f32 %v6876_v27  ;;  %v10333_v27 = vld [vmem:[%s12086_s8 + $0x6] ss:$0 sm:$0xff] }
 0x8af   : > { %v10268_v34 = vpop.eup %10267 }
 0x8b0   : > { %v10270_v35 = vpop.eup %10269  ;;  %v6857_v42 = vpop.xlane.xlu1 %6856  ;;  %v6891_v60 = vsel %vm3205_vm4, %v10268_v34, 0.0 }
 0x8b1   : > { %v6854_v52 = vpop.xlane.xlu0 %6853  ;;  %v6869_v14 = vsub.f32 %v6837_v63, %v6857_v42  ;;  %6892 = vadd.xlane.f32.xlu1 %v6891_v60  ;;  %v6888_v0 = vsel %vm3205_vm4, %v10270_v35, 0.0  ;;  %v10335_v60 = vld [vmem:[%s12087_s9] sm:$0xf] }
 0x8b2   : > { %v6868_v58 = vsub.f32 %v6836_v12, %v6854_v52  ;;  %6889 = vadd.xlane.f32.xlu0 %v6888_v0  ;;  %v10334_v52 = vld [vmem:[%s12087_s9 + $0x4] sm:$0xf] }
 0x8b3   : > { %v6882_v53 = vmul.f32 1.442695, %v6869_v14 }
 0x8b4   : > { %v6880_v3 = vmul.f32 1.442695, %v6868_v58 }
 0x8b5   : > { %10275 = vpow2.f32 %v6882_v53 }
 0x8b6   : > { %10277 = vpow2.f32 %v6880_v3  ;;  %v10336_v3 = vld [vmem:[%s12087_s9 + $0xc] sm:$0xf] }
 0x8b7   : > { %v10272_v47 = vpop.eup %10271 }
 0x8b8   : > { %v10274_v21 = vpop.eup %10273  ;;  %v6863_v41 = vpop.xlane.xlu1 %6862  ;;  %v6897_v46 = vsel %vm3205_vm4, %v10272_v47, 0.0 }
 0x8b9   : > { %v6860_v57 = vpop.xlane.xlu0 %6859  ;;  %v6871_v10 = vsub.f32 %v6839_v32, %v6863_v41  ;;  %6898 = vadd.xlane.f32.xlu1 %v6897_v46  ;;  %v6894_v36 = vsel %vm3205_vm4, %v10274_v21, 0.0  ;;  %v10329_v32 = vld [vmem:[%s12086_s8 + $0x2] ss:$0 sm:$0xff] }
 0x8ba   : > { %v6870_v19 = vsub.f32 %v6838_v31, %v6860_v57  ;;  %6895 = vadd.xlane.f32.xlu0 %v6894_v36  ;;  %v5871_v37 = vadd.f32 %v10329_v32, %v11748_v2 }
 0x8bb   : > { %v6886_v11 = vmul.f32 1.442695, %v6871_v10  ;;  %v10338_v10 = vld [vmem:[%s12087_s9 + $0x14] sm:$0xf] }
 0x8bc   : > { %v6884_v28 = vmul.f32 1.442695, %v6870_v19  ;;  %v10339_v19 = vld [vmem:[%s12087_s9 + $0x10] sm:$0xf] }
 0x8bd   : > { %10279 = vpow2.f32 %v6886_v11 }
 0x8be   : > { %10281 = vpow2.f32 %v6884_v28 }
 0x8bf   : > { %v10276_v4 = vpop.eup %10275 }
 0x8c0   : > { %v11772_v48 = vpop.eup %10277  ;;  %v6903_v25 = vsel %vm3205_vm4, %v10276_v4, 0.0 }
 0x8c1   : > { %6904 = vadd.xlane.f32.xlu1 %v6903_v25  ;;  %v6900_v40 = vsel %vm3205_vm4, %v11772_v48, 0.0  ;;  %v10341_v25 = vld [vmem:[%s12087_s9 + $0x18] sm:$0xf] }
 0x8c2   : > { %6901 = vadd.xlane.f32.xlu0 %v6900_v40 }
 0x8c7   : > { %v11777_v29 = vpop.eup %10279 }
 0x8c8   : > { %v11779_v23 = vpop.eup %10281  ;;  %v6909_v18 = vsel %vm3205_vm4, %v11777_v29, 0.0 }
 0x8c9   : > { %6910 = vadd.xlane.f32.xlu1 %v6909_v18  ;;  %v6906_v7 = vsel %vm3205_vm4, %v11779_v23, 0.0 }
 0x8ca   : > { %6907 = vadd.xlane.f32.xlu0 %v6906_v7 }
 0x93e   : > { %v6893_v45 = vpop.xlane.xlu1 %6892 }
 0x93f   : > { %10283 = vrcp.f32 %v6893_v45  ;;  %v6890_v12 = vpop.xlane.xlu0 %6889 }
 0x940   : > { %10285 = vrcp.f32 %v6890_v12 }
 0x946   : > { %v6899_v63 = vpop.xlane.xlu1 %6898 }
 0x947   : > { %10287 = vrcp.f32 %v6899_v63  ;;  %v6896_v33 = vpop.xlane.xlu0 %6895 }
 0x948   : > { %10289 = vrcp.f32 %v6896_v33 }
 0x949   : > { %v10284_v9 = vpop.eup %10283 }
 0x94a   : > { %v10286_v8 = vpop.eup %10285  ;;  %v6915_v13 = vmul.f32 %v10284_v9, %v10268_v34  ;;  %v6151_v34 = vadd.f32 %v10333_v27, %v11756_v1 }
 0x94b   : > { %v6913_v31 = vmul.f32 %v10286_v8, %v10270_v35 }
 0x94c   : > { %9738 = vmatmul.mubr.msk.f32.vlgmr.msra.gmra.mrb[78].mxu1 %vm3205_vm4, %v6915_v13 }
 0x94d   : > { %9733 = vmatmul.mubr.msk.f32.vlgmr.msra.gmra.mrb[82].mxu0 %vm3205_vm4, %v6913_v31  ;;  %9746 = vmatpush3.msra.mxu1 %v5941_v26 }
 0x94e   : > { %9741 = vmatpush3.msra.mxu0 %v5871_v37  ;;  %v6905_v38 = vpop.xlane.xlu1 %6904  ;;  %9742 = vmatprep.mubr.msk.f32.mxu0 %vm10409_vm0, %v12156_v30 }
 0x94f   : > { %10291 = vrcp.f32 %v6905_v38  ;;  %v6902_v43 = vpop.xlane.xlu0 %6901  ;;  %9747 = vmatprep.mubr.msk.f32.mxu1 %vm10409_vm0, %v12156_v30  ;;  %9750 = vmatprep.subr.mxu0 %v12156_v30 }
 0x950   : > { %10293 = vrcp.f32 %v6902_v43  ;;  %9755 = vmatprep.subr.mxu1 %v12156_v30 }
 0x951   : > { %v10288_v2 = vpop.eup %10287 }
 0x952   : > { %v10290_v22 = vpop.eup %10289  ;;  %v6919_v44 = vmul.f32 %v10288_v2, %v10272_v47  ;;  %v10337_v47 = vld [vmem:[%s12087_s9 + $0x8] sm:$0xf] }
 0x953   : > { %v6917_v55 = vmul.f32 %v10290_v22, %v10274_v21 }
 0x954   : > { %9748 = vmatmul.mubr.msk.f32.vlgmr.msra.gmra.mrb[80].mxu1 %vm3205_vm4, %v6919_v44 }
 0x955   : > { %9743 = vmatmul.mubr.msk.f32.vlgmr.msra.gmra.mrb[84].mxu0 %vm3205_vm4, %v6917_v55  ;;  %9756 = vmatpush3.msra.mxu1 %v6081_v50 }
 0x956   : > { %9751 = vmatpush3.msra.mxu0 %v6011_v61  ;;  %v6911_v62 = vpop.xlane.xlu1 %6910  ;;  %9752 = vmatprep.mubr.msk.f32.mxu0 %vm10409_vm0, %v12156_v30 }
 0x957   : > { %10295 = vrcp.f32 %v6911_v62  ;;  %v6908_v5 = vpop.xlane.xlu0 %6907  ;;  %9757 = vmatprep.mubr.msk.f32.mxu1 %vm10409_vm0, %v12156_v30  ;;  %9760 = vmatprep.subr.mxu0 %v12156_v30 }
 0x958   : > { %10297 = vrcp.f32 %v6908_v5  ;;  %9765 = vmatprep.subr.mxu1 %v12156_v30 }
 0x959   : > { %v10292_v59 = vpop.eup %10291 }
 0x95a   : > { %v10294_v17 = vpop.eup %10293  ;;  %v6923_v6 = vmul.f32 %v10292_v59, %v10276_v4 }
 0x95b   : > { %v6921_v24 = vmul.f32 %v10294_v17, %v11772_v48  ;;  %v10340_v48 = vld [vmem:[%s12087_s9 + $0x1c] sm:$0xf] }
 0x95c   : > { %9758 = vmatmul.mubr.msk.f32.vlgmr.msra.gmra.mrb[82].mxu1 %vm3205_vm4, %v6923_v6 }
 0x95d   : > { %9753 = vmatmul.mubr.msk.f32.vlgmr.msra.gmra.mrb[86].mxu0 %vm3205_vm4, %v6921_v24  ;;  %9766 = vmatpush3.msra.mxu1 %v6221_v16 }
 0x95e   : > { %9761 = vmatpush3.msra.mxu0 %v6151_v34  ;;  %9762 = vmatprep.mubr.msk.f32.mxu0 %vm10409_vm0, %v12156_v30 }
 0x95f   : > { %9767 = vmatprep.mubr.msk.f32.mxu1 %vm10409_vm0, %v12156_v30  ;;  %9770 = vmatprep.subr.mxu0 %v12156_v30 }
 0x960   : > { %9775 = vmatprep.subr.mxu1 %v12156_v30 }
 0x961   : > { %v10296_v51 = vpop.eup %10295 }
 0x962   : > { %v10298_v35 = vpop.eup %10297  ;;  %v6927_v1 = vmul.f32 %v10296_v51, %v11777_v29 }
 0x963   : > { %v6925_v42 = vmul.f32 %v10298_v35, %v11779_v23 }
 0x964   : > { %9768 = vmatmul.mubr.msk.f32.vlgmr.msra.gmra.mrb[84].mxu1 %vm3205_vm4, %v6927_v1 }
 0x965   : > { %9763 = vmatmul.mubr.msk.f32.vlgmr.msra.gmra.mrb[88].mxu0 %vm3205_vm4, %v6925_v42  ;;  %9776 = vmatpush3.msk.msra.mxu1 %vm3881_vm5, %v10334_v52 }
 0x966   : > { %9771 = vmatpush3.msk.msra.mxu0 %vm3881_vm5, %v10335_v60  ;;  %9772 = vmatprep.mubr.msk.f32.mxu0 %vm10409_vm0, %v12156_v30 }
 0x967   : > { %9777 = vmatprep.mubr.msk.f32.mxu1 %vm10409_vm0, %v12156_v30  ;;  %9780 = vmatprep.subr.mxu0 %v12156_v30 }
 0x968   : > { %9785 = vmatprep.subr.mxu1 %v12156_v30 }
 0xa1f   : > { %v7070_v14 = vpop.f32.mrb[78].mxu1 }
 0xa20   : > { %v6997_v58 = vpop.f32.mrb[82].mxu0  ;;  %v9739_v0 = vpop.f32.mrb[79].mxu1  ;;  %9778 = vmatmul.mubr.msk.f32.vlgmr.msra.gmra.mrb[86].mxu1 %vm2577_vm2, %v7070_v14  ;;  %v8128_v14 = vld [vmem:[%s12091_s13] sm:$0xff] }
 0xa21   : > { %v9734_v53 = vpop.f32.mrb[83].mxu0  ;;  %9773 = vmatmul.mubr.msk.f32.vlgmr.msra.gmra.mrb[90].mxu0 %vm2577_vm2, %v6997_v58  ;;  %9786 = vmatpush3.msk.msra.mxu1 %vm3881_vm5, %v10336_v3  ;;  %v8129_v58 = vld [vmem:[%s12091_s13 + $0x8] sm:$0xff]  ;;  %v8130_v0 = vld [vmem:[%s12091_s13 + $0x10] sm:$0xff] }
 0xa22   : > { %9781 = vmatpush3.msk.msra.mxu0 %vm3881_vm5, %v10337_v47  ;;  %9782 = vmatprep.mubr.msk.f32.mxu0 %vm10409_vm0, %v12156_v30  ;;  %v8131_v53 = vld [vmem:[%s12091_s13 + $0x18] sm:$0xff]  ;;  %v8217_v47 = vld [vmem:[%s12093_s15] sm:$0xff] }
 0xa23   : > { %9787 = vmatprep.mubr.msk.f32.mxu1 %vm10409_vm0, %v12156_v30  ;;  %9790 = vmatprep.subr.mxu0 %v12156_v30  ;;  %v10159_v3 = vpack.c.bf16 %v8131_v53, %v8130_v0 }
 0xa24   : > { %9795 = vmatprep.subr.mxu1 %v12156_v30 }
 0xa27   : > { %v7216_v21 = vpop.f32.mrb[80].mxu1 }
 0xa28   : > { %v7143_v41 = vpop.f32.mrb[84].mxu0  ;;  %v9749_v57 = vpop.f32.mrb[81].mxu1  ;;  %9788 = vmatmul.mubr.msk.f32.vlgmr.msra.gmra.mrb[88].mxu1 %vm2577_vm2, %v7216_v21  ;;  %v8218_v21 = vld [vmem:[%s12093_s15 + $0x8] sm:$0xff] }
 0xa29   : > { %v9744_v46 = vpop.f32.mrb[85].mxu0  ;;  %9783 = vmatmul.mubr.msk.f32.vlgmr.msra.gmra.mrb[92].mxu0 %vm2577_vm2, %v7143_v41  ;;  %9796 = vmatpush3.msk.msra.mxu1 %vm3881_vm5, %v10338_v10  ;;  %v8219_v41 = vld [vmem:[%s12093_s15 + $0x10] sm:$0xff]  ;;  %v10162_v57 = vpack.c.bf16 %v8218_v21, %v8217_v47 }
 0xa2a   : > { %9791 = vmatpush3.msk.msra.mxu0 %vm3881_vm5, %v10339_v19  ;;  %9792 = vmatprep.mubr.msk.f32.mxu0 %vm10409_vm0, %v12156_v30  ;;  %v8220_v46 = vld [vmem:[%s12093_s15 + $0x18] sm:$0xff]  ;;  %v8221_v19 = vld [vmem:[%s12093_s15 + $0x20] sm:$0xff] }
 0xa2b   : > { %9797 = vmatprep.mubr.msk.f32.mxu1 %vm10409_vm0, %v12156_v30  ;;  %9800 = vmatprep.subr.mxu0 %v12156_v30  ;;  %v10165_v10 = vpack.c.bf16 %v8220_v46, %v8219_v41 }
 0xa2c   : > { %9805 = vmatprep.subr.mxu1 %v12156_v30 }
 0xa2f   : > { %v7362_v36 = vpop.f32.mrb[82].mxu1 }
 0xa30   : > { %v7289_v11 = vpop.f32.mrb[86].mxu0  ;;  %v9759_v28 = vpop.f32.mrb[83].mxu1  ;;  %9798 = vmatmul.mubr.msk.f32.vlgmr.msra.gmra.mrb[90].mxu1 %vm2577_vm2, %v7362_v36  ;;  %v8222_v36 = vld [vmem:[%s12093_s15 + $0x28] sm:$0xff] }
 0xa31   : > { %v9754_v4 = vpop.f32.mrb[87].mxu0  ;;  %9793 = vmatmul.mubr.msk.f32.vlgmr.msra.gmra.mrb[94].mxu0 %vm2577_vm2, %v7289_v11  ;;  %9806 = vmatpush3.msk.msra.mxu1 %vm3881_vm5, %v10340_v48  ;;  %v10168_v11 = vpack.c.bf16 %v8222_v36, %v8221_v19 }
 0xa32   : > { %9801 = vmatpush3.msk.msra.mxu0 %vm3881_vm5, %v10341_v25  ;;  %9802 = vmatprep.mubr.msk.f32.mxu0 %vm10409_vm0, %v12156_v30 }
 0xa33   : > { %9807 = vmatprep.mubr.msk.f32.mxu1 %vm10409_vm0, %v12156_v30  ;;  %10155 = vmatprep.subr.bf16.mxu0 %v12158_v54 }
 0xa34   : > { %10161 = vmatprep.subr.bf16.mxu1 %v12158_v54 }
 0xa37   : > { %v7508_v40 = vpop.f32.mrb[84].mxu1 }
 0xa38   : > { %v7435_v29 = vpop.f32.mrb[88].mxu0  ;;  %v9769_v23 = vpop.f32.mrb[85].mxu1  ;;  %9808 = vmatmul.mubr.msk.f32.vlgmr.msra.gmra.mrb[92].mxu1 %vm2577_vm2, %v7508_v40 }
 0xa39   : > { %v9764_v18 = vpop.f32.mrb[89].mxu0  ;;  %9803 = vmatmul.mubr.msk.f32.vlgmr.msra.gmra.mrb[96].mxu0 %vm2577_vm2, %v7435_v29  ;;  %9853 = vmatprep.mubr.msk.f32.mxu1 %vm10409_vm0, %v12156_v30  ;;  %v11955_v29 = vld [vmem:[%s12089_s11] ss:$0 sm:$0xff] }
 0xa3a   : > { %9818 = vmatprep.mubr.msk.f32.mxu0 %vm10409_vm0, %v12156_v30  ;;  %10163 = vmatpush3.bf16.msra.mxu1 %v10162_v57  ;;  %v11961_v18 = vld [vmem:[%s12090_s12] ss:$0 sm:$0xff] }
 0xa3b   : > { %10164 = vmatprep.subr.bf16.mxu1 %v12158_v54  ;;  %v8673_v57 = vld [vmem:[%s12096_s18] ss:$0 sm:$0xff] }
 0xa3e   : > { %10166 = vmatpush3.bf16.msra.mxu1 %v10165_v10 }
 0xa3f   : > { %10167 = vmatprep.subr.bf16.mxu1 %v12158_v54 }
 0xa42   : > { %10169 = vmatpush3.bf16.msra.mxu1 %v10168_v11 }
 0xa43   : > { %10170 = vmatprep.subr.bf16.mxu1 %v12158_v54 }
 0xaf3   : > { %v7654_v7 = vpop.f32.mrb[86].mxu1 }
 0xaf4   : > { %v7581_v45 = vpop.f32.mrb[90].mxu0  ;;  %v8097_v12 = vsel %vm796_vm1, %v7654_v7, 0.0  ;;  %v9779_v63 = vpop.f32.mrb[87].mxu1 }
 0xaf5   : > { %v8096_v33 = vsel %vm796_vm1, %v7581_v45, 0.0  ;;  %v9774_v9 = vpop.f32.mrb[91].mxu0  ;;  %v8223_v45 = vld [vmem:[%s12093_s15 + $0x30] sm:$0xff] }
 0xaf6   : > { %v8098_v8 = vadd.f32 %v8097_v12, %v8096_v33  ;;  %v8224_v12 = vld [vmem:[%s12093_s15 + $0x38] sm:$0xff]  ;;  %v8225_v33 = vld [vmem:[%s12093_s15 + $0x40] sm:$0xff] }
 0xaf7   : > { %v10171_v63 = vpack.c.bf16 %v8224_v12, %v8223_v45 }
 0xaf9   : > { %10172 = vmatpush3.bf16.msra.mxu1 %v10171_v63 }
 0xafa   : > { %10173 = vmatprep.subr.bf16.mxu1 %v12158_v54 }
 0xafb   : > { %v7800_v13 = vpop.f32.mrb[88].mxu1 }
 0xafc   : > { %v7727_v20 = vpop.f32.mrb[92].mxu0  ;;  %v9789_v26 = vpop.f32.mrb[89].mxu1  ;;  %v8101_v38 = vsel %vm796_vm1, %v7800_v13, 0.0  ;;  %v8228_v13 = vld [vmem:[%s12093_s15 + $0x58] sm:$0xff] }
 0xafd   : > { %v8099_v31 = vsel %vm796_vm1, %v7727_v20, 0.0  ;;  %v9784_v32 = vpop.f32.mrb[93].mxu0  ;;  %v8229_v26 = vld [vmem:[%s12093_s15 + $0x60] sm:$0xff] }
 0xafe   : > { %v8100_v37 = vadd.f32 %v8099_v31, %v8098_v8  ;;  %v8227_v8 = vld [vmem:[%s12093_s15 + $0x50] sm:$0xff]  ;;  %v8230_v31 = vld [vmem:[%s12093_s15 + $0x68] sm:$0xff] }
 0xaff   : > { %v10177_v20 = vpack.c.bf16 %v8228_v13, %v8227_v8  ;;  %v10180_v32 = vpack.c.bf16 %v8230_v31, %v8229_v26 }
 0xb00   : > { %v8102_v43 = vadd.f32 %v8101_v38, %v8100_v37  ;;  %v8231_v37 = vld [vmem:[%s12093_s15 + $0x70] sm:$0xff]  ;;  %v8232_v38 = vld [vmem:[%s12093_s15 + $0x78] sm:$0xff] }
 0xb03   : > { %v7946_v2 = vpop.f32.mrb[90].mxu1 }
 0xb04   : > { %v7873_v22 = vpop.f32.mrb[94].mxu0  ;;  %v9799_v44 = vpop.f32.mrb[91].mxu1  ;;  %v8105_v56 = vsel %vm796_vm1, %v7946_v2, 0.0  ;;  %v8670_v2 = vld [vmem:[%s12092_s14] ss:$0 sm:$0xff] }
 0xb05   : > { %v8103_v49 = vsel %vm796_vm1, %v7873_v22, 0.0  ;;  %v9794_v50 = vpop.f32.mrb[95].mxu0 }
 0xb06   : > { %v8104_v55 = vadd.f32 %v8103_v49, %v8102_v43  ;;  %v10183_v43 = vpack.c.bf16 %v8232_v38, %v8231_v37 }
 0xb08   : > { %v8106_v61 = vadd.f32 %v8105_v56, %v8104_v55 }
 0xb0b   : > { %v8092_v62 = vpop.f32.mrb[92].mxu1 }
 0xb0c   : > { %v8019_v5 = vpop.f32.mrb[96].mxu0  ;;  %v9809_v59 = vpop.f32.mrb[93].mxu1  ;;  %v8109_v16 = vsel %vm796_vm1, %v8092_v62, 0.0 }
 0xb0d   : > { %v8107_v17 = vsel %vm796_vm1, %v8019_v5, 0.0  ;;  %v9804_v6 = vpop.f32.mrb[97].mxu0  ;;  %v8672_v5 = vld [vmem:[%s12094_s16] ss:$0 sm:$0xff] }
 0xb0e   : > { %v8108_v15 = vadd.f32 %v8107_v17, %v8106_v61 }
 0xb10   : > { %v8110_v24 = vadd.f32 %v8109_v16, %v8108_v15 }
 0xb12   : > { %v8111_v27 = vadd.f32 %v11451_v39, %v8110_v24  ;;  %v10156_v39 = vpack.c.bf16 %v8129_v58, %v8128_v14  ;;  %v8329_v14 = vld [vmem:[%s12095_s17 + $0x18] sm:$0xff] }
 0xb14   : > { %v8112_v34 = vadd.f32 %v8111_v27, %v8111_v27  ;;  %10157 = vmatpush3.bf16.msra.mxu0 %v10156_v39 }
 0xb15   : > { %10158 = vmatprep.subr.bf16.mxu0 %v12158_v54 }
 0xb16   : > { %v8113_v51 = vsel %vm796_vm1, %v8112_v34, 0.0 }
 0xb17   : > { %8114 = vadd.xlane.f32.xlu0 %v8113_v51 }
 0xb18   : > { %10160 = vmatpush3.bf16.msra.mxu0 %v10159_v3 }
 0xb19   : > { %10185 = vmatprep.subr.bf16.mxu0 %v12158_v54 }
 0xba4   : > { %v8115_v35 = vpop.xlane.xlu0 %8114 }
 0xba5   : > { %v8116_v1 = vmul.f32 0.03125, %v8115_v35 }
 0xba7   : > { %v8117_v42 = vsub.f32 %v8112_v34, %v8116_v1  ;;  %v8326_v1 = vld [vmem:[%s12095_s17] sm:$0xff] }
 0xba9   : > { %v8118_v52 = vmul.f32 %v8117_v42, %v8117_v42 }
 0xbab   : > { %v8119_v60 = vsel %vm796_vm1, %v8118_v52, 0.0 }
 0xbac   : > { %8120 = vadd.xlane.f32.xlu1 %v8119_v60  ;;  %v8328_v60 = vld [vmem:[%s12095_s17 + $0x10] sm:$0xff] }
 0xbad   : > { %v10189_v58 = vpack.c.bf16 %v8329_v14, %v8328_v60 }
 0xc39   : > { %v8121_v28 = vpop.xlane.xlu1 %8120 }
 0xc3a   : > { %v8122_v4 = vmul.f32 0.03125, %v8121_v28 }
 0xc3c   : > { %v8123_v48 = vadd.f32 1e-05, %v8122_v4 }
 0xc3e   : > { %10299 = vrsqrt.f32 %v8123_v48 }
 0xc48   : > { %v10300_v25 = vpop.eup %10299 }
 0xc49   : > { %v8125_v40 = vmul.f32 %v10300_v25, %v8117_v42  ;;  %v8327_v42 = vld [vmem:[%s12095_s17 + $0x8] sm:$0xff] }
 0xc4a   : > { %v10186_v52 = vpack.c.bf16 %v8327_v42, %v8326_v1 }
 0xc4b   : > { %v8126_v23 = vmul.f32 %v11955_v29, %v8125_v40 }
 0xc4d   : > { %v8127_v7 = vadd.f32 %v11961_v18, %v8126_v23 }
 0xc4f   : > { %9819 = vmatmul.mubr.msk.f32.vlgmr.msra.gmra.mrb[98].mxu0 %vm796_vm1, %v8127_v7 }
 0xc50   : > { %9864 = vmatprep.mubr.msk.f32.mxu0 %vm10409_vm0, %v12156_v30  ;;  %v8226_v30 = vld [vmem:[%s12093_s15 + $0x48] sm:$0xff]  ;;  %10187 = vmatpush3.bf16.msra.mxu0 %v10186_v52 }
 0xc51   : > { %v10174_v9 = vpack.c.bf16 %v8226_v30, %v8225_v33  ;;  %10188 = vmatprep.subr.bf16.mxu0 %v12158_v54 }
 0xc53   : > { %10175 = vmatpush3.bf16.msra.mxu1 %v10174_v9 }
 0xc54   : > { %10176 = vmatprep.subr.bf16.mxu1 %v12158_v54  ;;  %10190 = vmatpush3.bf16.msra.mxu0 %v10189_v58 }
 0xc57   : > { %10178 = vmatpush3.bf16.msra.mxu1 %v10177_v20 }
 0xc58   : > { %10179 = vmatprep.subr.bf16.mxu1 %v12158_v54 }
 0xc5b   : > { %10181 = vmatpush3.bf16.msra.mxu1 %v10180_v32 }
 0xc5c   : > { %10182 = vmatprep.subr.bf16.mxu1 %v12158_v54 }
 0xc5f   : > { %10184 = vmatpush3.bf16.msra.mxu1 %v10183_v43 }
 0xd22   : > { %v8208_v22 = vpop.f32.mrb[98].mxu0 }
 0xd23   : > { %v8209_v44 = vadd.f32 %v8670_v2, %v8208_v22  ;;  %v9820_v49 = vpop.f32.mrb[99].mxu0 }
 0xd25   : > { %v8213_v50 = vmul.f32 0.70710677, %v8209_v44  ;;  %v8212_v56 = vmul.f32 0.5, %v8209_v44 }
 0xd27   : > { %10301 = verf.f32 %v8213_v50 }
 0xd31   : > { %v10302_v55 = vpop.eup %10301 }
 0xd32   : > { %v8215_v61 = vadd.f32 1.0, %v10302_v55 }
 0xd34   : > { %v8216_v62 = vmul.f32 %v8215_v61, %v8212_v56 }
 0xd36   : > { %9854 = vmatmul.mubr.f32.vlgmr.msra.gmra.mrb[94].mxu1 %v8216_v62 }
 0xe09   : > { %v8306_v59 = vpop.f32.mrb[94].mxu1 }
 0xe0a   : > { %v8307_v17 = vadd.f32 %v8672_v5, %v8306_v59  ;;  %v9855_v6 = vpop.f32.mrb[95].mxu1 }
 0xe0c   : > { %v8310_v15 = vadd.f32 %v8307_v17, %v8127_v7 }
 0xe0e   : > { %v8311_v16 = vsel %vm796_vm1, %v8310_v15, 0.0 }
 0xe0f   : > { %8312 = vadd.xlane.f32.xlu0 %v8311_v16 }
 0xe9c   : > { %v8313_v24 = vpop.xlane.xlu0 %8312 }
 0xe9d   : > { %v8314_v27 = vmul.f32 0.03125, %v8313_v24 }
 0xe9f   : > { %v8315_v34 = vsub.f32 %v8310_v15, %v8314_v27 }
 0xea1   : > { %v8316_v51 = vmul.f32 %v8315_v34, %v8315_v34 }
 0xea3   : > { %v8317_v35 = vsel %vm796_vm1, %v8316_v51, 0.0 }
 0xea4   : > { %8318 = vadd.xlane.f32.xlu1 %v8317_v35 }
 0xf31   : > { %v8319_v39 = vpop.xlane.xlu1 %8318 }
 0xf32   : > { %v8320_v0 = vmul.f32 0.03125, %v8319_v39 }
 0xf34   : > { %v8321_v53 = vadd.f32 1e-05, %v8320_v0 }
 0xf36   : > { %10303 = vrsqrt.f32 %v8321_v53 }
 0xf40   : > { %v10304_v3 = vpop.eup %10303 }
 0xf41   : > { %v8323_v47 = vmul.f32 %v10304_v3, %v8315_v34 }
 0xf43   : > { %v8324_v21 = vmul.f32 %v11955_v29, %v8323_v47 }
 0xf45   : > { %v8325_v41 = vadd.f32 %v11961_v18, %v8324_v21 }
 0xf47   : > { %9865 = vmatmul.mubr.msk.f32.vlgmr.msra.gmra.mrb[100].mxu0 %vm796_vm1, %v8325_v41 }
0x101a   : > { %v8406_v54 = vpop.f32.mrb[100].mxu0 }
0x101b   : > { %v8407_v46 = vadd.f32 %v8673_v57, %v8406_v54  ;;  %v9866_v10 = vpop.f32.mrb[101].mxu0 }
0x101d   : > { %v8411_v19 = vsel %vm8410_vm6, %v8407_v46, -inf }
0x101e   : > { %8412 = vmax.xlane.f32.xlu0 %v8411_v19 }
0x10ab   : > { %v8413_v36 = vpop.xlane.xlu0 %8412 }
0x10ac   : > { %v8414_v11 = vsub.f32 %v8407_v46, %v8413_v36 }
0x10ae   : > { %v8415_v28 = vmul.f32 1.442695, %v8414_v11 }
0x10b0   : > { %10305 = vpow2.f32 %v8415_v28 }
0x10ba   : > { %v10306_v4 = vpop.eup %10305 }
0x10bb   : > { %v8417_v48 = vsel %vm8410_vm6, %v10306_v4, 0.0 }
0x10bc   : > { %8418 = vadd.xlane.f32.xlu1 %v8417_v48 }
0x1149   : > { %v8419_v25 = vpop.xlane.xlu1 %8418 }
0x114a   : > { %10307 = vrcp.f32 %v8419_v25 }
0x1154   : > { %v10308_v40 = vpop.eup %10307 }
0x1155   : > { %v8421_v29 = vmul.f32 %v10308_v40, %v10306_v4 }
0x1157   : > { %8422 = vst.msk [vmem:[%s606_s2] sm:$0xff] %vm8410_vm6, %v8421_v29 }
0x1158   : > { %10357 = shalt.err (!%p10354_p3)
}
0x1159   : > { %s10358_s0 = scalar_lea.hbm %s12035_s23, 128  ;;  %s10362_s19 = scalar_lea.hbm %s12176_s22, 256 }
0x115a   : > { %p10359_p4 = scmp.ne.s32.totalorder %s12035_s23, %s10358_s0  ;;  %p10363_p9 = scmp.lt.u32.totalorder %s12035_s23, %s12176_s22 }
0x115b   : > { %p10364_p10 = scmp.lt.u32.totalorder %s10362_s19, %s10358_s0  ;;  %p10366_p12 = scmp.lt.u32.totalorder %s10358_s0, %s12035_s23 }
0x115c   : > { %p10360_p7 = pnand %p10359_p4, %p10550_p5 }
0x115d   : > { %p10365_p11 = por %p10364_p10, %p10363_p9 }
0x115e   : > { %p10361_p8 = pneg %p10360_p7 }
0x115f   : > { %p10367_p13 = por %p10366_p12, %p10365_p11 }
0x1161   : > { %p10368_p0 = pnand %p10367_p13, %p10361_p8 }
0x1163   : > { %10371 = shalt.err (!%p10368_p0)
}
0x1164   : > { %10191 = dma.vmem_to_hbm [thread:$0]  (%p10550_p5), %s12037_s27, 128, %s12035_s23, %s8424_s25  }
0x1165 PF: > { %s12177_s20 = sld [smem:[#allocation7_spill]]  ;;  %s12178_s24 = sld [smem:[#allocation5_spill]] }
0x116b   : > { %p10197_p1 = scmp.ge.s32.totalorder %s12177_s20, 2  ;;  %s8449_s28 = sand.u32 1, %s12178_s24  }
0x116c   : > { %s8450_s2 = scalar_lea.sflag [#allocation3], %s8449_s28 }
0x116d   : > { %p10194_p2 = pnand %p10197_p1, %p10554_p6 }
0x116f   : > { %10389 = dma.done.wait (!%p10194_p2), %s8450_s2, 128  }
0x1170   : > { %10391 = vsyncadd (!%p10194_p2), %s8450_s2, 4294967168  ;;  %s12180_s21 = sld [smem:[#allocation8_spill]]  ;;  %s12181_s19 = sld [smem:[#allocation6_spill]] }
0x1171   : > { %s12182_s20 = sld [smem:[#allocation9_spill]]  ;;  %s12183_s0 = smov %s10398_s30 }
0x1176   : > { %p29_p3 = scmp.ge.s32.totalorder %s12180_s21, 4   ;;  %s12184_s30 = smov %s12181_s19 }
0x1178   :  { %31 = sbr.rel (!%p29_p3) target bundleno = 9 (0x9), region = 134 }
0x117f   :  { %8455 = vsyncpa [#allocation3], 1 }
0x1180   :  { %8457 = vsyncpa [#allocation3 + $0x1], 1 }

</bundles_post_ra>
